<compile_context>
chip_gen: v6e
topology: v6e:2x2x1
jax: 0.10.0
libtpu: 0.0.40
codegen_flags: <defaults>
</compile_context>

<pallas_src>
import functools

import jax
import jax.numpy as jnp
from jax.experimental import pallas as pl
from jax.experimental.pallas import tpu as pltpu
from jax.scipy.special import erf as _erf_exact

_BN_EPS = 1e-5
_SQRT1_2 = 0.7071067811865476


# ------------------------------ in-kernel math ------------------------------
def _erf(x):
    # Abramowitz & Stegun 7.1.26 rational approximation (|err| ~ 1.5e-7).
    # exp + reciprocal run on the EUP slot; one Newton step on the approximate
    # reciprocal restores ~f32 accuracy with a couple of VALU FMAs.
    a1, a2, a3, a4, a5 = (0.254829592, -0.284496736, 1.421413741,
                          -1.453152027, 1.061405429)
    p = 0.3275911
    sgn = jnp.where(x >= 0.0, 1.0, -1.0)
    z = jnp.abs(x)
    d = 1.0 + p * z
    t = pl.reciprocal(d, approx=True)          # EUP slot, frees VALU
    t = t * (2.0 - d * t)                      # Newton refine -> ~exact 1/d
    poly = ((((a5 * t + a4) * t + a3) * t + a2) * t + a1) * t
    return sgn * (1.0 - poly * jnp.exp(-z * z))


def _gelu(x):
    # torch nn.GELU() default = exact (erf-based) formulation.
    return 0.5 * x * (1.0 + _erf(x * _SQRT1_2))


def _ds(start, size, stride):
    return pl.ds(start, size) if stride == 1 else pl.ds(start, size, stride)


# ------------------------------- Pallas kernel -------------------------------
def _conv_bn_gelu_kernel(x_ref, w_ref, shift_ref, o_ref, *,
                         ksize, stride, th, wo, cin):
    """One (batch, row-tile) grid cell of fused Conv2d + folded BN + GELU.

    x_ref:     (Hp, Wp, Cin)      zero-padded NHWC image, VMEM resident
    w_ref:     (k*k, Cin, Cpad)   BN-scale-folded dense tap weights
    shift_ref: (1, Cpad)          folded BN shift (beta - mean*scale)
    o_ref:     (th*Wo, Cpad)      lane-dense output tile (Cpad % 128 == 0)
    """
    i = pl.program_id(1)
    row0 = pl.multiple_of(i * th * stride, th * stride)

    acc = None
    for dh in range(ksize):
        for dw in range(ksize):
            # Shifted conv window sliced straight out of the resident image
            # (no HBM tap stack), collapsed to (th*Wo, Cin) for a 2-D matmul.
            win = x_ref[_ds(row0 + dh, th, stride), _ds(dw, wo, stride), :]
            win = win.reshape(th * wo, cin)
            contrib = jnp.dot(win, w_ref[dh * ksize + dw],
                              preferred_element_type=jnp.float32)
            acc = contrib if acc is None else acc + contrib

    # BN shift broadcast outside the tap loop; GELU epilogue; one unmasked
    # 128-lane-dense store.
    o_ref[...] = _gelu(acc + shift_ref[...])


def _pick_row_tile(ho, wo, cpad, budget_bytes):
    """Largest output-row tile whose double-buffered output block fits the
    remaining VMEM budget and satisfies the (8, 128) block-shape rule (only
    exact divisors of Ho are considered, so there is no remainder tile)."""
    valid = [t for t in range(1, ho + 1)
             if ho % t == 0 and ((t * wo) % 8 == 0 or t == ho)]
    fitting = [t for t in valid if 2 * t * wo * cpad * 4 <= budget_bytes]
    return max(fitting) if fitting else min(valid)


# --------------------------------- wrapper -----------------------------------
def conv_bn_act(x_nchw, w, gamma, beta, running_mean, running_var, *,
                stride=1, padding=0, groups=1, eps=_BN_EPS):
    """ConvBNACT.forward (eval mode) with a single fused pallas_call."""
    N, Cin, H, W = x_nchw.shape
    Cout, Cin_g, kh, kw = w.shape
    assert kh == kw, "square kernels only"
    k = kh
    assert Cin_g * groups == Cin and Cout % groups == 0

    Ho = (H + 2 * padding - k) // stride + 1
    Wo = (W + 2 * padding - k) // stride + 1
    Hp, Wp = H + 2 * padding, W + 2 * padding

    # ---- fold eval-mode BatchNorm into the conv weights (conv has no bias) ----
    # TODO(synk): training-mode BatchNorm (batch statistics + running-stat
    # update) is not implemented; running statistics are folded in.
    scale = gamma * jax.lax.rsqrt(running_var + eps)          # (Cout,)
    shift = beta - running_mean * scale                       # (Cout,)

    # Grouped conv handled exactly by embedding each group's (Cin_g, Cout_g)
    # block into a dense, zero-elsewhere (Cin, Cout) tap matrix.
    out_g = Cout // groups
    wd = jnp.zeros((k, k, Cin, Cout), jnp.float32)
    for g in range(groups):
        blk = jnp.transpose(w[g * out_g:(g + 1) * out_g], (2, 3, 1, 0))
        wd = wd.at[:, :, g * Cin_g:(g + 1) * Cin_g,
                   g * out_g:(g + 1) * out_g].set(blk.astype(jnp.float32))
    wd = wd * scale[None, None, None, :]

    # ---- lane-dense channel padding: Cout -> multiple of 128 ----
    Cpad = ((Cout + 127) // 128) * 128
    wd = jnp.pad(wd, ((0, 0), (0, 0), (0, 0), (0, Cpad - Cout)))
    wd = wd.reshape(k * k, Cin, Cpad)
    shift_p = jnp.pad(shift, (0, Cpad - Cout)).reshape(1, Cpad).astype(jnp.float32)

    # ---- single boundary layout op: NCHW -> zero-padded NHWC ----
    x = jnp.transpose(x_nchw, (0, 2, 3, 1)).astype(jnp.float32)
    xp = jnp.pad(x, ((0, 0), (padding, padding), (padding, padding), (0, 0)))

    # ---- VMEM budgeting: resident image/weights (double-buffered) first,
    #      then give the rest (capped) to the double-buffered output tile ----
    vmem_limit = 32 * 1024 * 1024
    resident = 2 * (Hp * Wp * Cin * 4 + k * k * Cin * Cpad * 4 + Cpad * 4)
    out_budget = max(256 * 1024,
                     min(vmem_limit - resident - (2 << 20), 8 << 20))
    th = _pick_row_tile(Ho, Wo, Cpad, out_budget)
    grid = (N, Ho // th)

    cost = pl.CostEstimate(
        flops=2 * N * Ho * Wo * k * k * Cin * Cpad,
        transcendentals=2 * N * Ho * Wo * Cpad,
        bytes_accessed=xp.size * 4 + wd.size * 4 + N * Ho * Wo * Cpad * 4)

    kernel = functools.partial(_conv_bn_gelu_kernel, ksize=k, stride=stride,
                               th=th, wo=Wo, cin=Cin)
    out = pl.pallas_call(
        kernel,
        out_shape=jax.ShapeDtypeStruct((N, Ho * Wo, Cpad), jnp.float32),
        grid=grid,
        in_specs=[
            # Whole padded image per batch element, resident across row tiles.
            # TODO(synk): halo-aware manual-DMA row blocking for spatial sizes
            # whose full padded image does not fit in VMEM.
            pl.BlockSpec((None, Hp, Wp, Cin), lambda n, i: (n, 0, 0, 0)),
            pl.BlockSpec((k * k, Cin, Cpad), lambda n, i: (0, 0, 0)),
            pl.BlockSpec((1, Cpad), lambda n, i: (0, 0)),
        ],
        out_specs=pl.BlockSpec((None, th * Wo, Cpad), lambda n, i: (n, i, 0)),
        compiler_params=pltpu.CompilerParams(
            dimension_semantics=("parallel", "parallel"),
            vmem_limit_bytes=vmem_limit),
        cost_estimate=cost,
    )(xp, wd, shift_p)

    # ---- drop channel padding, back to NCHW for interface parity ----
    out = out[:, :, :Cout].reshape(N, Ho, Wo, Cout)
    return jnp.transpose(out, (0, 3, 1, 2))


# ------------------------------ plain-JAX reference ---------------------------
def _reference(x, w, gamma, beta, mean, var, *, stride, padding, groups,
               eps=_BN_EPS):
    y = jax.lax.conv_general_dilated(
        x.astype(jnp.float32), w.astype(jnp.float32),
        window_strides=(stride, stride),
        padding=((padding, padding), (padding, padding)),
        dimension_numbers=("NCHW", "OIHW", "NCHW"),
        feature_group_count=groups)
    s = gamma * jax.lax.rsqrt(var + eps)
    y = y * s[None, :, None, None] + (beta - mean * s)[None, :, None, None]
    return 0.5 * y * (1.0 + _erf_exact(y * _SQRT1_2))


# ----------------------------------- main -------------------------------------
if __name__ == "__main__":
    batch, cin, cout = 2, 4, 32
    H = W = 16
    ksize, stride, padding, groups = 3, 1, 1, 1

    key = jax.random.PRNGKey(0)
    kx, kw_, kg, kb, km, kv = jax.random.split(key, 6)
    x = jax.random.normal(kx, (batch, cin, H, W), jnp.float32)
    w = 0.2 * jax.random.normal(kw_, (cout, cin // groups, ksize, ksize),
                                jnp.float32)
    gamma = 1.0 + 0.1 * jax.random.normal(kg, (cout,), jnp.float32)
    beta = 0.1 * jax.random.normal(kb, (cout,), jnp.float32)
    rmean = 0.1 * jax.random.normal(km, (cout,), jnp.float32)
    rvar = jax.random.uniform(kv, (cout,), jnp.float32, minval=0.5, maxval=1.5)

    fwd = jax.jit(functools.partial(conv_bn_act, stride=stride,
                                    padding=padding, groups=groups))
    out = jax.block_until_ready(fwd(x, w, gamma, beta, rmean, rvar))

    Ho = (H + 2 * padding - ksize) // stride + 1
    Wo = (W + 2 * padding - ksize) // stride + 1
    assert out.shape == (batch, cout, Ho, Wo), out.shape
    assert bool(jnp.all(jnp.isfinite(out)))

    ref = _reference(x, w, gamma, beta, rmean, rvar, stride=stride,
                     padding=padding, groups=groups)
    # The in-kernel GELU uses an erf polynomial (~1e-6 abs error after the
    # Newton-refined EUP reciprocal); keep a comfortable tolerance margin.
    assert bool(jnp.allclose(out, ref, atol=2e-2, rtol=2e-2)), float(
        jnp.max(jnp.abs(out - ref)))
    print("KERNEL_OK")
</pallas_src>

<mosaic_0001>
module attributes {stable_mosaic.version = 11 : i64} {
  func.func @_conv_bn_gelu_kernel(%arg0: i32, %arg1: i32, %arg2: memref<1x18x18x4xf32, #tpu.memory_space<vmem>>, %arg3: memref<9x4x128xf32, #tpu.memory_space<vmem>>, %arg4: memref<1x128xf32, #tpu.memory_space<vmem>>, %arg5: memref<1x256x128xf32, #tpu.memory_space<vmem>>) attributes {dimension_semantics = [#tpu.dimension_semantics<parallel>, #tpu.dimension_semantics<parallel>], iteration_bounds = array<i64: 2, 1>, scalar_prefetch = 0 : i64, scratch_operands = 0 : i64, tpu.core_type = #tpu.core_type<tc>, window_params = [{transform_indices = @transform_0, window_bounds = array<i64: 1, 18, 18, 4>}, {pipeline_mode = #tpu.pipeline_mode<synchronous>, transform_indices = @transform_1, window_bounds = array<i64: 9, 4, 128>}, {pipeline_mode = #tpu.pipeline_mode<synchronous>, transform_indices = @transform_2, window_bounds = array<i64: 1, 128>}, {transform_indices = @transform_3, window_bounds = array<i64: 1, 256, 128>}]} {
    %c16_i32 = arith.constant 16 : i32
    %0 = arith.muli %arg1, %c16_i32 : i32
    %c1_i32 = arith.constant 1 : i32
    %1 = arith.muli %0, %c1_i32 : i32
    %2 = tpu.assume_multiple %1, 16 : i32
    %c0_i32 = arith.constant 0 : i32
    %3 = arith.addi %2, %c0_i32 : i32
    %c0 = arith.constant 0 : index
    %4 = arith.index_cast %3 : i32 to index
    %c0_0 = arith.constant 0 : index
    %c0_1 = arith.constant 0 : index
    %5 = vector.load %arg2[%c0, %4, %c0_0, %c0_1] : memref<1x18x18x4xf32, #tpu.memory_space<vmem>>, vector<1x16x16x4xf32>
    %6 = vector.shape_cast %5 : vector<1x16x16x4xf32> to vector<16x16x4xf32>
    %7 = vector.shape_cast %6 : vector<16x16x4xf32> to vector<256x4xf32>
    %c0_2 = arith.constant 0 : index
    %c0_3 = arith.constant 0 : index
    %c0_4 = arith.constant 0 : index
    %8 = vector.load %arg3[%c0_2, %c0_3, %c0_4] : memref<9x4x128xf32, #tpu.memory_space<vmem>>, vector<1x4x128xf32>
    %9 = vector.shape_cast %8 : vector<1x4x128xf32> to vector<4x128xf32>
    %cst = arith.constant dense<0.000000e+00> : vector<256x128xf32>
    %10 = tpu.matmul %7, %9, %cst {dimension_numbers = #tpu.dot_dimension_numbers<[1], [0], [0], [1], [0, 0, 1, 1], [], []>} : vector<256x4xf32>, vector<4x128xf32>, vector<256x128xf32> -> vector<256x128xf32>
    %c0_i32_5 = arith.constant 0 : i32
    %11 = arith.addi %2, %c0_i32_5 : i32
    %c0_6 = arith.constant 0 : index
    %12 = arith.index_cast %11 : i32 to index
    %c1 = arith.constant 1 : index
    %c0_7 = arith.constant 0 : index
    %13 = vector.load %arg2[%c0_6, %12, %c1, %c0_7] : memref<1x18x18x4xf32, #tpu.memory_space<vmem>>, vector<1x16x16x4xf32>
    %14 = vector.shape_cast %13 : vector<1x16x16x4xf32> to vector<16x16x4xf32>
    %15 = vector.shape_cast %14 : vector<16x16x4xf32> to vector<256x4xf32>
    %c1_8 = arith.constant 1 : index
    %c0_9 = arith.constant 0 : index
    %c0_10 = arith.constant 0 : index
    %16 = vector.load %arg3[%c1_8, %c0_9, %c0_10] : memref<9x4x128xf32, #tpu.memory_space<vmem>>, vector<1x4x128xf32>
    %17 = vector.shape_cast %16 : vector<1x4x128xf32> to vector<4x128xf32>
    %cst_11 = arith.constant dense<0.000000e+00> : vector<256x128xf32>
    %18 = tpu.matmul %15, %17, %cst_11 {dimension_numbers = #tpu.dot_dimension_numbers<[1], [0], [0], [1], [0, 0, 1, 1], [], []>} : vector<256x4xf32>, vector<4x128xf32>, vector<256x128xf32> -> vector<256x128xf32>
    %19 = arith.addf %10, %18 : vector<256x128xf32>
    %c0_i32_12 = arith.constant 0 : i32
    %20 = arith.addi %2, %c0_i32_12 : i32
    %c0_13 = arith.constant 0 : index
    %21 = arith.index_cast %20 : i32 to index
    %c2 = arith.constant 2 : index
    %c0_14 = arith.constant 0 : index
    %22 = vector.load %arg2[%c0_13, %21, %c2, %c0_14] : memref<1x18x18x4xf32, #tpu.memory_space<vmem>>, vector<1x16x16x4xf32>
    %23 = vector.shape_cast %22 : vector<1x16x16x4xf32> to vector<16x16x4xf32>
    %24 = vector.shape_cast %23 : vector<16x16x4xf32> to vector<256x4xf32>
    %c2_15 = arith.constant 2 : index
    %c0_16 = arith.constant 0 : index
    %c0_17 = arith.constant 0 : index
    %25 = vector.load %arg3[%c2_15, %c0_16, %c0_17] : memref<9x4x128xf32, #tpu.memory_space<vmem>>, vector<1x4x128xf32>
    %26 = vector.shape_cast %25 : vector<1x4x128xf32> to vector<4x128xf32>
    %cst_18 = arith.constant dense<0.000000e+00> : vector<256x128xf32>
    %27 = tpu.matmul %24, %26, %cst_18 {dimension_numbers = #tpu.dot_dimension_numbers<[1], [0], [0], [1], [0, 0, 1, 1], [], []>} : vector<256x4xf32>, vector<4x128xf32>, vector<256x128xf32> -> vector<256x128xf32>
    %28 = arith.addf %19, %27 : vector<256x128xf32>
    %c1_i32_19 = arith.constant 1 : i32
    %29 = arith.addi %2, %c1_i32_19 : i32
    %c0_20 = arith.constant 0 : index
    %30 = arith.index_cast %29 : i32 to index
    %c0_21 = arith.constant 0 : index
    %c0_22 = arith.constant 0 : index
    %31 = vector.load %arg2[%c0_20, %30, %c0_21, %c0_22] : memref<1x18x18x4xf32, #tpu.memory_space<vmem>>, vector<1x16x16x4xf32>
    %32 = vector.shape_cast %31 : vector<1x16x16x4xf32> to vector<16x16x4xf32>
    %33 = vector.shape_cast %32 : vector<16x16x4xf32> to vector<256x4xf32>
    %c3 = arith.constant 3 : index
    %c0_23 = arith.constant 0 : index
    %c0_24 = arith.constant 0 : index
    %34 = vector.load %arg3[%c3, %c0_23, %c0_24] : memref<9x4x128xf32, #tpu.memory_space<vmem>>, vector<1x4x128xf32>
    %35 = vector.shape_cast %34 : vector<1x4x128xf32> to vector<4x128xf32>
    %cst_25 = arith.constant dense<0.000000e+00> : vector<256x128xf32>
    %36 = tpu.matmul %33, %35, %cst_25 {dimension_numbers = #tpu.dot_dimension_numbers<[1], [0], [0], [1], [0, 0, 1, 1], [], []>} : vector<256x4xf32>, vector<4x128xf32>, vector<256x128xf32> -> vector<256x128xf32>
    %37 = arith.addf %28, %36 : vector<256x128xf32>
    %c1_i32_26 = arith.constant 1 : i32
    %38 = arith.addi %2, %c1_i32_26 : i32
    %c0_27 = arith.constant 0 : index
    %39 = arith.index_cast %38 : i32 to index
    %c1_28 = arith.constant 1 : index
    %c0_29 = arith.constant 0 : index
    %40 = vector.load %arg2[%c0_27, %39, %c1_28, %c0_29] : memref<1x18x18x4xf32, #tpu.memory_space<vmem>>, vector<1x16x16x4xf32>
    %41 = vector.shape_cast %40 : vector<1x16x16x4xf32> to vector<16x16x4xf32>
    %42 = vector.shape_cast %41 : vector<16x16x4xf32> to vector<256x4xf32>
    %c4 = arith.constant 4 : index
    %c0_30 = arith.constant 0 : index
    %c0_31 = arith.constant 0 : index
    %43 = vector.load %arg3[%c4, %c0_30, %c0_31] : memref<9x4x128xf32, #tpu.memory_space<vmem>>, vector<1x4x128xf32>
    %44 = vector.shape_cast %43 : vector<1x4x128xf32> to vector<4x128xf32>
    %cst_32 = arith.constant dense<0.000000e+00> : vector<256x128xf32>
    %45 = tpu.matmul %42, %44, %cst_32 {dimension_numbers = #tpu.dot_dimension_numbers<[1], [0], [0], [1], [0, 0, 1, 1], [], []>} : vector<256x4xf32>, vector<4x128xf32>, vector<256x128xf32> -> vector<256x128xf32>
    %46 = arith.addf %37, %45 : vector<256x128xf32>
    %c1_i32_33 = arith.constant 1 : i32
    %47 = arith.addi %2, %c1_i32_33 : i32
    %c0_34 = arith.constant 0 : index
    %48 = arith.index_cast %47 : i32 to index
    %c2_35 = arith.constant 2 : index
    %c0_36 = arith.constant 0 : index
    %49 = vector.load %arg2[%c0_34, %48, %c2_35, %c0_36] : memref<1x18x18x4xf32, #tpu.memory_space<vmem>>, vector<1x16x16x4xf32>
    %50 = vector.shape_cast %49 : vector<1x16x16x4xf32> to vector<16x16x4xf32>
    %51 = vector.shape_cast %50 : vector<16x16x4xf32> to vector<256x4xf32>
    %c5 = arith.constant 5 : index
    %c0_37 = arith.constant 0 : index
    %c0_38 = arith.constant 0 : index
    %52 = vector.load %arg3[%c5, %c0_37, %c0_38] : memref<9x4x128xf32, #tpu.memory_space<vmem>>, vector<1x4x128xf32>
    %53 = vector.shape_cast %52 : vector<1x4x128xf32> to vector<4x128xf32>
    %cst_39 = arith.constant dense<0.000000e+00> : vector<256x128xf32>
    %54 = tpu.matmul %51, %53, %cst_39 {dimension_numbers = #tpu.dot_dimension_numbers<[1], [0], [0], [1], [0, 0, 1, 1], [], []>} : vector<256x4xf32>, vector<4x128xf32>, vector<256x128xf32> -> vector<256x128xf32>
    %55 = arith.addf %46, %54 : vector<256x128xf32>
    %c2_i32 = arith.constant 2 : i32
    %56 = arith.addi %2, %c2_i32 : i32
    %c0_40 = arith.constant 0 : index
    %57 = arith.index_cast %56 : i32 to index
    %c0_41 = arith.constant 0 : index
    %c0_42 = arith.constant 0 : index
    %58 = vector.load %arg2[%c0_40, %57, %c0_41, %c0_42] : memref<1x18x18x4xf32, #tpu.memory_space<vmem>>, vector<1x16x16x4xf32>
    %59 = vector.shape_cast %58 : vector<1x16x16x4xf32> to vector<16x16x4xf32>
    %60 = vector.shape_cast %59 : vector<16x16x4xf32> to vector<256x4xf32>
    %c6 = arith.constant 6 : index
    %c0_43 = arith.constant 0 : index
    %c0_44 = arith.constant 0 : index
    %61 = vector.load %arg3[%c6, %c0_43, %c0_44] : memref<9x4x128xf32, #tpu.memory_space<vmem>>, vector<1x4x128xf32>
    %62 = vector.shape_cast %61 : vector<1x4x128xf32> to vector<4x128xf32>
    %cst_45 = arith.constant dense<0.000000e+00> : vector<256x128xf32>
    %63 = tpu.matmul %60, %62, %cst_45 {dimension_numbers = #tpu.dot_dimension_numbers<[1], [0], [0], [1], [0, 0, 1, 1], [], []>} : vector<256x4xf32>, vector<4x128xf32>, vector<256x128xf32> -> vector<256x128xf32>
    %64 = arith.addf %55, %63 : vector<256x128xf32>
    %c2_i32_46 = arith.constant 2 : i32
    %65 = arith.addi %2, %c2_i32_46 : i32
    %c0_47 = arith.constant 0 : index
    %66 = arith.index_cast %65 : i32 to index
    %c1_48 = arith.constant 1 : index
    %c0_49 = arith.constant 0 : index
    %67 = vector.load %arg2[%c0_47, %66, %c1_48, %c0_49] : memref<1x18x18x4xf32, #tpu.memory_space<vmem>>, vector<1x16x16x4xf32>
    %68 = vector.shape_cast %67 : vector<1x16x16x4xf32> to vector<16x16x4xf32>
    %69 = vector.shape_cast %68 : vector<16x16x4xf32> to vector<256x4xf32>
    %c7 = arith.constant 7 : index
    %c0_50 = arith.constant 0 : index
    %c0_51 = arith.constant 0 : index
    %70 = vector.load %arg3[%c7, %c0_50, %c0_51] : memref<9x4x128xf32, #tpu.memory_space<vmem>>, vector<1x4x128xf32>
    %71 = vector.shape_cast %70 : vector<1x4x128xf32> to vector<4x128xf32>
    %cst_52 = arith.constant dense<0.000000e+00> : vector<256x128xf32>
    %72 = tpu.matmul %69, %71, %cst_52 {dimension_numbers = #tpu.dot_dimension_numbers<[1], [0], [0], [1], [0, 0, 1, 1], [], []>} : vector<256x4xf32>, vector<4x128xf32>, vector<256x128xf32> -> vector<256x128xf32>
    %73 = arith.addf %64, %72 : vector<256x128xf32>
    %c2_i32_53 = arith.constant 2 : i32
    %74 = arith.addi %2, %c2_i32_53 : i32
    %c0_54 = arith.constant 0 : index
    %75 = arith.index_cast %74 : i32 to index
    %c2_55 = arith.constant 2 : index
    %c0_56 = arith.constant 0 : index
    %76 = vector.load %arg2[%c0_54, %75, %c2_55, %c0_56] : memref<1x18x18x4xf32, #tpu.memory_space<vmem>>, vector<1x16x16x4xf32>
    %77 = vector.shape_cast %76 : vector<1x16x16x4xf32> to vector<16x16x4xf32>
    %78 = vector.shape_cast %77 : vector<16x16x4xf32> to vector<256x4xf32>
    %c8 = arith.constant 8 : index
    %c0_57 = arith.constant 0 : index
    %c0_58 = arith.constant 0 : index
    %79 = vector.load %arg3[%c8, %c0_57, %c0_58] : memref<9x4x128xf32, #tpu.memory_space<vmem>>, vector<1x4x128xf32>
    %80 = vector.shape_cast %79 : vector<1x4x128xf32> to vector<4x128xf32>
    %cst_59 = arith.constant dense<0.000000e+00> : vector<256x128xf32>
    %81 = tpu.matmul %78, %80, %cst_59 {dimension_numbers = #tpu.dot_dimension_numbers<[1], [0], [0], [1], [0, 0, 1, 1], [], []>} : vector<256x4xf32>, vector<4x128xf32>, vector<256x128xf32> -> vector<256x128xf32>
    %82 = arith.addf %73, %81 : vector<256x128xf32>
    %c0_60 = arith.constant 0 : index
    %c0_61 = arith.constant 0 : index
    %83 = vector.load %arg4[%c0_60, %c0_61] : memref<1x128xf32, #tpu.memory_space<vmem>>, vector<1x128xf32>
    %84 = vector.broadcast %83 : vector<1x128xf32> to vector<256x128xf32>
    %85 = arith.addf %82, %84 : vector<256x128xf32>
    %cst_62 = arith.constant 5.000000e-01 : f32
    %86 = vector.broadcast %cst_62 : f32 to vector<256x128xf32>
    %87 = arith.mulf %86, %85 : vector<256x128xf32>
    %cst_63 = arith.constant 0.707106769 : f32
    %88 = vector.broadcast %cst_63 : f32 to vector<256x128xf32>
    %89 = arith.mulf %85, %88 : vector<256x128xf32>
    %cst_64 = arith.constant 0.000000e+00 : f32
    %90 = vector.broadcast %cst_64 : f32 to vector<256x128xf32>
    %91 = arith.cmpf oge, %89, %90 : vector<256x128xf32>
    %cst_65 = arith.constant 1.000000e+00 : f32
    %cst_66 = arith.constant -1.000000e+00 : f32
    %92 = vector.broadcast %cst_65 : f32 to vector<256x128xf32>
    %93 = vector.broadcast %cst_66 : f32 to vector<256x128xf32>
    %94 = arith.select %91, %92, %93 : vector<256x128xi1>, vector<256x128xf32>
    %95 = math.absf %89 : vector<256x128xf32>
    %cst_67 = arith.constant 0.327591091 : f32
    %96 = vector.broadcast %cst_67 : f32 to vector<256x128xf32>
    %97 = arith.mulf %96, %95 : vector<256x128xf32>
    %cst_68 = arith.constant 1.000000e+00 : f32
    %98 = vector.broadcast %cst_68 : f32 to vector<256x128xf32>
    %99 = arith.addf %98, %97 : vector<256x128xf32>
    %100 = tpu.reciprocal %99 {approx = true} : vector<256x128xf32> -> vector<256x128xf32>
    %101 = arith.mulf %99, %100 : vector<256x128xf32>
    %cst_69 = arith.constant 2.000000e+00 : f32
    %102 = vector.broadcast %cst_69 : f32 to vector<256x128xf32>
    %103 = arith.subf %102, %101 : vector<256x128xf32>
    %104 = arith.mulf %100, %103 : vector<256x128xf32>
    %cst_70 = arith.constant 1.06140542 : f32
    %105 = vector.broadcast %cst_70 : f32 to vector<256x128xf32>
    %106 = arith.mulf %105, %104 : vector<256x128xf32>
    %cst_71 = arith.constant -1.45315206 : f32
    %107 = vector.broadcast %cst_71 : f32 to vector<256x128xf32>
    %108 = arith.addf %106, %107 : vector<256x128xf32>
    %109 = arith.mulf %108, %104 : vector<256x128xf32>
    %cst_72 = arith.constant 1.42141378 : f32
    %110 = vector.broadcast %cst_72 : f32 to vector<256x128xf32>
    %111 = arith.addf %109, %110 : vector<256x128xf32>
    %112 = arith.mulf %111, %104 : vector<256x128xf32>
    %cst_73 = arith.constant -0.284496725 : f32
    %113 = vector.broadcast %cst_73 : f32 to vector<256x128xf32>
    %114 = arith.addf %112, %113 : vector<256x128xf32>
    %115 = arith.mulf %114, %104 : vector<256x128xf32>
    %cst_74 = arith.constant 0.254829586 : f32
    %116 = vector.broadcast %cst_74 : f32 to vector<256x128xf32>
    %117 = arith.addf %115, %116 : vector<256x128xf32>
    %118 = arith.mulf %117, %104 : vector<256x128xf32>
    %cst_75 = arith.constant 0.000000e+00 : f32
    %119 = vector.broadcast %cst_75 : f32 to vector<256x128xf32>
    %120 = arith.subf %119, %95 : vector<256x128xf32>
    %121 = arith.mulf %120, %95 : vector<256x128xf32>
    %122 = math.exp %121 : vector<256x128xf32>
    %123 = arith.mulf %118, %122 : vector<256x128xf32>
    %cst_76 = arith.constant 1.000000e+00 : f32
    %124 = vector.broadcast %cst_76 : f32 to vector<256x128xf32>
    %125 = arith.subf %124, %123 : vector<256x128xf32>
    %126 = arith.mulf %94, %125 : vector<256x128xf32>
    %cst_77 = arith.constant 1.000000e+00 : f32
    %127 = vector.broadcast %cst_77 : f32 to vector<256x128xf32>
    %128 = arith.addf %127, %126 : vector<256x128xf32>
    %129 = arith.mulf %87, %128 : vector<256x128xf32>
    %c0_78 = arith.constant 0 : index
    %c0_79 = arith.constant 0 : index
    %c0_80 = arith.constant 0 : index
    %130 = vector.load %arg5[%c0_78, %c0_79, %c0_80] : memref<1x256x128xf32, #tpu.memory_space<vmem>>, vector<1x256x128xf32>
    %131 = vector.shape_cast %130 : vector<1x256x128xf32> to vector<256x128xf32>
    %132 = vector.shape_cast %129 : vector<256x128xf32> to vector<1x256x128xf32>
    tpu.vector_store %arg5[%c0_78, %c0_79, %c0_80], %132 {strides = array<i32>} : memref<1x256x128xf32, #tpu.memory_space<vmem>>, vector<1x256x128xf32>,
    return
  }
  func.func @transform_0(%arg0: i32, %arg1: i32) -> (i32, i32, i32, i32) {
    %c0_i32 = arith.constant 0 : i32
    %c0_i32_0 = arith.constant 0 : i32
    %c0_i32_1 = arith.constant 0 : i32
    %c0_i32_2 = arith.constant 0 : i32
    return %arg0, %c0_i32, %c0_i32_0, %c0_i32_1 : i32, i32, i32, i32
  }
  func.func @transform_1(%arg0: i32, %arg1: i32) -> (i32, i32, i32) {
    %c0_i32 = arith.constant 0 : i32
    %c0_i32_0 = arith.constant 0 : i32
    %c0_i32_1 = arith.constant 0 : i32
    %c0_i32_2 = arith.constant 0 : i32
    return %c0_i32, %c0_i32_0, %c0_i32_1 : i32, i32, i32
  }
  func.func @transform_2(%arg0: i32, %arg1: i32) -> (i32, i32) {
    %c0_i32 = arith.constant 0 : i32
    %c0_i32_0 = arith.constant 0 : i32
    %c0_i32_1 = arith.constant 0 : i32
    return %c0_i32, %c0_i32_0 : i32, i32
  }
  func.func @transform_3(%arg0: i32, %arg1: i32) -> (i32, i32, i32) {
    %c0_i32 = arith.constant 0 : i32
    %c0_i32_0 = arith.constant 0 : i32
    return %arg0, %arg1, %c0_i32 : i32, i32, i32
  }
}

</mosaic_0001>

<bundles_post_ra>
// kernel: conv_bn_act.1
= control target key start
LH: loop header
LB: loop body
LE: loop exit
PB: predicated region body
PF: predicated region fallthrough
CT: control target
= control target key end

     0   :  { %8 = vsyncpa [#allocation3], 0  ;;  %s8600_s0 = inlined_call_operand.vmem [shape: f32[2,18,18,4], index: 0, kind: input, shape index: {}]   ;;  %s8601_s1 = inlined_call_operand.vmem [shape: f32[9,4,128], index: 1, kind: input, shape index: {}]   ;;  %s8602_s2 = inlined_call_operand.vmem [shape: f32[1,128], index: 2, kind: input, shape index: {}]   ;;  %s8603_s3 = inlined_call_operand.hbm [shape: f32[2,256,128], index: 3, kind: output, shape index: {}]  }
   0x1   :  { %10 = vsyncpa [#allocation3 + $0x1], 0  ;;  %s6288_s12 = smov 0   ;;  %s6290_s13 = smov 0  }
   0x2   :  { %s6292_s14 = smov 0   ;;  %s6294_s15 = smov 0  }
   0x3   :  { %s6296_s16 = smov 0   ;;  %s6298_s17 = smov 0  }
   0x4 LB: > { %s4738_s18 = sadd.s32 4294967295, %s6262_s17   ;;  %s4739_s19 = sadd.s32 4294967294, %s6262_s17   ;;  %s6262_s17 = sphi %s6298_s17, %s16_s17   ;;  %s6258_s16 = sphi %s6296_s16, %s8784_s16   ;;  %s6254_s15 = sphi %s6294_s15, %s8783_s15   ;;  %s6250_s14 = sphi %s6292_s14, %s8782_s14   ;;  %s6246_s13 = sphi %s6290_s13, %s8781_s13   ;;  %s6242_s12 = sphi %s6288_s12, %s8780_s12  }
   0x5   : > { %s28_s20 = sadd.s32 1, %s6258_s16  ;;  %s105_s21 = sadd.s32 1, %s6250_s14 }
   0x6   : > { %p30_p0 = scmp.ge.s32.totalorder %s28_s20, 2  ;;  %p115_p1 = scmp.ne.s32.totalorder %s6250_s14, %s6246_s13 }
   0x7   : > { %p116_p2 = scmp.eq.s32.totalorder %s4738_s18, 1  ;;  %p121_p3 = scmp.ne.s32.totalorder %s6246_s13, %s6242_s12 }
   0x8   : > { %s8786_s20 = smov (%p30_p0, %s28_s20), 0  ;;  %p122_p5 = scmp.eq.s32.totalorder %s4739_s19, 1 }
   0x9   : > { %p6328_p4 = por %p116_p2, %p115_p1  ;;  %s100_s23 = ssub.s32 %s6258_s16, %s8786_s20 }
   0xa   : > { %p4742_p6 = scmp.ge.s32.totalorder %s6262_s17, 1  ;;  %p103_p7 = scmp.eq.s32.totalorder %s100_s23, 0 }
   0xb   : > { %p6335_p8 = por %p122_p5, %p121_p3  ;;  %p154_p9 = scmp.lt.s32.totalorder %s6262_s17, 3 }
   0xc   : > { %s6341_s25 = scalar_select %p103_p7, %s6250_s14, %s105_s21  }
   0xd   : > { %p155_p10 = pnand %p4742_p6, %p154_p9 }
   0xf   : > { %158 = sbr.rel (%p155_p10) target bundleno = 744 (0x2e8), region = 32 }
  0x14   : > { %v4745_v0 = vld [vmem:[%s8601_s1 + $0x4] sm:$0xf]  ;;  %vm351_vm0 = vcmask 1043456   ;;  %p178_p11 = scmp.lt.s32.totalorder %s6254_s15, 1  ;;  %v219_v1 = vld [vmem:[%s8601_s1] sm:$0xf] }
  0x15   : > { %5996 = vmatprep.subr.msk.mxu1 %vm351_vm0, %v4745_v0  ;;  %5546 = vmatprep.subr.msk.mxu0 %vm351_vm0, %v4745_v0  ;;  %v4812_v2 = vld [vmem:[%s8601_s1 + $0x8] sm:$0xf]  ;;  %vm254_vm1 = vcmask 31744   ;;  %v6388_v9 = vld [vmem:[%s8601_s1 + $0xc] sm:$0xf]  ;;  %s175_s7 = sand.u32 1, %s6246_s13  }
  0x16   : > { %5997 = vmatpush3.msk.msra.mxu1 %vm351_vm0, %v4745_v0  ;;  %5547 = vmatpush3.msk.msra.mxu0 %vm351_vm0, %v4745_v0  ;;  %s179_s5 = scalar_select %p178_p11, %s6254_s15, 1  ;;  %v6393_v10 = vld [vmem:[%s8601_s1 + $0x10] sm:$0xf]  ;;  %v6552_v43 = vld [vmem:[%s8601_s1 + $0x14] sm:$0xf] }
  0x17   : > { %5596 = vmatprep.subr.msk.mxu1 %vm351_vm0, %v219_v1  ;;  %5646 = vmatprep.subr.msk.mxu0 %vm351_vm0, %v4812_v2  ;;  %v6557_v44 = vld [vmem:[%s8601_s1 + $0x18] sm:$0xf]  ;;  %s4743_s8 = sshll.u32 %s175_s7, 8  ;;  %s5248_s18 = sshll.u32 %s6254_s15, 12 }
  0x18   : > { %s5998_s6 = smul.u32 432, %s179_s5  ;;  %s8548_s26 = scalar_lea.hbm %s8603_s3, %s5248_s18 }
  0x19   : > { %s8555_s27 = scalar_lea.sflag [#allocation3], %s175_s7  ;;  %s6265_s28 = smov [#allocation2]  }
  0x1a   : > { %s6363_s9 = scalar_lea.vmem %s8600_s0, %s5998_s6  ;;  %s6190_s29 = sshll.u32 %s6265_s28, 4  ;;  %s6191_s29 = int_to_ptr.vmem [resolvable:$false] %s6190_s29 }
  0x1b   : > { %v220_v3 = vld [vmem:[%s6363_s9 + $0x1] sm:$0xff]  ;;  %v221_v5 = vld [vmem:[%s6363_s9 + $0x9] sm:$0xff]  ;;  %v6377_v7 = vld [vmem:[%s6363_s9 + $0x19] sm:$0xff]  ;;  %s6192_s30 = scalar_lea.vmem %s6191_s29, 8192 }
  0x1c   : > { %v6367_v4 = vld [vmem:[%s6363_s9 + $0xc1] sm:$0xff]  ;;  %5548 = vmatprep.mubr.msk.f32.mxu0 %vm254_vm1, %v220_v3  ;;  %v6374_v6 = vld [vmem:[%s6363_s9 + $0xc9] sm:$0xff]  ;;  %v6380_v8 = vld [vmem:[%s6363_s9 + $0xd9] sm:$0xff] }
  0x1d   : > { %5572 = vmatprep.mubr.msk.f32.mxu1 %vm254_vm1, %v6367_v4  ;;  %5549 = vmatmul.mubr.msk.f32.vlgmr.msra.gmra.mxu0 %vm254_vm1, %v221_v5  ;;  %v6398_v11 = vld [vmem:[%s6363_s9 + $0x21] sm:$0xff]  ;;  %v6408_v13 = vld [vmem:[%s6363_s9 + $0x31] sm:$0xff]  ;;  %v6426_v15 = vld [vmem:[%s6363_s9 + $0x39] sm:$0xff] }
  0x1e   : > { %5573 = vmatmul.mubr.msk.f32.vlgmr.msra.gmra.mxu1 %vm254_vm1, %v6374_v6  ;;  %5647 = vmatpush3.msk.msra.mxu0 %vm351_vm0, %v4812_v2  ;;  %v6401_v12 = vld [vmem:[%s6363_s9 + $0xe1] sm:$0xff]  ;;  %v6411_v14 = vld [vmem:[%s6363_s9 + $0xf1] sm:$0xff]  ;;  %v6429_v16 = vld [vmem:[%s6363_s9 + $0xf9] sm:$0xff] }
  0x1f   : > { %5597 = vmatpush3.msk.msra.mxu1 %vm351_vm0, %v219_v1  ;;  %5551 = vmatprep.mubr.msk.f32.mxu0 %vm254_vm1, %v6377_v7  ;;  %v6432_v17 = vld [vmem:[%s6363_s9 + $0x49] sm:$0xff]  ;;  %v6446_v19 = vld [vmem:[%s6363_s9 + $0x51] sm:$0xff]  ;;  %v6452_v21 = vld [vmem:[%s6363_s9 + $0x61] sm:$0xff] }
  0x20   : > { %5575 = vmatprep.mubr.msk.f32.mxu1 %vm254_vm1, %v6380_v8  ;;  %5696 = vmatprep.subr.msk.mxu1 %vm351_vm0, %v6388_v9  ;;  %v6435_v18 = vld [vmem:[%s6363_s9 + $0x109] sm:$0xff]  ;;  %v6449_v20 = vld [vmem:[%s6363_s9 + $0x111] sm:$0xff]  ;;  %v6455_v22 = vld [vmem:[%s6363_s9 + $0x121] sm:$0xff] }
  0x21   : > { %5746 = vmatprep.subr.msk.mxu0 %vm351_vm0, %v6393_v10  ;;  %5552 = vmatmul.mubr.msk.f32.gmra.mxu0 %vm254_vm1, %v6398_v11  ;;  %v6466_v23 = vld [vmem:[%s6363_s9 + $0x69] sm:$0xff]  ;;  %v6472_v25 = vld [vmem:[%s6363_s9 + $0x79] sm:$0xff]  ;;  %v6486_v27 = vld [vmem:[%s6363_s9 + $0x81] sm:$0xff] }
  0x22   : > { %5576 = vmatmul.mubr.msk.f32.gmra.mxu1 %vm254_vm1, %v6401_v12  ;;  %5554 = vmatprep.mubr.msk.f32.mxu0 %vm254_vm1, %v6408_v13  ;;  %v6469_v24 = vld [vmem:[%s6363_s9 + $0x129] sm:$0xff]  ;;  %v6475_v26 = vld [vmem:[%s6363_s9 + $0x139] sm:$0xff]  ;;  %v6489_v28 = vld [vmem:[%s6363_s9 + $0x141] sm:$0xff] }
  0x23   : > { %5578 = vmatprep.mubr.msk.f32.mxu1 %vm254_vm1, %v6411_v14  ;;  %v6492_v29 = vld [vmem:[%s6363_s9 + $0x91] sm:$0xff]  ;;  %v6506_v31 = vld [vmem:[%s6363_s9 + $0x99] sm:$0xff]  ;;  %v6512_v33 = vld [vmem:[%s6363_s9 + $0xa9] sm:$0xff] }
  0x24   : > { %v6495_v30 = vld [vmem:[%s6363_s9 + $0x151] sm:$0xff]  ;;  %v6509_v32 = vld [vmem:[%s6363_s9 + $0x159] sm:$0xff]  ;;  %v6515_v34 = vld [vmem:[%s6363_s9 + $0x169] sm:$0xff] }
  0x25   : > { %5555 = vmatmul.mubr.msk.f32.gmra.mxu0 %vm254_vm1, %v6426_v15  ;;  %v6526_v35 = vld [vmem:[%s6363_s9 + $0xb1] sm:$0xff]  ;;  %v187_v37 = vld [vmem:[%s6363_s9] sm:$0xff]  ;;  %v188_v39 = vld [vmem:[%s6363_s9 + $0x8] sm:$0xff] }
  0x26   : > { %5579 = vmatmul.mubr.msk.f32.gmra.mxu1 %vm254_vm1, %v6429_v16  ;;  %5557 = vmatprep.mubr.msk.f32.mxu0 %vm254_vm1, %v6432_v17  ;;  %v6529_v36 = vld [vmem:[%s6363_s9 + $0x171] sm:$0xff]  ;;  %v904_v38 = vld [vmem:[%s6363_s9 + $0x2] sm:$0xff]  ;;  %v6545_v42 = vld [vmem:[%s6363_s9 + $0x1a] sm:$0xff] }
  0x27   : > { %5581 = vmatprep.mubr.msk.f32.mxu1 %vm254_vm1, %v6435_v18  ;;  %8668 = vst [vmem:[#allocation5_spill] sm:$0xff] %v6529_v36  ;;  %v905_v40 = vld [vmem:[%s6363_s9 + $0xa] sm:$0xff]  ;;  %v6542_v41 = vld [vmem:[%s6363_s9 + $0x18] sm:$0xff]  ;;  %8669 = vst [vmem:[#allocation6_spill] sm:$0xff] %v6545_v42 }
  0x28   : > { %v6564_v45 = vld [vmem:[%s6363_s9 + $0x20] sm:$0xff]  ;;  %v6574_v47 = vld [vmem:[%s6363_s9 + $0x30] sm:$0xff]  ;;  %v6592_v49 = vld [vmem:[%s6363_s9 + $0x38] sm:$0xff] }
  0x29   : > { %5558 = vmatmul.mubr.msk.f32.gmra.mxu0 %vm254_vm1, %v6446_v19  ;;  %v6567_v46 = vld [vmem:[%s6363_s9 + $0x22] sm:$0xff]  ;;  %v6577_v48 = vld [vmem:[%s6363_s9 + $0x32] sm:$0xff]  ;;  %v6595_v50 = vld [vmem:[%s6363_s9 + $0x3a] sm:$0xff] }
  0x2a   : > { %5582 = vmatmul.mubr.msk.f32.gmra.mxu1 %vm254_vm1, %v6449_v20  ;;  %5560 = vmatprep.mubr.msk.f32.mxu0 %vm254_vm1, %v6452_v21  ;;  %8670 = vst [vmem:[#allocation7_spill] sm:$0xff] %v6567_v46  ;;  %8671 = vst [vmem:[#allocation8_spill] sm:$0xff] %v6577_v48  ;;  %v6598_v51 = vld [vmem:[%s6363_s9 + $0x48] sm:$0xff]  ;;  %v6612_v53 = vld [vmem:[%s6363_s9 + $0x50] sm:$0xff] }
  0x2b   : > { %5584 = vmatprep.mubr.msk.f32.mxu1 %vm254_vm1, %v6455_v22  ;;  %8672 = vst [vmem:[#allocation9_spill] sm:$0xff] %v6595_v50  ;;  %v6601_v52 = vld [vmem:[%s6363_s9 + $0x4a] sm:$0xff]  ;;  %v6615_v54 = vld [vmem:[%s6363_s9 + $0x52] sm:$0xff]  ;;  %v6618_v55 = vld [vmem:[%s6363_s9 + $0x60] sm:$0xff] }
  0x2c   : > { %8673 = vst [vmem:[#allocation10_spill] sm:$0xff] %v6601_v52  ;;  %8674 = vst [vmem:[#allocation11_spill] sm:$0xff] %v6615_v54  ;;  %v6621_v56 = vld [vmem:[%s6363_s9 + $0x62] sm:$0xff]  ;;  %v6635_v58 = vld [vmem:[%s6363_s9 + $0x6a] sm:$0xff] }
  0x2d   : > { %5561 = vmatmul.mubr.msk.f32.gmra.mxu0 %vm254_vm1, %v6466_v23  ;;  %8675 = vst [vmem:[#allocation12_spill] sm:$0xff] %v6621_v56  ;;  %v6632_v57 = vld [vmem:[%s6363_s9 + $0x68] sm:$0xff]  ;;  %8676 = vst [vmem:[#allocation13_spill] sm:$0xff] %v6635_v58  ;;  %v6638_v59 = vld [vmem:[%s6363_s9 + $0x78] sm:$0xff] }
  0x2e   : > { %5585 = vmatmul.mubr.msk.f32.gmra.mxu1 %vm254_vm1, %v6469_v24  ;;  %5563 = vmatprep.mubr.msk.f32.mxu0 %vm254_vm1, %v6472_v25  ;;  %v6641_v60 = vld [vmem:[%s6363_s9 + $0x7a] sm:$0xff]  ;;  %v6655_v62 = vld [vmem:[%s6363_s9 + $0x82] sm:$0xff]  ;;  %v6658_v63 = vld [vmem:[%s6363_s9 + $0x90] sm:$0xff] }
  0x2f   : > { %5587 = vmatprep.mubr.msk.f32.mxu1 %vm254_vm1, %v6475_v26  ;;  %8677 = vst [vmem:[#allocation14_spill] sm:$0xff] %v6641_v60  ;;  %v6652_v61 = vld [vmem:[%s6363_s9 + $0x80] sm:$0xff]  ;;  %8678 = vst [vmem:[#allocation15_spill] sm:$0xff] %v6655_v62  ;;  %v6661_v0 = vld [vmem:[%s6363_s9 + $0x92] sm:$0xff] }
  0x30   : > { %8679 = vst [vmem:[#allocation16_spill] sm:$0xff] %v6661_v0  ;;  %v6672_v1 = vld [vmem:[%s6363_s9 + $0x98] sm:$0xff]  ;;  %v6678_v3 = vld [vmem:[%s6363_s9 + $0xa8] sm:$0xff] }
  0x31   : > { %5564 = vmatmul.mubr.msk.f32.gmra.mxu0 %vm254_vm1, %v6486_v27  ;;  %v6675_v2 = vld [vmem:[%s6363_s9 + $0x9a] sm:$0xff]  ;;  %v6681_v5 = vld [vmem:[%s6363_s9 + $0xaa] sm:$0xff] }
  0x32   : > { %5588 = vmatmul.mubr.msk.f32.gmra.mxu1 %vm254_vm1, %v6489_v28  ;;  %5566 = vmatprep.mubr.msk.f32.mxu0 %vm254_vm1, %v6492_v29  ;;  %8680 = vst [vmem:[#allocation17_spill] sm:$0xff] %v6675_v2  ;;  %8681 = vst [vmem:[#allocation18_spill] sm:$0xff] %v6681_v5 }
  0x33   : > { %5590 = vmatprep.mubr.msk.f32.mxu1 %vm254_vm1, %v6495_v30 }
  0x35   : > { %5567 = vmatmul.mubr.msk.f32.gmra.mxu0 %vm254_vm1, %v6506_v31 }
  0x36   : > { %5591 = vmatmul.mubr.msk.f32.gmra.mxu1 %vm254_vm1, %v6509_v32  ;;  %5569 = vmatprep.mubr.msk.f32.mxu0 %vm254_vm1, %v6512_v33 }
  0x37   : > { %5593 = vmatprep.mubr.msk.f32.mxu1 %vm254_vm1, %v6515_v34 }
  0x39   : > { %5570 = vmatmul.mubr.msk.f32.gmra.mxu0 %vm254_vm1, %v6526_v35 }
  0x3a   : > { %5594 = vmatmul.mubr.msk.f32.gmra.mxu1 %vm254_vm1, %v6529_v36  ;;  %5648 = vmatprep.mubr.msk.f32.mxu0 %vm254_vm1, %v904_v38  ;;  %v6701_v38 = vld [vmem:[%s6363_s9 + $0xc2] sm:$0xff]  ;;  %v6841_v36 = vld [vmem:[%s6363_s9 + $0x16a] sm:$0xff] }
  0x3b   : > { %5598 = vmatprep.mubr.msk.f32.mxu1 %vm254_vm1, %v187_v37  ;;  %v6698_v37 = vld [vmem:[%s6363_s9 + $0xc0] sm:$0xff]  ;;  %8683 = vst [vmem:[#allocation20_spill] sm:$0xff] %v6701_v38  ;;  %8697 = vst [vmem:[#allocation34_spill] sm:$0xff] %v6841_v36 }
  0x3d   : > { %5649 = vmatmul.mubr.msk.f32.vlgmr.msra.gmra.mxu0 %vm254_vm1, %v905_v40  ;;  %v6715_v40 = vld [vmem:[%s6363_s9 + $0xca] sm:$0xff] }
  0x3e   : > { %5599 = vmatmul.mubr.msk.f32.vlgmr.msra.gmra.mxu1 %vm254_vm1, %v188_v39  ;;  %5747 = vmatpush3.msk.msra.mxu0 %vm351_vm0, %v6393_v10  ;;  %v6695_v10 = vld [vmem:[%s6363_s9 + $0xb2] sm:$0xff]  ;;  %v6712_v39 = vld [vmem:[%s6363_s9 + $0xc8] sm:$0xff]  ;;  %8684 = vst [vmem:[#allocation21_spill] sm:$0xff] %v6715_v40 }
  0x3f   : > { %5697 = vmatpush3.msk.msra.mxu1 %vm351_vm0, %v6388_v9  ;;  %5601 = vmatprep.mubr.msk.f32.mxu1 %vm254_vm1, %v6542_v41  ;;  %v6692_v9 = vld [vmem:[%s6363_s9 + $0xb0] sm:$0xff]  ;;  %8682 = vst [vmem:[#allocation19_spill] sm:$0xff] %v6695_v10 }
  0x40   : > { %5651 = vmatprep.mubr.msk.f32.mxu0 %vm254_vm1, %v6545_v42  ;;  %5796 = vmatprep.subr.msk.mxu1 %vm351_vm0, %v6552_v43  ;;  %v6838_v42 = vld [vmem:[%s6363_s9 + $0x168] sm:$0xff] }
  0x41   : > { %5846 = vmatprep.subr.msk.mxu0 %vm351_vm0, %v6557_v44  ;;  %5652 = vmatmul.mubr.msk.f32.gmra.mxu0 %vm254_vm1, %v6567_v46  ;;  %v6821_v46 = vld [vmem:[%s6363_s9 + $0x152] sm:$0xff] }
  0x42   : > { %5602 = vmatmul.mubr.msk.f32.gmra.mxu1 %vm254_vm1, %v6564_v45  ;;  %5654 = vmatprep.mubr.msk.f32.mxu0 %vm254_vm1, %v6577_v48  ;;  %v6818_v48 = vld [vmem:[%s6363_s9 + $0x150] sm:$0xff]  ;;  %8695 = vst [vmem:[#allocation32_spill] sm:$0xff] %v6821_v46 }
  0x43   : > { %5604 = vmatprep.mubr.msk.f32.mxu1 %vm254_vm1, %v6574_v47 }
  0x45   : > { %5655 = vmatmul.mubr.msk.f32.gmra.mxu0 %vm254_vm1, %v6595_v50  ;;  %v6801_v50 = vld [vmem:[%s6363_s9 + $0x13a] sm:$0xff] }
  0x46   : > { %5605 = vmatmul.mubr.msk.f32.gmra.mxu1 %vm254_vm1, %v6592_v49  ;;  %5657 = vmatprep.mubr.msk.f32.mxu0 %vm254_vm1, %v6601_v52  ;;  %v6798_v52 = vld [vmem:[%s6363_s9 + $0x138] sm:$0xff]  ;;  %8693 = vst [vmem:[#allocation30_spill] sm:$0xff] %v6801_v50 }
  0x47   : > { %5607 = vmatprep.mubr.msk.f32.mxu1 %vm254_vm1, %v6598_v51 }
  0x49   : > { %5658 = vmatmul.mubr.msk.f32.gmra.mxu0 %vm254_vm1, %v6615_v54  ;;  %v6781_v54 = vld [vmem:[%s6363_s9 + $0x122] sm:$0xff] }
  0x4a   : > { %5608 = vmatmul.mubr.msk.f32.gmra.mxu1 %vm254_vm1, %v6612_v53  ;;  %5660 = vmatprep.mubr.msk.f32.mxu0 %vm254_vm1, %v6621_v56  ;;  %v6778_v56 = vld [vmem:[%s6363_s9 + $0x120] sm:$0xff]  ;;  %8691 = vst [vmem:[#allocation28_spill] sm:$0xff] %v6781_v54 }
  0x4b   : > { %5610 = vmatprep.mubr.msk.f32.mxu1 %vm254_vm1, %v6618_v55 }
  0x4d   : > { %5661 = vmatmul.mubr.msk.f32.gmra.mxu0 %vm254_vm1, %v6635_v58  ;;  %v6761_v58 = vld [vmem:[%s6363_s9 + $0x10a] sm:$0xff] }
  0x4e   : > { %5611 = vmatmul.mubr.msk.f32.gmra.mxu1 %vm254_vm1, %v6632_v57  ;;  %5663 = vmatprep.mubr.msk.f32.mxu0 %vm254_vm1, %v6641_v60  ;;  %v6758_v60 = vld [vmem:[%s6363_s9 + $0x108] sm:$0xff]  ;;  %8689 = vst [vmem:[#allocation26_spill] sm:$0xff] %v6761_v58 }
  0x4f   : > { %5613 = vmatprep.mubr.msk.f32.mxu1 %vm254_vm1, %v6638_v59 }
  0x51   : > { %5664 = vmatmul.mubr.msk.f32.gmra.mxu0 %vm254_vm1, %v6655_v62  ;;  %v6741_v62 = vld [vmem:[%s6363_s9 + $0xf2] sm:$0xff] }
  0x52   : > { %5614 = vmatmul.mubr.msk.f32.gmra.mxu1 %vm254_vm1, %v6652_v61  ;;  %5666 = vmatprep.mubr.msk.f32.mxu0 %vm254_vm1, %v6661_v0  ;;  %v6738_v0 = vld [vmem:[%s6363_s9 + $0xf0] sm:$0xff]  ;;  %8687 = vst [vmem:[#allocation24_spill] sm:$0xff] %v6741_v62 }
  0x53   : > { %5616 = vmatprep.mubr.msk.f32.mxu1 %vm254_vm1, %v6658_v63 }
  0x55   : > { %5667 = vmatmul.mubr.msk.f32.gmra.mxu0 %vm254_vm1, %v6675_v2  ;;  %v6721_v2 = vld [vmem:[%s6363_s9 + $0xda] sm:$0xff] }
  0x56   : > { %5617 = vmatmul.mubr.msk.f32.gmra.mxu1 %vm254_vm1, %v6672_v1  ;;  %5669 = vmatprep.mubr.msk.f32.mxu0 %vm254_vm1, %v6681_v5  ;;  %v6718_v5 = vld [vmem:[%s6363_s9 + $0xd8] sm:$0xff]  ;;  %8685 = vst [vmem:[#allocation22_spill] sm:$0xff] %v6721_v2 }
  0x57   : > { %5619 = vmatprep.mubr.msk.f32.mxu1 %vm254_vm1, %v6678_v3 }
  0x59   : > { %5670 = vmatmul.mubr.msk.f32.gmra.mxu0 %vm254_vm1, %v6695_v10  ;;  %v6735_v10 = vld [vmem:[%s6363_s9 + $0xe2] sm:$0xff] }
  0x5a   : > { %5620 = vmatmul.mubr.msk.f32.gmra.mxu1 %vm254_vm1, %v6692_v9  ;;  %5672 = vmatprep.mubr.msk.f32.mxu0 %vm254_vm1, %v6701_v38  ;;  %v6732_v38 = vld [vmem:[%s6363_s9 + $0xe0] sm:$0xff]  ;;  %8686 = vst [vmem:[#allocation23_spill] sm:$0xff] %v6735_v10 }
  0x5b   : > { %5622 = vmatprep.mubr.msk.f32.mxu1 %vm254_vm1, %v6698_v37 }
  0x5d   : > { %5673 = vmatmul.mubr.msk.f32.gmra.mxu0 %vm254_vm1, %v6715_v40  ;;  %v6755_v40 = vld [vmem:[%s6363_s9 + $0xfa] sm:$0xff] }
  0x5e   : > { %5623 = vmatmul.mubr.msk.f32.gmra.mxu1 %vm254_vm1, %v6712_v39  ;;  %5675 = vmatprep.mubr.msk.f32.mxu0 %vm254_vm1, %v6721_v2  ;;  %v6752_v2 = vld [vmem:[%s6363_s9 + $0xf8] sm:$0xff]  ;;  %8688 = vst [vmem:[#allocation25_spill] sm:$0xff] %v6755_v40 }
  0x5f   : > { %5625 = vmatprep.mubr.msk.f32.mxu1 %vm254_vm1, %v6718_v5 }
  0x61   : > { %5676 = vmatmul.mubr.msk.f32.gmra.mxu0 %vm254_vm1, %v6735_v10  ;;  %v6775_v10 = vld [vmem:[%s6363_s9 + $0x112] sm:$0xff] }
  0x62   : > { %5626 = vmatmul.mubr.msk.f32.gmra.mxu1 %vm254_vm1, %v6732_v38  ;;  %5678 = vmatprep.mubr.msk.f32.mxu0 %vm254_vm1, %v6741_v62  ;;  %v6772_v62 = vld [vmem:[%s6363_s9 + $0x110] sm:$0xff]  ;;  %8690 = vst [vmem:[#allocation27_spill] sm:$0xff] %v6775_v10 }
  0x63   : > { %5628 = vmatprep.mubr.msk.f32.mxu1 %vm254_vm1, %v6738_v0 }
  0x65   : > { %5679 = vmatmul.mubr.msk.f32.gmra.mxu0 %vm254_vm1, %v6755_v40  ;;  %v6795_v40 = vld [vmem:[%s6363_s9 + $0x12a] sm:$0xff] }
  0x66   : > { %5629 = vmatmul.mubr.msk.f32.gmra.mxu1 %vm254_vm1, %v6752_v2  ;;  %5681 = vmatprep.mubr.msk.f32.mxu0 %vm254_vm1, %v6761_v58  ;;  %v6792_v58 = vld [vmem:[%s6363_s9 + $0x128] sm:$0xff]  ;;  %8692 = vst [vmem:[#allocation29_spill] sm:$0xff] %v6795_v40 }
  0x67   : > { %5631 = vmatprep.mubr.msk.f32.mxu1 %vm254_vm1, %v6758_v60 }
  0x69   : > { %5682 = vmatmul.mubr.msk.f32.gmra.mxu0 %vm254_vm1, %v6775_v10  ;;  %v6815_v10 = vld [vmem:[%s6363_s9 + $0x142] sm:$0xff] }
  0x6a   : > { %5632 = vmatmul.mubr.msk.f32.gmra.mxu1 %vm254_vm1, %v6772_v62  ;;  %5684 = vmatprep.mubr.msk.f32.mxu0 %vm254_vm1, %v6781_v54  ;;  %v6812_v54 = vld [vmem:[%s6363_s9 + $0x140] sm:$0xff]  ;;  %8694 = vst [vmem:[#allocation31_spill] sm:$0xff] %v6815_v10 }
  0x6b   : > { %5634 = vmatprep.mubr.msk.f32.mxu1 %vm254_vm1, %v6778_v56 }
  0x6d   : > { %5685 = vmatmul.mubr.msk.f32.gmra.mxu0 %vm254_vm1, %v6795_v40  ;;  %v6835_v40 = vld [vmem:[%s6363_s9 + $0x15a] sm:$0xff] }
  0x6e   : > { %5635 = vmatmul.mubr.msk.f32.gmra.mxu1 %vm254_vm1, %v6792_v58  ;;  %5687 = vmatprep.mubr.msk.f32.mxu0 %vm254_vm1, %v6801_v50  ;;  %v6832_v50 = vld [vmem:[%s6363_s9 + $0x158] sm:$0xff]  ;;  %8696 = vst [vmem:[#allocation33_spill] sm:$0xff] %v6835_v40 }
  0x6f   : > { %5637 = vmatprep.mubr.msk.f32.mxu1 %vm254_vm1, %v6798_v52 }
  0x71   : > { %5688 = vmatmul.mubr.msk.f32.gmra.mxu0 %vm254_vm1, %v6815_v10  ;;  %v6855_v10 = vld [vmem:[%s6363_s9 + $0x172] sm:$0xff] }
  0x72   : > { %5638 = vmatmul.mubr.msk.f32.gmra.mxu1 %vm254_vm1, %v6812_v54  ;;  %5690 = vmatprep.mubr.msk.f32.mxu0 %vm254_vm1, %v6821_v46  ;;  %v6852_v46 = vld [vmem:[%s6363_s9 + $0x170] sm:$0xff]  ;;  %8698 = vst [vmem:[#allocation35_spill] sm:$0xff] %v6855_v10 }
  0x73   : > { %5640 = vmatprep.mubr.msk.f32.mxu1 %vm254_vm1, %v6818_v48 }
  0x75   : > { %5691 = vmatmul.mubr.msk.f32.gmra.mxu0 %vm254_vm1, %v6835_v40 }
  0x76   : > { %5641 = vmatmul.mubr.msk.f32.gmra.mxu1 %vm254_vm1, %v6832_v50  ;;  %5693 = vmatprep.mubr.msk.f32.mxu0 %vm254_vm1, %v6841_v36  ;;  %v6872_v36 = vld [vmem:[%s8601_s1 + $0x1c] sm:$0xf] }
  0x77   : > { %5643 = vmatprep.mubr.msk.f32.mxu1 %vm254_vm1, %v6838_v42 }
  0x79   : > { %5694 = vmatmul.mubr.msk.f32.gmra.mxu0 %vm254_vm1, %v6855_v10  ;;  %v6877_v10 = vld [vmem:[%s8601_s1 + $0x20] sm:$0xf] }
  0x7a   : > { %5644 = vmatmul.mubr.msk.f32.gmra.mxu1 %vm254_vm1, %v6852_v46  ;;  %5748 = vmatprep.mubr.msk.f32.mxu0 %vm254_vm1, %v6377_v7  ;;  %v8700_v7 = vld [vmem:[#allocation5_spill] sm:$0xff] }
  0x7b   : > { %5698 = vmatprep.mubr.msk.f32.mxu1 %vm254_vm1, %v6542_v41 }
  0x7d   : > { %5749 = vmatmul.mubr.msk.f32.vlgmr.msra.gmra.mxu0 %vm254_vm1, %v6398_v11  ;;  %v7013_v11 = vld [vmem:[%s6363_s9 + $0x189] sm:$0xff] }
  0x7e   : > { %5699 = vmatmul.mubr.msk.f32.vlgmr.msra.gmra.mxu1 %vm254_vm1, %v6564_v45  ;;  %5847 = vmatpush3.msk.msra.mxu0 %vm351_vm0, %v6557_v44  ;;  %8701 = vst [vmem:[#allocation5_spill] sm:$0xff] %v7013_v11  ;;  %v8719_v44 = vld [vmem:[#allocation23_spill] sm:$0xff]  ;;  %v8720_v45 = vld [vmem:[#allocation24_spill] sm:$0xff] }
  0x7f   : > { %5797 = vmatpush3.msk.msra.mxu1 %vm351_vm0, %v6552_v43  ;;  %5701 = vmatprep.mubr.msk.f32.mxu1 %vm254_vm1, %v6574_v47 }
  0x80   : > { %5751 = vmatprep.mubr.msk.f32.mxu0 %vm254_vm1, %v6408_v13  ;;  %5896 = vmatprep.subr.msk.mxu1 %vm351_vm0, %v6872_v36 }
  0x81   : > { %5946 = vmatprep.subr.msk.mxu0 %vm351_vm0, %v6877_v10  ;;  %5752 = vmatmul.mubr.msk.f32.gmra.mxu0 %vm254_vm1, %v6426_v15 }
  0x82   : > { %5702 = vmatmul.mubr.msk.f32.gmra.mxu1 %vm254_vm1, %v6592_v49  ;;  %5754 = vmatprep.mubr.msk.f32.mxu0 %vm254_vm1, %v6432_v17 }
  0x83   : > { %5704 = vmatprep.mubr.msk.f32.mxu1 %vm254_vm1, %v6598_v51 }
  0x85   : > { %5755 = vmatmul.mubr.msk.f32.gmra.mxu0 %vm254_vm1, %v6446_v19 }
  0x86   : > { %5705 = vmatmul.mubr.msk.f32.gmra.mxu1 %vm254_vm1, %v6612_v53  ;;  %5757 = vmatprep.mubr.msk.f32.mxu0 %vm254_vm1, %v6452_v21 }
  0x87   : > { %5707 = vmatprep.mubr.msk.f32.mxu1 %vm254_vm1, %v6618_v55 }
  0x89   : > { %5758 = vmatmul.mubr.msk.f32.gmra.mxu0 %vm254_vm1, %v6466_v23 }
  0x8a   : > { %5708 = vmatmul.mubr.msk.f32.gmra.mxu1 %vm254_vm1, %v6632_v57  ;;  %5760 = vmatprep.mubr.msk.f32.mxu0 %vm254_vm1, %v6472_v25 }
  0x8b   : > { %5710 = vmatprep.mubr.msk.f32.mxu1 %vm254_vm1, %v6638_v59 }
  0x8d   : > { %5761 = vmatmul.mubr.msk.f32.gmra.mxu0 %vm254_vm1, %v6486_v27 }
  0x8e   : > { %5711 = vmatmul.mubr.msk.f32.gmra.mxu1 %vm254_vm1, %v6652_v61  ;;  %5763 = vmatprep.mubr.msk.f32.mxu0 %vm254_vm1, %v6492_v29  ;;  %v8711_v29 = vld [vmem:[#allocation15_spill] sm:$0xff] }
  0x8f   : > { %5713 = vmatprep.mubr.msk.f32.mxu1 %vm254_vm1, %v6658_v63 }
  0x91   : > { %5764 = vmatmul.mubr.msk.f32.gmra.mxu0 %vm254_vm1, %v6506_v31  ;;  %v8713_v31 = vld [vmem:[#allocation17_spill] sm:$0xff] }
  0x92   : > { %5714 = vmatmul.mubr.msk.f32.gmra.mxu1 %vm254_vm1, %v6672_v1  ;;  %5766 = vmatprep.mubr.msk.f32.mxu0 %vm254_vm1, %v6512_v33  ;;  %v8715_v33 = vld [vmem:[#allocation19_spill] sm:$0xff] }
  0x93   : > { %5716 = vmatprep.mubr.msk.f32.mxu1 %vm254_vm1, %v6678_v3 }
  0x95   : > { %5767 = vmatmul.mubr.msk.f32.gmra.mxu0 %vm254_vm1, %v6526_v35  ;;  %v8717_v35 = vld [vmem:[#allocation21_spill] sm:$0xff] }
  0x96   : > { %5717 = vmatmul.mubr.msk.f32.gmra.mxu1 %vm254_vm1, %v6692_v9  ;;  %5769 = vmatprep.mubr.msk.f32.mxu0 %vm254_vm1, %v6367_v4  ;;  %v6996_v4 = vld [vmem:[%s6363_s9 + $0x180] sm:$0xff] }
  0x97   : > { %5719 = vmatprep.mubr.msk.f32.mxu1 %vm254_vm1, %v6698_v37 }
  0x99   : > { %5770 = vmatmul.mubr.msk.f32.gmra.mxu0 %vm254_vm1, %v6374_v6  ;;  %v6999_v6 = vld [vmem:[%s6363_s9 + $0x181] sm:$0xff] }
  0x9a   : > { %5720 = vmatmul.mubr.msk.f32.gmra.mxu1 %vm254_vm1, %v6712_v39  ;;  %5772 = vmatprep.mubr.msk.f32.mxu0 %vm254_vm1, %v6380_v8  ;;  %8699 = vst [vmem:[#allocation36_spill] sm:$0xff] %v6999_v6  ;;  %v7010_v8 = vld [vmem:[%s6363_s9 + $0x188] sm:$0xff] }
  0x9b   : > { %5722 = vmatprep.mubr.msk.f32.mxu1 %vm254_vm1, %v6718_v5 }
  0x9d   : > { %5773 = vmatmul.mubr.msk.f32.gmra.mxu0 %vm254_vm1, %v6401_v12  ;;  %v8702_v12 = vld [vmem:[#allocation6_spill] sm:$0xff] }
  0x9e   : > { %5723 = vmatmul.mubr.msk.f32.gmra.mxu1 %vm254_vm1, %v6732_v38  ;;  %5775 = vmatprep.mubr.msk.f32.mxu0 %vm254_vm1, %v6411_v14  ;;  %v8703_v14 = vld [vmem:[#allocation7_spill] sm:$0xff] }
  0x9f   : > { %5725 = vmatprep.mubr.msk.f32.mxu1 %vm254_vm1, %v6738_v0 }
  0xa1   : > { %5776 = vmatmul.mubr.msk.f32.gmra.mxu0 %vm254_vm1, %v6429_v16  ;;  %v8704_v16 = vld [vmem:[#allocation8_spill] sm:$0xff] }
  0xa2   : > { %5726 = vmatmul.mubr.msk.f32.gmra.mxu1 %vm254_vm1, %v6752_v2  ;;  %5778 = vmatprep.mubr.msk.f32.mxu0 %vm254_vm1, %v6435_v18  ;;  %v8705_v18 = vld [vmem:[#allocation9_spill] sm:$0xff] }
  0xa3   : > { %5728 = vmatprep.mubr.msk.f32.mxu1 %vm254_vm1, %v6758_v60 }
  0xa5   : > { %5779 = vmatmul.mubr.msk.f32.gmra.mxu0 %vm254_vm1, %v6449_v20  ;;  %v8706_v20 = vld [vmem:[#allocation10_spill] sm:$0xff] }
  0xa6   : > { %5729 = vmatmul.mubr.msk.f32.gmra.mxu1 %vm254_vm1, %v6772_v62  ;;  %5781 = vmatprep.mubr.msk.f32.mxu0 %vm254_vm1, %v6455_v22  ;;  %v8707_v22 = vld [vmem:[#allocation11_spill] sm:$0xff] }
  0xa7   : > { %5731 = vmatprep.mubr.msk.f32.mxu1 %vm254_vm1, %v6778_v56 }
  0xa9   : > { %5782 = vmatmul.mubr.msk.f32.gmra.mxu0 %vm254_vm1, %v6469_v24  ;;  %v8708_v24 = vld [vmem:[#allocation12_spill] sm:$0xff] }
  0xaa   : > { %5732 = vmatmul.mubr.msk.f32.gmra.mxu1 %vm254_vm1, %v6792_v58  ;;  %5784 = vmatprep.mubr.msk.f32.mxu0 %vm254_vm1, %v6475_v26  ;;  %v8709_v26 = vld [vmem:[#allocation13_spill] sm:$0xff] }
  0xab   : > { %5734 = vmatprep.mubr.msk.f32.mxu1 %vm254_vm1, %v6798_v52 }
  0xad   : > { %5785 = vmatmul.mubr.msk.f32.gmra.mxu0 %vm254_vm1, %v6489_v28  ;;  %v8710_v28 = vld [vmem:[#allocation14_spill] sm:$0xff] }
  0xae   : > { %5735 = vmatmul.mubr.msk.f32.gmra.mxu1 %vm254_vm1, %v6812_v54  ;;  %5787 = vmatprep.mubr.msk.f32.mxu0 %vm254_vm1, %v6495_v30  ;;  %v8712_v30 = vld [vmem:[#allocation16_spill] sm:$0xff] }
  0xaf   : > { %5737 = vmatprep.mubr.msk.f32.mxu1 %vm254_vm1, %v6818_v48 }
  0xb1   : > { %5788 = vmatmul.mubr.msk.f32.gmra.mxu0 %vm254_vm1, %v6509_v32  ;;  %v8714_v32 = vld [vmem:[#allocation18_spill] sm:$0xff] }
  0xb2   : > { %5738 = vmatmul.mubr.msk.f32.gmra.mxu1 %vm254_vm1, %v6832_v50  ;;  %5790 = vmatprep.mubr.msk.f32.mxu0 %vm254_vm1, %v6515_v34  ;;  %v8716_v34 = vld [vmem:[#allocation20_spill] sm:$0xff] }
  0xb3   : > { %5740 = vmatprep.mubr.msk.f32.mxu1 %vm254_vm1, %v6838_v42 }
  0xb5   : > { %5791 = vmatmul.mubr.msk.f32.gmra.mxu0 %vm254_vm1, %v8700_v7 }
  0xb6   : > { %5741 = vmatmul.mubr.msk.f32.gmra.mxu1 %vm254_vm1, %v6852_v46  ;;  %5793 = vmatprep.mubr.msk.f32.mxu0 %vm254_vm1, %v6999_v6  ;;  %v5074_v6 = vld [vmem:[%s6363_s9 + $0x198] sm:$0xff] }
  0xb7   : > { %5743 = vmatprep.mubr.msk.f32.mxu1 %vm254_vm1, %v6996_v4 }
  0xb9   : > { %5794 = vmatmul.mubr.msk.f32.gmra.mxu0 %vm254_vm1, %v7013_v11  ;;  %v7188_v11 = vld [vmem:[%s6363_s9 + $0x182] sm:$0xff] }
  0xba   : > { %5744 = vmatmul.mubr.msk.f32.gmra.mxu1 %vm254_vm1, %v7010_v8  ;;  %5848 = vmatprep.mubr.msk.f32.mxu0 %vm254_vm1, %v6574_v47  ;;  %8734 = vst [vmem:[#allocation10_spill] sm:$0xff] %v7188_v11 }
  0xbb   : > { %5798 = vmatprep.mubr.msk.f32.mxu1 %vm254_vm1, %v8702_v12 }
  0xbd   : > { %5849 = vmatmul.mubr.msk.f32.vlgmr.msra.gmra.mxu0 %vm254_vm1, %v6592_v49 }
  0xbe   : > { %5799 = vmatmul.mubr.msk.f32.vlgmr.msra.gmra.mxu1 %vm254_vm1, %v8703_v14  ;;  %5947 = vmatpush3.msk.msra.mxu0 %vm351_vm0, %v6877_v10 }
  0xbf   : > { %5897 = vmatpush3.msk.msra.mxu1 %vm351_vm0, %v6872_v36  ;;  %5801 = vmatprep.mubr.msk.f32.mxu1 %vm254_vm1, %v8704_v16  ;;  %v8718_v36 = vld [vmem:[#allocation22_spill] sm:$0xff] }
  0xc0   : > { %5851 = vmatprep.mubr.msk.f32.mxu0 %vm254_vm1, %v6598_v51 }
  0xc1   : > { %5852 = vmatmul.mubr.msk.f32.gmra.mxu0 %vm254_vm1, %v6612_v53 }
  0xc2   : > { %5802 = vmatmul.mubr.msk.f32.gmra.mxu1 %vm254_vm1, %v8705_v18  ;;  %5854 = vmatprep.mubr.msk.f32.mxu0 %vm254_vm1, %v6618_v55  ;;  %v8721_v55 = vld [vmem:[#allocation25_spill] sm:$0xff] }
  0xc3   : > { %5804 = vmatprep.mubr.msk.f32.mxu1 %vm254_vm1, %v8706_v20 }
  0xc5   : > { %5855 = vmatmul.mubr.msk.f32.gmra.mxu0 %vm254_vm1, %v6632_v57  ;;  %v8722_v57 = vld [vmem:[#allocation26_spill] sm:$0xff] }
  0xc6   : > { %5805 = vmatmul.mubr.msk.f32.gmra.mxu1 %vm254_vm1, %v8707_v22  ;;  %5857 = vmatprep.mubr.msk.f32.mxu0 %vm254_vm1, %v6638_v59 }
  0xc7   : > { %5807 = vmatprep.mubr.msk.f32.mxu1 %vm254_vm1, %v8708_v24 }
  0xc9   : > { %5858 = vmatmul.mubr.msk.f32.gmra.mxu0 %vm254_vm1, %v6652_v61 }
  0xca   : > { %5808 = vmatmul.mubr.msk.f32.gmra.mxu1 %vm254_vm1, %v8709_v26  ;;  %5860 = vmatprep.mubr.msk.f32.mxu0 %vm254_vm1, %v6658_v63 }
  0xcb   : > { %5810 = vmatprep.mubr.msk.f32.mxu1 %vm254_vm1, %v8710_v28 }
  0xcd   : > { %5861 = vmatmul.mubr.msk.f32.gmra.mxu0 %vm254_vm1, %v6672_v1 }
  0xce   : > { %5811 = vmatmul.mubr.msk.f32.gmra.mxu1 %vm254_vm1, %v8711_v29  ;;  %5863 = vmatprep.mubr.msk.f32.mxu0 %vm254_vm1, %v6678_v3 }
  0xcf   : > { %5813 = vmatprep.mubr.msk.f32.mxu1 %vm254_vm1, %v8712_v30 }
  0xd1   : > { %5864 = vmatmul.mubr.msk.f32.gmra.mxu0 %vm254_vm1, %v6692_v9 }
  0xd2   : > { %5814 = vmatmul.mubr.msk.f32.gmra.mxu1 %vm254_vm1, %v8713_v31  ;;  %5866 = vmatprep.mubr.msk.f32.mxu0 %vm254_vm1, %v6698_v37 }
  0xd3   : > { %5816 = vmatprep.mubr.msk.f32.mxu1 %vm254_vm1, %v8714_v32 }
  0xd5   : > { %5867 = vmatmul.mubr.msk.f32.gmra.mxu0 %vm254_vm1, %v6712_v39 }
  0xd6   : > { %5817 = vmatmul.mubr.msk.f32.gmra.mxu1 %vm254_vm1, %v8715_v33  ;;  %5869 = vmatprep.mubr.msk.f32.mxu0 %vm254_vm1, %v6718_v5  ;;  %v8725_v5 = vld [vmem:[#allocation29_spill] sm:$0xff] }
  0xd7   : > { %5819 = vmatprep.mubr.msk.f32.mxu1 %vm254_vm1, %v8716_v34 }
  0xd9   : > { %5870 = vmatmul.mubr.msk.f32.gmra.mxu0 %vm254_vm1, %v6732_v38  ;;  %v8728_v38 = vld [vmem:[#allocation31_spill] sm:$0xff] }
  0xda   : > { %5820 = vmatmul.mubr.msk.f32.gmra.mxu1 %vm254_vm1, %v8717_v35  ;;  %5872 = vmatprep.mubr.msk.f32.mxu0 %vm254_vm1, %v6738_v0  ;;  %v8723_v0 = vld [vmem:[#allocation27_spill] sm:$0xff] }
  0xdb   : > { %5822 = vmatprep.mubr.msk.f32.mxu1 %vm254_vm1, %v8718_v36 }
  0xdd   : > { %v7091_v41 = vpop.f32.mrf.mxu0  ;;  %5873 = vmatmul.mubr.msk.f32.gmra.mxu0 %vm254_vm1, %v6752_v2 }
  0xde   : > { %v7093_v43 = vpop.f32.mrf.mxu1  ;;  %5823 = vmatmul.mubr.msk.f32.gmra.mxu1 %vm254_vm1, %v8719_v44  ;;  %5875 = vmatprep.mubr.msk.f32.mxu0 %vm254_vm1, %v6758_v60 }
  0xdf   : > { %5825 = vmatprep.mubr.msk.f32.mxu1 %vm254_vm1, %v8720_v45  ;;  %v7103_v47 = vpop.f32.mrf.mxu0 }
  0xe0   : > { %v7105_v49 = vpop.f32.mrf.mxu1 }
  0xe1   : > { %v7107_v51 = vpop.f32.mrf.mxu0  ;;  %5876 = vmatmul.mubr.msk.f32.gmra.mxu0 %vm254_vm1, %v6772_v62  ;;  %v8724_v62 = vld [vmem:[#allocation28_spill] sm:$0xff] }
  0xe2   : > { %v7109_v53 = vpop.f32.mrf.mxu1  ;;  %5826 = vmatmul.mubr.msk.f32.gmra.mxu1 %vm254_vm1, %v8721_v55  ;;  %5878 = vmatprep.mubr.msk.f32.mxu0 %vm254_vm1, %v6778_v56 }
  0xe3   : > { %5828 = vmatprep.mubr.msk.f32.mxu1 %vm254_vm1, %v8722_v57  ;;  %v7119_v59 = vpop.f32.mrf.mxu0 }
  0xe4   : > { %v7121_v60 = vpop.f32.mrf.mxu1 }
  0xe5   : > { %v7123_v61 = vpop.f32.mrf.mxu0  ;;  %5879 = vmatmul.mubr.msk.f32.gmra.mxu0 %vm254_vm1, %v6792_v58  ;;  %v8726_v58 = vld [vmem:[#allocation30_spill] sm:$0xff] }
  0xe6   : > { %v7125_v63 = vpop.f32.mrf.mxu1  ;;  %5829 = vmatmul.mubr.msk.f32.gmra.mxu1 %vm254_vm1, %v8723_v0  ;;  %5881 = vmatprep.mubr.msk.f32.mxu0 %vm254_vm1, %v6798_v52 }
  0xe7   : > { %5831 = vmatprep.mubr.msk.f32.mxu1 %vm254_vm1, %v8724_v62  ;;  %v7135_v56 = vpop.f32.mrf.mxu0 }
  0xe8   : > { %v7137_v1 = vpop.f32.mrf.mxu1 }
  0xe9   : > { %v7139_v2 = vpop.f32.mrf.mxu0  ;;  %5882 = vmatmul.mubr.msk.f32.gmra.mxu0 %vm254_vm1, %v6812_v54  ;;  %v8729_v54 = vld [vmem:[#allocation32_spill] sm:$0xff] }
  0xea   : > { %v7141_v3 = vpop.f32.mrf.mxu1  ;;  %5832 = vmatmul.mubr.msk.f32.gmra.mxu1 %vm254_vm1, %v8725_v5  ;;  %5884 = vmatprep.mubr.msk.f32.mxu0 %vm254_vm1, %v6818_v48 }
  0xeb   : > { %5834 = vmatprep.mubr.msk.f32.mxu1 %vm254_vm1, %v8726_v58  ;;  %v7151_v52 = vpop.f32.mrf.mxu0 }
  0xec   : > { %v7153_v9 = vpop.f32.mrf.mxu1 }
  0xed   : > { %v7155_v10 = vpop.f32.mrf.mxu0  ;;  %5885 = vmatmul.mubr.msk.f32.gmra.mxu0 %vm254_vm1, %v6832_v50  ;;  %v8732_v50 = vld [vmem:[#allocation34_spill] sm:$0xff] }
  0xee   : > { %v7157_v37 = vpop.f32.mrf.mxu1  ;;  %5835 = vmatmul.mubr.msk.f32.gmra.mxu1 %vm254_vm1, %v8728_v38  ;;  %5887 = vmatprep.mubr.msk.f32.mxu0 %vm254_vm1, %v6838_v42 }
  0xef   : > { %8727 = vst [vmem:[#allocation6_spill] sm:$0xff] %v7157_v37  ;;  %5837 = vmatprep.mubr.msk.f32.mxu1 %vm254_vm1, %v8729_v54  ;;  %v7167_v48 = vpop.f32.mrf.mxu0  ;;  %v8736_v37 = vld [vmem:[#allocation35_spill] sm:$0xff] }
  0xf0   : > { %v7169_v39 = vpop.f32.mrf.mxu1 }
  0xf1   : > { %8730 = vst [vmem:[#allocation7_spill] sm:$0xff] %v7169_v39  ;;  %v7171_v7 = vpop.f32.mrf.mxu0  ;;  %5888 = vmatmul.mubr.msk.f32.gmra.mxu0 %vm254_vm1, %v6852_v46  ;;  %v7203_v46 = vld [vmem:[%s6363_s9 + $0x18a] sm:$0xff] }
  0xf2   : > { %v7173_v12 = vpop.f32.mrf.mxu1  ;;  %5838 = vmatmul.mubr.msk.f32.gmra.mxu1 %vm254_vm1, %v6835_v40  ;;  %5890 = vmatprep.mubr.msk.f32.mxu0 %vm254_vm1, %v6996_v4  ;;  %8737 = vst [vmem:[#allocation12_spill] sm:$0xff] %v7203_v46  ;;  %v5075_v4 = vld [vmem:[%s6363_s9 + $0x1a0] sm:$0xff] }
  0xf3   : > { %8731 = vst [vmem:[#allocation8_spill] sm:$0xff] %v7173_v12  ;;  %5840 = vmatprep.mubr.msk.f32.mxu1 %vm254_vm1, %v8732_v50  ;;  %v7183_v42 = vpop.f32.mrf.mxu0 }
  0xf4   : > { %v7185_v14 = vpop.f32.mrf.mxu1 }
  0xf5   : > { %8733 = vst [vmem:[#allocation9_spill] sm:$0xff] %v7185_v14  ;;  %v7191_v12 = vpop.f32.mrf.mxu0  ;;  %5891 = vmatmul.mubr.msk.f32.gmra.mxu0 %vm254_vm1, %v7010_v8 }
  0xf6   : > { %v7193_v39 = vpop.f32.mrf.mxu1  ;;  %5841 = vmatmul.mubr.msk.f32.gmra.mxu1 %vm254_vm1, %v8736_v37  ;;  %5893 = vmatprep.mubr.msk.f32.mxu0 %vm254_vm1, %v5074_v6 }
  0xf7   : > { %8735 = vst [vmem:[#allocation11_spill] sm:$0xff] %v7193_v39  ;;  %5843 = vmatprep.mubr.msk.f32.mxu1 %vm254_vm1, %v7188_v11  ;;  %v7206_v50 = vpop.f32.mrf.mxu0 }
  0xf8   : > { %v7208_v14 = vpop.f32.mrf.mxu1 }
  0xf9   : > { %8738 = vst [vmem:[#allocation13_spill] sm:$0xff] %v7208_v14  ;;  %v7210_v40 = vpop.f32.mrf.mxu0  ;;  %5894 = vmatmul.mubr.msk.f32.gmra.mxu0 %vm254_vm1, %v5075_v4 }
  0xfa   : > { %v7212_v39 = vpop.f32.mrf.mxu1  ;;  %5844 = vmatmul.mubr.msk.f32.gmra.mxu1 %vm254_vm1, %v7203_v46  ;;  %5948 = vmatprep.mubr.msk.f32.mxu0 %vm254_vm1, %v8704_v16 }
  0xfb   : > { %8739 = vst [vmem:[#allocation14_spill] sm:$0xff] %v7212_v39  ;;  %5898 = vmatprep.mubr.msk.f32.mxu1 %vm254_vm1, %v6408_v13  ;;  %v7221_v6 = vpop.f32.mrf.mxu0 }
  0xfc   : > { %v7223_v8 = vpop.f32.mrf.mxu1 }
  0xfd   : > { %8740 = vst [vmem:[#allocation15_spill] sm:$0xff] %v7223_v8  ;;  %v5650_v14 = vpop.f32.mrf.mxu0  ;;  %5949 = vmatmul.mubr.msk.f32.vlgmr.msra.gmra.mxu0 %vm254_vm1, %v8705_v18 }
  0xfe   : > { %v5600_v37 = vpop.f32.mrf.mxu1  ;;  %5899 = vmatmul.mubr.msk.f32.vlgmr.msra.gmra.mxu1 %vm254_vm1, %v6426_v15  ;;  %5951 = vmatprep.mubr.msk.f32.mxu0 %vm254_vm1, %v8706_v20 }
  0xff   : > { %v751_v4 = vadd.f32 %v5600_v37, %v7091_v41  ;;  %5901 = vmatprep.mubr.msk.f32.mxu1 %vm254_vm1, %v6432_v17  ;;  %v1103_v16 = vpop.f32.mrf.mxu0  ;;  %v5120_v37 = vld [vmem:[%s6363_s9 + $0xa9] sm:$0xff] }
 0x100   : > { %v745_v13 = vpop.f32.mrf.mxu1 }
 0x101   : > { %v7234_v39 = vadd.f32 %v5650_v14, %v751_v4  ;;  %v746_v8 = vadd.f32 %v745_v13, %v7103_v47  ;;  %v5653_v11 = vpop.f32.mrf.mxu0  ;;  %5952 = vmatmul.mubr.msk.f32.gmra.mxu0 %vm254_vm1, %v8707_v22 }
 0x102   : > { %v5603_v46 = vpop.f32.mrf.mxu1  ;;  %5902 = vmatmul.mubr.msk.f32.gmra.mxu1 %vm254_vm1, %v6446_v19  ;;  %5954 = vmatprep.mubr.msk.f32.mxu0 %vm254_vm1, %v8708_v24 }
 0x103   : > { %v7241_v15 = vadd.f32 %v1103_v16, %v746_v8  ;;  %v761_v17 = vadd.f32 %v5603_v46, %v7107_v51  ;;  %5904 = vmatprep.mubr.msk.f32.mxu1 %vm254_vm1, %v6452_v21  ;;  %v1113_v20 = vpop.f32.mrf.mxu0  ;;  %v5118_v51 = vld [vmem:[%s6363_s9 + $0x91] sm:$0xff] }
 0x104   : > { %v755_v18 = vpop.f32.mrf.mxu1  ;;  %v5121_v16 = vld [vmem:[%s6363_s9 + $0xb1] sm:$0xff] }
 0x105   : > { %v7248_v41 = vadd.f32 %v5653_v11, %v761_v17  ;;  %v756_v19 = vadd.f32 %v755_v18, %v7119_v59  ;;  %v5656_v14 = vpop.f32.mrf.mxu0  ;;  %5955 = vmatmul.mubr.msk.f32.gmra.mxu0 %vm254_vm1, %v8709_v26  ;;  %v5122_v18 = vld [vmem:[%s6363_s9 + $0xc1] sm:$0xff] }
 0x106   : > { %v5606_v47 = vpop.f32.mrf.mxu1  ;;  %5905 = vmatmul.mubr.msk.f32.gmra.mxu1 %vm254_vm1, %v6466_v23  ;;  %5957 = vmatprep.mubr.msk.f32.mxu0 %vm254_vm1, %v8710_v28 }
 0x107   : > { %v7255_v22 = vadd.f32 %v1113_v20, %v756_v19  ;;  %v771_v21 = vadd.f32 %v5606_v47, %v7123_v61  ;;  %5907 = vmatprep.mubr.msk.f32.mxu1 %vm254_vm1, %v6472_v25  ;;  %v1123_v24 = vpop.f32.mrf.mxu0  ;;  %v5119_v61 = vld [vmem:[%s6363_s9 + $0x99] sm:$0xff] }
 0x108   : > { %v765_v11 = vpop.f32.mrf.mxu1 }
 0x109   : > { %v7263_v59 = vadd.f32 %v5656_v14, %v771_v21  ;;  %v766_v23 = vadd.f32 %v765_v11, %v7135_v56  ;;  %v5659_v46 = vpop.f32.mrf.mxu0  ;;  %5958 = vmatmul.mubr.msk.f32.gmra.mxu0 %vm254_vm1, %v8711_v29  ;;  %v5123_v14 = vld [vmem:[%s6363_s9 + $0xc9] sm:$0xff]  ;;  %v5124_v11 = vld [vmem:[%s6363_s9 + $0xd9] sm:$0xff] }
 0x10a   : > { %v5609_v26 = vpop.f32.mrf.mxu1  ;;  %5908 = vmatmul.mubr.msk.f32.gmra.mxu1 %vm254_vm1, %v6486_v27  ;;  %5960 = vmatprep.mubr.msk.f32.mxu0 %vm254_vm1, %v8712_v30 }
 0x10b   : > { %v7270_v25 = vadd.f32 %v1123_v24, %v766_v23  ;;  %v781_v28 = vadd.f32 %v5609_v26, %v7139_v2  ;;  %5910 = vmatprep.mubr.msk.f32.mxu1 %vm254_vm1, %v5118_v51  ;;  %v1133_v8 = vpop.f32.mrf.mxu0  ;;  %v5125_v26 = vld [vmem:[%s6363_s9 + $0xe1] sm:$0xff] }
 0x10c   : > { %v775_v56 = vpop.f32.mrf.mxu1 }
 0x10d   : > { %v7278_v4 = vadd.f32 %v5659_v46, %v781_v28  ;;  %v776_v27 = vadd.f32 %v775_v56, %v7151_v52  ;;  %v5662_v13 = vpop.f32.mrf.mxu0  ;;  %5961 = vmatmul.mubr.msk.f32.gmra.mxu0 %vm254_vm1, %v8713_v31  ;;  %v5126_v28 = vld [vmem:[%s6363_s9 + $0xf1] sm:$0xff] }
 0x10e   : > { %v5612_v29 = vpop.f32.mrf.mxu1  ;;  %5911 = vmatmul.mubr.msk.f32.gmra.mxu1 %vm254_vm1, %v5119_v61  ;;  %5963 = vmatprep.mubr.msk.f32.mxu0 %vm254_vm1, %v8714_v32 }
 0x10f   : > { %v7284_v2 = vadd.f32 %v1133_v8, %v776_v27  ;;  %v791_v30 = vadd.f32 %v5612_v29, %v7155_v10  ;;  %5913 = vmatprep.mubr.msk.f32.mxu1 %vm254_vm1, %v5120_v37  ;;  %v1143_v52 = vpop.f32.mrf.mxu0  ;;  %v5127_v37 = vld [vmem:[%s6363_s9 + $0xf9] sm:$0xff]  ;;  %v5128_v29 = vld [vmem:[%s6363_s9 + $0x109] sm:$0xff] }
 0x110   : > { %v785_v17 = vpop.f32.mrf.mxu1 }
 0x111   : > { %v7292_v20 = vadd.f32 %v5662_v13, %v791_v30  ;;  %v786_v19 = vadd.f32 %v785_v17, %v7167_v48  ;;  %v5665_v47 = vpop.f32.mrf.mxu0  ;;  %5964 = vmatmul.mubr.msk.f32.gmra.mxu0 %vm254_vm1, %v8715_v33  ;;  %v5129_v17 = vld [vmem:[%s6363_s9 + $0x111] sm:$0xff] }
 0x112   : > { %v5615_v31 = vpop.f32.mrf.mxu1  ;;  %5914 = vmatmul.mubr.msk.f32.gmra.mxu1 %vm254_vm1, %v5121_v16  ;;  %5966 = vmatprep.mubr.msk.f32.mxu0 %vm254_vm1, %v8716_v34 }
 0x113   : > { %v7298_v10 = vadd.f32 %v1143_v52, %v786_v19  ;;  %v801_v32 = vadd.f32 %v5615_v31, %v7171_v7  ;;  %5916 = vmatprep.mubr.msk.f32.mxu1 %vm254_vm1, %v5122_v18  ;;  %v1153_v48 = vpop.f32.mrf.mxu0  ;;  %v5130_v18 = vld [vmem:[%s6363_s9 + $0x121] sm:$0xff] }
 0x114   : > { %v795_v21 = vpop.f32.mrf.mxu1 }
 0x115   : > { %v7306_v24 = vadd.f32 %v5665_v47, %v801_v32  ;;  %v796_v51 = vadd.f32 %v795_v21, %v7183_v42  ;;  %v5668_v23 = vpop.f32.mrf.mxu0  ;;  %5967 = vmatmul.mubr.msk.f32.gmra.mxu0 %vm254_vm1, %v8717_v35  ;;  %v5131_v32 = vld [vmem:[%s6363_s9 + $0x129] sm:$0xff]  ;;  %v5132_v21 = vld [vmem:[%s6363_s9 + $0x139] sm:$0xff] }
 0x116   : > { %v5618_v33 = vpop.f32.mrf.mxu1  ;;  %5917 = vmatmul.mubr.msk.f32.gmra.mxu1 %vm254_vm1, %v5123_v14  ;;  %5969 = vmatprep.mubr.msk.f32.mxu0 %vm254_vm1, %v8718_v36 }
 0x117   : > { %v7312_v7 = vadd.f32 %v1153_v48, %v796_v51  ;;  %v811_v34 = vadd.f32 %v5618_v33, %v7191_v12  ;;  %5919 = vmatprep.mubr.msk.f32.mxu1 %vm254_vm1, %v5124_v11  ;;  %v1163_v42 = vpop.f32.mrf.mxu0  ;;  %v5133_v33 = vld [vmem:[%s6363_s9 + $0x141] sm:$0xff] }
 0x118   : > { %v805_v46 = vpop.f32.mrf.mxu1 }
 0x119   : > { %v7320_v61 = vadd.f32 %v5668_v23, %v811_v34  ;;  %v806_v56 = vadd.f32 %v805_v46, %v7206_v50  ;;  %v5671_v8 = vpop.f32.mrf.mxu0  ;;  %5970 = vmatmul.mubr.msk.f32.gmra.mxu0 %vm254_vm1, %v8719_v44  ;;  %v5134_v34 = vld [vmem:[%s6363_s9 + $0x151] sm:$0xff] }
 0x11a   : > { %v5621_v35 = vpop.f32.mrf.mxu1  ;;  %5920 = vmatmul.mubr.msk.f32.gmra.mxu1 %vm254_vm1, %v5125_v26  ;;  %5972 = vmatprep.mubr.msk.f32.mxu0 %vm254_vm1, %v8720_v45 }
 0x11b   : > { %v7326_v12 = vadd.f32 %v1163_v42, %v806_v56  ;;  %v821_v36 = vadd.f32 %v5621_v35, %v7210_v40  ;;  %5922 = vmatprep.mubr.msk.f32.mxu1 %vm254_vm1, %v5126_v28  ;;  %v1173_v50 = vpop.f32.mrf.mxu0  ;;  %v5135_v28 = vld [vmem:[%s6363_s9 + $0x159] sm:$0xff]  ;;  %v5136_v35 = vld [vmem:[%s6363_s9 + $0x169] sm:$0xff] }
 0x11c   : > { %v815_v27 = vpop.f32.mrf.mxu1 }
 0x11d   : > { %v7334_v13 = vadd.f32 %v5671_v8, %v821_v36  ;;  %v816_v30 = vadd.f32 %v815_v27, %v7221_v6  ;;  %v5674_v16 = vpop.f32.mrf.mxu0  ;;  %5973 = vmatmul.mubr.msk.f32.gmra.mxu0 %vm254_vm1, %v8721_v55  ;;  %v5202_v8 = vld [vmem:[%s6363_s9 + $0x16a] sm:$0xff] }
 0x11e   : > { %v5624_v44 = vpop.f32.mrf.mxu1  ;;  %5923 = vmatmul.mubr.msk.f32.gmra.mxu1 %vm254_vm1, %v5127_v37  ;;  %5975 = vmatprep.mubr.msk.f32.mxu0 %vm254_vm1, %v8722_v57 }
 0x11f   : > { %v7340_v40 = vadd.f32 %v1173_v50, %v816_v30  ;;  %v831_v45 = vadd.f32 %v5624_v44, %v7093_v43  ;;  %5925 = vmatprep.mubr.msk.f32.mxu1 %vm254_vm1, %v5128_v29  ;;  %v1183_v6 = vpop.f32.mrf.mxu0  ;;  %v5137_v30 = vld [vmem:[%s6363_s9 + $0x171] sm:$0xff] }
 0x120   : > { %v825_v52 = vpop.f32.mrf.mxu1  ;;  %v5203_v44 = vld [vmem:[%s6363_s9 + $0x172] sm:$0xff] }
 0x121   : > { %v7348_v19 = vadd.f32 %v5674_v16, %v831_v45  ;;  %v826_v31 = vadd.f32 %v825_v52, %v7105_v49  ;;  %v5677_v47 = vpop.f32.mrf.mxu0  ;;  %5976 = vmatmul.mubr.msk.f32.gmra.mxu0 %vm254_vm1, %v8723_v0 }
 0x122   : > { %v5627_v55 = vpop.f32.mrf.mxu1  ;;  %5926 = vmatmul.mubr.msk.f32.gmra.mxu1 %vm254_vm1, %v5129_v17  ;;  %5978 = vmatprep.mubr.msk.f32.mxu0 %vm254_vm1, %v8724_v62  ;;  %v8743_v17 = vld [vmem:[#allocation7_spill] sm:$0xff] }
 0x123   : > { %v7354_v43 = vadd.f32 %v1183_v6, %v826_v31  ;;  %v841_v57 = vadd.f32 %v5627_v55, %v7109_v53  ;;  %5928 = vmatprep.mubr.msk.f32.mxu1 %vm254_vm1, %v5130_v18  ;;  %v1193_v49 = vpop.f32.mrf.mxu0  ;;  %v8744_v55 = vld [vmem:[#allocation8_spill] sm:$0xff] }
 0x124   : > { %v835_v14 = vpop.f32.mrf.mxu1 }
 0x125   : > { %v7362_v48 = vadd.f32 %v5677_v47, %v841_v57  ;;  %v836_v11 = vadd.f32 %v835_v14, %v7121_v60  ;;  %v5680_v51 = vpop.f32.mrf.mxu0  ;;  %5979 = vmatmul.mubr.msk.f32.gmra.mxu0 %vm254_vm1, %v8725_v5  ;;  %v8745_v57 = vld [vmem:[#allocation36_spill] sm:$0xff] }
 0x126   : > { %v5630_v0 = vpop.f32.mrf.mxu1  ;;  %5929 = vmatmul.mubr.msk.f32.gmra.mxu1 %vm254_vm1, %v5131_v32  ;;  %5981 = vmatprep.mubr.msk.f32.mxu0 %vm254_vm1, %v8726_v58  ;;  %v8746_v32 = vld [vmem:[#allocation10_spill] sm:$0xff] }
 0x127   : > { %v7368_v53 = vadd.f32 %v1193_v49, %v836_v11  ;;  %v851_v62 = vadd.f32 %v5630_v0, %v7125_v63  ;;  %5931 = vmatprep.mubr.msk.f32.mxu1 %vm254_vm1, %v5132_v21  ;;  %v1203_v60 = vpop.f32.mrf.mxu0  ;;  %v5140_v21 = vld [vmem:[%s6363_s9 + $0x199] sm:$0xff] }
 0x128   : > { %v845_v23 = vpop.f32.mrf.mxu1  ;;  %v5206_v11 = vld [vmem:[%s6363_s9 + $0x19a] sm:$0xff] }
 0x129   : > { %v7376_v26 = vadd.f32 %v5680_v51, %v851_v62  ;;  %v846_v5 = vadd.f32 %v845_v23, %v7137_v1  ;;  %v5683_v42 = vpop.f32.mrf.mxu0  ;;  %5982 = vmatmul.mubr.msk.f32.gmra.mxu0 %vm254_vm1, %v8728_v38  ;;  %v8747_v51 = vld [vmem:[#allocation9_spill] sm:$0xff] }
 0x12a   : > { %v5633_v46 = vpop.f32.mrf.mxu1  ;;  %5932 = vmatmul.mubr.msk.f32.gmra.mxu1 %vm254_vm1, %v5133_v33  ;;  %5984 = vmatprep.mubr.msk.f32.mxu0 %vm254_vm1, %v8729_v54  ;;  %v8742_v54 = vld [vmem:[#allocation6_spill] sm:$0xff] }
 0x12b   : > { %v7382_v63 = vadd.f32 %v1203_v60, %v846_v5  ;;  %v861_v58 = vadd.f32 %v5633_v46, %v7141_v3  ;;  %5934 = vmatprep.mubr.msk.f32.mxu1 %vm254_vm1, %v5134_v34  ;;  %v1213_v56 = vpop.f32.mrf.mxu0  ;;  %v8741_v3 = vld [vmem:[#allocation33_spill] sm:$0xff]  ;;  %v8749_v34 = vld [vmem:[#allocation12_spill] sm:$0xff]  ;;  %v8750_v46 = vld [vmem:[#allocation11_spill] sm:$0xff] }
 0x12c   : > { %v855_v1 = vpop.f32.mrf.mxu1  ;;  %v8748_v60 = vld [vmem:[#allocation5_spill] sm:$0xff] }
 0x12d   : > { %v7391_v36 = vadd.f32 %v5683_v42, %v861_v58  ;;  %v856_v38 = vadd.f32 %v855_v1, %v7153_v9  ;;  %v5686_v27 = vpop.f32.mrf.mxu0  ;;  %5985 = vmatmul.mubr.msk.f32.gmra.mxu0 %vm254_vm1, %v8741_v3  ;;  %v5141_v58 = vld [vmem:[%s6363_s9 + $0x1a1] sm:$0xff] }
 0x12e   : > { %v5636_v37 = vpop.f32.mrf.mxu1  ;;  %5935 = vmatmul.mubr.msk.f32.gmra.mxu1 %vm254_vm1, %v5135_v28  ;;  %5987 = vmatprep.mubr.msk.f32.mxu0 %vm254_vm1, %v5202_v8  ;;  %v5207_v28 = vld [vmem:[%s6363_s9 + $0x1a2] sm:$0xff]  ;;  %s7843_s9 = scalar_lea.vmem [#allocation2], %s4743_s8 }
 0x12f   : > { %v7397_v50 = vadd.f32 %v1213_v56, %v856_v38  ;;  %v871_v29 = vadd.f32 %v5636_v37, %v8742_v54  ;;  %5937 = vmatprep.mubr.msk.f32.mxu1 %vm254_vm1, %v5136_v35  ;;  %v1223_v16 = vpop.f32.mrf.mxu0  ;;  %v8751_v8 = vld [vmem:[#allocation13_spill] sm:$0xff]  ;;  %v8752_v54 = vld [vmem:[#allocation14_spill] sm:$0xff]  ;;  %s4655_s19 = sshll.u32 %s7843_s9, 4  ;;  %s8550_s19 = int_to_ptr.vmem [resolvable:$true] %s4655_s19 }
 0x130   : > { %v865_v9 = vpop.f32.mrf.mxu1  ;;  %s6186_s15 = scalar_lea.vmem %s8550_s19, 4096  ;;  %p6193_p1 = scmp.lt.s32.totalorder %s8550_s19, %s6191_s29 }
 0x131   : > { %v7404_v45 = vadd.f32 %v5686_v27, %v871_v29  ;;  %v866_v52 = vadd.f32 %v865_v9, %v8743_v17  ;;  %v5689_v18 = vpop.f32.mrf.mxu0  ;;  %5988 = vmatmul.mubr.msk.f32.gmra.mxu0 %vm254_vm1, %v5203_v44  ;;  %p6187_p12 = scmp.ne.s32.totalorder %s8550_s19, %s6186_s15  ;;  %p6194_p2 = scmp.lt.s32.totalorder %s6192_s30, %s6186_s15 }
 0x132   : > { %v5639_v6 = vpop.f32.mrf.mxu1  ;;  %5938 = vmatmul.mubr.msk.f32.gmra.mxu1 %vm254_vm1, %v5137_v30  ;;  %5990 = vmatprep.mubr.msk.f32.mxu0 %vm254_vm1, %v8746_v32 }
 0x133   : > { %v7409_v31 = vadd.f32 %v1223_v16, %v866_v52  ;;  %v881_v47 = vadd.f32 %v5639_v6, %v8744_v55  ;;  %5940 = vmatprep.mubr.msk.f32.mxu1 %vm254_vm1, %v8745_v57  ;;  %v1233_v49 = vpop.f32.mrf.mxu0  ;;  %v8753_v16 = vld [vmem:[#allocation15_spill] sm:$0xff]  ;;  %p6188_p13 = pnand %p6187_p12, %p6328_p4  ;;  %p6195_p3 = por %p6194_p2, %p6193_p1 }
 0x134   : > { %v875_v14 = vpop.f32.mrf.mxu1 }
 0x135   : > { %v7418_v0 = vadd.f32 %v5689_v18, %v881_v47  ;;  %v876_v62 = vadd.f32 %v875_v14, %v8747_v51  ;;  %v5692_v23 = vpop.f32.mrf.mxu0  ;;  %5991 = vmatmul.mubr.msk.f32.gmra.mxu0 %vm254_vm1, %v8749_v34  ;;  %p6189_p0 = pneg %p6188_p13 }
 0x136   : > { %v5642_v33 = vpop.f32.mrf.mxu1  ;;  %5941 = vmatmul.mubr.msk.f32.gmra.mxu1 %vm254_vm1, %v8748_v60  ;;  %5993 = vmatprep.mubr.msk.f32.mxu0 %vm254_vm1, %v5206_v11 }
 0x137   : > { %v7425_v5 = vadd.f32 %v1233_v49, %v876_v62  ;;  %v891_v42 = vadd.f32 %v5642_v33, %v8750_v46  ;;  %5943 = vmatprep.mubr.msk.f32.mxu1 %vm254_vm1, %v5140_v21  ;;  %v1243_v56 = vpop.f32.mrf.mxu0  ;;  %p6196_p5 = pnand %p6195_p3, %p6189_p0 }
 0x138   : > { %v885_v1 = vpop.f32.mrf.mxu1 }
 0x139   : > { %v7432_v35 = vadd.f32 %v5692_v23, %v891_v42  ;;  %v886_v38 = vadd.f32 %v885_v1, %v8751_v8  ;;  %v5695_v27 = vpop.f32.mrf.mxu0  ;;  %5994 = vmatmul.mubr.msk.f32.gmra.mxu0 %vm254_vm1, %v5207_v28 }
 0x13a   : > { %v5645_v37 = vpop.f32.mrf.mxu1  ;;  %5944 = vmatmul.mubr.msk.f32.gmra.mxu1 %vm254_vm1, %v5141_v58 }
 0x13b   : > { %v7437_v3 = vadd.f32 %v1243_v56, %v886_v38  ;;  %v901_v29 = vadd.f32 %v5645_v37, %v8752_v54  ;;  %v1253_v44 = vpop.f32.mrf.mxu0 }
 0x13c   : > { %v895_v30 = vpop.f32.mrf.mxu1 }
 0x13d   : > { %v7440_v9 = vadd.f32 %v5695_v27, %v901_v29  ;;  %v896_v17 = vadd.f32 %v895_v30, %v8753_v16  ;;  %v5750_v6 = vpop.f32.mrf.mxu0 }
 0x13e   : > { %v5700_v52 = vpop.f32.mrf.mxu1 }
 0x13f   : > { %v7443_v18 = vadd.f32 %v1253_v44, %v896_v17  ;;  %v1656_v55 = vadd.f32 %v5700_v52, %v7234_v39  ;;  %v1886_v57 = vpop.f32.mrf.mxu0 }
 0x140   : > { %v1496_v47 = vpop.f32.mrf.mxu1 }
 0x141   : > { %v7446_v32 = vadd.f32 %v5750_v6, %v1656_v55  ;;  %v1655_v14 = vadd.f32 %v1496_v47, %v7241_v15  ;;  %v5753_v21 = vpop.f32.mrf.mxu0 }
 0x142   : > { %v5703_v49 = vpop.f32.mrf.mxu1 }
 0x143   : > { %v7449_v11 = vadd.f32 %v1886_v57, %v1655_v14  ;;  %v1658_v51 = vadd.f32 %v5703_v49, %v7248_v41  ;;  %v1896_v33 = vpop.f32.mrf.mxu0 }
 0x144   : > { %v1506_v62 = vpop.f32.mrf.mxu1 }
 0x145   : > { %v7452_v23 = vadd.f32 %v5753_v21, %v1658_v51  ;;  %v1657_v60 = vadd.f32 %v1506_v62, %v7255_v22  ;;  %v5756_v39 = vpop.f32.mrf.mxu0 }
 0x146   : > { %v5706_v34 = vpop.f32.mrf.mxu1 }
 0x147   : > { %v7455_v46 = vadd.f32 %v1896_v33, %v1657_v60  ;;  %v1660_v42 = vadd.f32 %v5706_v34, %v7263_v59  ;;  %v1906_v15 = vpop.f32.mrf.mxu0 }
 0x148   : > { %v1516_v58 = vpop.f32.mrf.mxu1 }
 0x149   : > { %v7458_v28 = vadd.f32 %v5756_v39, %v1660_v42  ;;  %v1659_v1 = vadd.f32 %v1516_v58, %v7270_v25  ;;  %v5759_v41 = vpop.f32.mrf.mxu0 }
 0x14a   : > { %v5709_v56 = vpop.f32.mrf.mxu1 }
 0x14b   : > { %v7461_v8 = vadd.f32 %v1906_v15, %v1659_v1  ;;  %v1662_v38 = vadd.f32 %v5709_v56, %v7278_v4  ;;  %v1916_v22 = vpop.f32.mrf.mxu0 }
 0x14c   : > { %v1526_v37 = vpop.f32.mrf.mxu1 }
 0x14d   : > { %v7464_v27 = vadd.f32 %v5759_v41, %v1662_v38  ;;  %v1661_v54 = vadd.f32 %v1526_v37, %v7284_v2  ;;  %v5762_v59 = vpop.f32.mrf.mxu0 }
 0x14e   : > { %v5712_v29 = vpop.f32.mrf.mxu1 }
 0x14f   : > { %v7467_v30 = vadd.f32 %v1916_v22, %v1661_v54  ;;  %v1664_v44 = vadd.f32 %v5712_v29, %v7292_v20  ;;  %v1926_v25 = vpop.f32.mrf.mxu0 }
 0x150   : > { %v1536_v16 = vpop.f32.mrf.mxu1 }
 0x151   : > { %v7470_v17 = vadd.f32 %v5762_v59, %v1664_v44  ;;  %v1663_v52 = vadd.f32 %v1536_v16, %v7298_v10  ;;  %v5765_v4 = vpop.f32.mrf.mxu0 }
 0x152   : > { %v5715_v6 = vpop.f32.mrf.mxu1 }
 0x153   : > { %v7473_v55 = vadd.f32 %v1926_v25, %v1663_v52  ;;  %v1666_v47 = vadd.f32 %v5715_v6, %v7306_v24  ;;  %v1936_v2 = vpop.f32.mrf.mxu0 }
 0x154   : > { %v1546_v57 = vpop.f32.mrf.mxu1 }
 0x155   : > { %v7476_v14 = vadd.f32 %v5765_v4, %v1666_v47  ;;  %v1665_v49 = vadd.f32 %v1546_v57, %v7312_v7  ;;  %v5768_v20 = vpop.f32.mrf.mxu0 }
 0x156   : > { %v5718_v21 = vpop.f32.mrf.mxu1 }
 0x157   : > { %v7479_v51 = vadd.f32 %v1936_v2, %v1665_v49  ;;  %v1668_v62 = vadd.f32 %v5718_v21, %v7320_v61  ;;  %v1946_v10 = vpop.f32.mrf.mxu0 }
 0x158   : > { %v1556_v33 = vpop.f32.mrf.mxu1 }
 0x159   : > { %v7482_v60 = vadd.f32 %v5768_v20, %v1668_v62  ;;  %v1667_v34 = vadd.f32 %v1556_v33, %v7326_v12  ;;  %v5771_v24 = vpop.f32.mrf.mxu0 }
 0x15a   : > { %v5721_v39 = vpop.f32.mrf.mxu1 }
 0x15b   : > { %v7485_v42 = vadd.f32 %v1946_v10, %v1667_v34  ;;  %v1670_v58 = vadd.f32 %v5721_v39, %v7334_v13  ;;  %v1956_v7 = vpop.f32.mrf.mxu0 }
 0x15c   : > { %v1566_v15 = vpop.f32.mrf.mxu1 }
 0x15d   : > { %v7488_v1 = vadd.f32 %v5771_v24, %v1670_v58  ;;  %v1669_v56 = vadd.f32 %v1566_v15, %v7340_v40  ;;  %v5774_v61 = vpop.f32.mrf.mxu0 }
 0x15e   : > { %v5724_v41 = vpop.f32.mrf.mxu1 }
 0x15f   : > { %v7491_v38 = vadd.f32 %v1956_v7, %v1669_v56  ;;  %v1672_v37 = vadd.f32 %v5724_v41, %v7348_v19  ;;  %v1966_v12 = vpop.f32.mrf.mxu0 }
 0x160   : > { %v1576_v22 = vpop.f32.mrf.mxu1 }
 0x161   : > { %v7494_v54 = vadd.f32 %v5774_v61, %v1672_v37  ;;  %v1671_v29 = vadd.f32 %v1576_v22, %v7354_v43  ;;  %v5777_v13 = vpop.f32.mrf.mxu0 }
 0x162   : > { %v5727_v59 = vpop.f32.mrf.mxu1 }
 0x163   : > { %v7497_v44 = vadd.f32 %v1966_v12, %v1671_v29  ;;  %v1674_v16 = vadd.f32 %v5727_v59, %v7362_v48  ;;  %v1976_v40 = vpop.f32.mrf.mxu0 }
 0x164   : > { %v1586_v25 = vpop.f32.mrf.mxu1 }
 0x165   : > { %v7500_v52 = vadd.f32 %v5777_v13, %v1674_v16  ;;  %v1673_v6 = vadd.f32 %v1586_v25, %v7368_v53  ;;  %v5780_v19 = vpop.f32.mrf.mxu0 }
 0x166   : > { %v5730_v4 = vpop.f32.mrf.mxu1 }
 0x167   : > { %v7503_v47 = vadd.f32 %v1976_v40, %v1673_v6  ;;  %v1676_v57 = vadd.f32 %v5730_v4, %v7376_v26  ;;  %v1986_v43 = vpop.f32.mrf.mxu0 }
 0x168   : > { %v1596_v2 = vpop.f32.mrf.mxu1 }
 0x169   : > { %v7506_v49 = vadd.f32 %v5780_v19, %v1676_v57  ;;  %v1675_v21 = vadd.f32 %v1596_v2, %v7382_v63  ;;  %v5783_v48 = vpop.f32.mrf.mxu0 }
 0x16a   : > { %v5733_v20 = vpop.f32.mrf.mxu1 }
 0x16b   : > { %v7509_v62 = vadd.f32 %v1986_v43, %v1675_v21  ;;  %v1678_v33 = vadd.f32 %v5733_v20, %v7391_v36  ;;  %v1996_v53 = vpop.f32.mrf.mxu0 }
 0x16c   : > { %v1606_v10 = vpop.f32.mrf.mxu1 }
 0x16d   : > { %v7512_v34 = vadd.f32 %v5783_v48, %v1678_v33  ;;  %v1677_v39 = vadd.f32 %v1606_v10, %v7397_v50  ;;  %v5786_v26 = vpop.f32.mrf.mxu0 }
 0x16e   : > { %v5736_v24 = vpop.f32.mrf.mxu1 }
 0x16f   : > { %v7515_v58 = vadd.f32 %v1996_v53, %v1677_v39  ;;  %v1680_v15 = vadd.f32 %v5736_v24, %v7404_v45  ;;  %v2006_v63 = vpop.f32.mrf.mxu0 }
 0x170   : > { %v1616_v7 = vpop.f32.mrf.mxu1 }
 0x171   : > { %v7518_v56 = vadd.f32 %v5786_v26, %v1680_v15  ;;  %v1679_v41 = vadd.f32 %v1616_v7, %v7409_v31  ;;  %v5789_v36 = vpop.f32.mrf.mxu0 }
 0x172   : > { %v5739_v61 = vpop.f32.mrf.mxu1 }
 0x173   : > { %v7521_v37 = vadd.f32 %v2006_v63, %v1679_v41  ;;  %v1682_v22 = vadd.f32 %v5739_v61, %v7418_v0  ;;  %v2016_v50 = vpop.f32.mrf.mxu0 }
 0x174   : > { %v1626_v12 = vpop.f32.mrf.mxu1 }
 0x175   : > { %v7524_v29 = vadd.f32 %v5789_v36, %v1682_v22  ;;  %v1681_v59 = vadd.f32 %v1626_v12, %v7425_v5  ;;  %v5792_v45 = vpop.f32.mrf.mxu0 }
 0x176   : > { %v5742_v13 = vpop.f32.mrf.mxu1 }
 0x177   : > { %v7527_v16 = vadd.f32 %v2016_v50, %v1681_v59  ;;  %v1684_v25 = vadd.f32 %v5742_v13, %v7432_v35  ;;  %v2026_v31 = vpop.f32.mrf.mxu0 }
 0x178   : > { %v1636_v40 = vpop.f32.mrf.mxu1 }
 0x179   : > { %v7530_v6 = vadd.f32 %v5792_v45, %v1684_v25  ;;  %v1683_v4 = vadd.f32 %v1636_v40, %v7437_v3  ;;  %v5795_v0 = vpop.f32.mrf.mxu0 }
 0x17a   : > { %v5745_v19 = vpop.f32.mrf.mxu1 }
 0x17b   : > { %v7533_v57 = vadd.f32 %v2026_v31, %v1683_v4  ;;  %v1686_v2 = vadd.f32 %v5745_v19, %v7440_v9  ;;  %v2036_v5 = vpop.f32.mrf.mxu0 }
 0x17c   : > { %v1646_v43 = vpop.f32.mrf.mxu1 }
 0x17d   : > { %v7536_v21 = vadd.f32 %v5795_v0, %v1686_v2  ;;  %v1685_v20 = vadd.f32 %v1646_v43, %v7443_v18  ;;  %v7541_v35 = vpop.f32.mrf.mxu0 }
 0x17e   : > { %v7539_v48 = vpop.f32.mrf.mxu1 }
 0x17f   : > { %v7543_v33 = vadd.f32 %v2036_v5, %v1685_v20  ;;  %v7547_v3 = vpop.f32.mrf.mxu0 }
 0x180   : > { %v7545_v10 = vpop.f32.mrf.mxu1 }
 0x181   : > { %v7551_v39 = vpop.f32.mrf.mxu0 }
 0x182   : > { %v7549_v53 = vpop.f32.mrf.mxu1 }
 0x183   : > { %v7555_v24 = vpop.f32.mrf.mxu0 }
 0x184   : > { %v7553_v9 = vpop.f32.mrf.mxu1 }
 0x185   : > { %v5856_v18 = vpop.f32.mrf.mxu0 }
 0x186   : > { %v5806_v26 = vpop.f32.mrf.mxu1 }
 0x187   : > { %v2440_v15 = vadd.f32 %v5806_v26, %v7458_v28  ;;  %v2689_v63 = vpop.f32.mrf.mxu0 }
 0x188   : > { %v2296_v7 = vpop.f32.mrf.mxu1 }
 0x189   : > { %v7558_v41 = vadd.f32 %v5856_v18, %v2440_v15  ;;  %v2439_v61 = vadd.f32 %v2296_v7, %v7461_v8  ;;  %v5859_v22 = vpop.f32.mrf.mxu0 }
 0x18a   : > { %v5809_v36 = vpop.f32.mrf.mxu1 }
 0x18b   : > { %v7561_v12 = vadd.f32 %v2689_v63, %v2439_v61  ;;  %v2442_v50 = vadd.f32 %v5809_v36, %v7464_v27  ;;  %v2699_v13 = vpop.f32.mrf.mxu0 }
 0x18c   : > { %v2306_v59 = vpop.f32.mrf.mxu1 }
 0x18d   : > { %v7564_v45 = vadd.f32 %v5859_v22, %v2442_v50  ;;  %v2441_v25 = vadd.f32 %v2306_v59, %v7467_v30  ;;  %v5862_v28 = vpop.f32.mrf.mxu0 }
 0x18e   : > { %v5812_v40 = vpop.f32.mrf.mxu1 }
 0x18f   : > { %v7567_v31 = vadd.f32 %v2699_v13, %v2441_v25  ;;  %v2444_v4 = vadd.f32 %v5812_v40, %v7470_v17  ;;  %v2709_v8 = vpop.f32.mrf.mxu0 }
 0x190   : > { %v2316_v19 = vpop.f32.mrf.mxu1 }
 0x191   : > { %v7570_v0 = vadd.f32 %v5862_v28, %v2444_v4  ;;  %v2443_v2 = vadd.f32 %v2316_v19, %v7473_v55  ;;  %v5865_v27 = vpop.f32.mrf.mxu0 }
 0x192   : > { %v5815_v43 = vpop.f32.mrf.mxu1 }
 0x193   : > { %v7573_v5 = vadd.f32 %v2709_v8, %v2443_v2  ;;  %v2446_v20 = vadd.f32 %v5815_v43, %v7476_v14  ;;  %v2719_v30 = vpop.f32.mrf.mxu0 }
 0x194   : > { %v2326_v26 = vpop.f32.mrf.mxu1 }
 0x195   : > { %v7576_v18 = vadd.f32 %v5865_v27, %v2446_v20  ;;  %v2445_v15 = vadd.f32 %v2326_v26, %v7479_v51  ;;  %v5868_v17 = vpop.f32.mrf.mxu0 }
 0x196   : > { %v5818_v7 = vpop.f32.mrf.mxu1 }
 0x197   : > { %v7579_v63 = vadd.f32 %v2719_v30, %v2445_v15  ;;  %v2448_v61 = vadd.f32 %v5818_v7, %v7482_v60  ;;  %v2729_v55 = vpop.f32.mrf.mxu0 }
 0x198   : > { %v2336_v36 = vpop.f32.mrf.mxu1 }
 0x199   : > { %v7582_v22 = vadd.f32 %v5868_v17, %v2448_v61  ;;  %v2447_v50 = vadd.f32 %v2336_v36, %v7485_v42  ;;  %v5871_v14 = vpop.f32.mrf.mxu0 }
 0x19a   : > { %v5821_v59 = vpop.f32.mrf.mxu1 }
 0x19b   : > { %v7585_v13 = vadd.f32 %v2729_v55, %v2447_v50  ;;  %v2450_v25 = vadd.f32 %v5821_v59, %v7488_v1  ;;  %v2739_v51 = vpop.f32.mrf.mxu0 }
 0x19c   : > { %v2346_v40 = vpop.f32.mrf.mxu1 }
 0x19d   : > { %v7588_v28 = vadd.f32 %v5871_v14, %v2450_v25  ;;  %v2449_v4 = vadd.f32 %v2346_v40, %v7491_v38  ;;  %v5874_v60 = vpop.f32.mrf.mxu0 }
 0x19e   : > { %v5824_v19 = vpop.f32.mrf.mxu1 }
 0x19f   : > { %v7591_v8 = vadd.f32 %v2739_v51, %v2449_v4  ;;  %v2452_v2 = vadd.f32 %v5824_v19, %v7494_v54  ;;  %v2749_v42 = vpop.f32.mrf.mxu0 }
 0x1a0   : > { %v2356_v43 = vpop.f32.mrf.mxu1 }
 0x1a1   : > { %v7594_v27 = vadd.f32 %v5874_v60, %v2452_v2  ;;  %v2451_v20 = vadd.f32 %v2356_v43, %v7497_v44  ;;  %v5877_v1 = vpop.f32.mrf.mxu0 }
 0x1a2   : > { %v5827_v26 = vpop.f32.mrf.mxu1 }
 0x1a3   : > { %v7597_v30 = vadd.f32 %v2749_v42, %v2451_v20  ;;  %v2454_v15 = vadd.f32 %v5827_v26, %v7500_v52  ;;  %v2759_v38 = vpop.f32.mrf.mxu0 }
 0x1a4   : > { %v2366_v7 = vpop.f32.mrf.mxu1 }
 0x1a5   : > { %v7600_v17 = vadd.f32 %v5877_v1, %v2454_v15  ;;  %v2453_v61 = vadd.f32 %v2366_v7, %v7503_v47  ;;  %v5880_v54 = vpop.f32.mrf.mxu0 }
 0x1a6   : > { %v5830_v36 = vpop.f32.mrf.mxu1 }
 0x1a7   : > { %v7603_v55 = vadd.f32 %v2759_v38, %v2453_v61  ;;  %v2456_v50 = vadd.f32 %v5830_v36, %v7506_v49  ;;  %v2769_v44 = vpop.f32.mrf.mxu0 }
 0x1a8   : > { %v2376_v59 = vpop.f32.mrf.mxu1 }
 0x1a9   : > { %v7606_v14 = vadd.f32 %v5880_v54, %v2456_v50  ;;  %v2455_v25 = vadd.f32 %v2376_v59, %v7509_v62  ;;  %v5883_v52 = vpop.f32.mrf.mxu0 }
 0x1aa   : > { %v5833_v40 = vpop.f32.mrf.mxu1 }
 0x1ab   : > { %8754 = vst [vmem:[#allocation16_spill] sm:$0xff] %v7606_v14  ;;  %v7609_v51 = vadd.f32 %v2769_v44, %v2455_v25  ;;  %v2458_v4 = vadd.f32 %v5833_v40, %v7512_v34  ;;  %v2779_v47 = vpop.f32.mrf.mxu0 }
 0x1ac   : > { %v2386_v19 = vpop.f32.mrf.mxu1 }
 0x1ad   : > { %8755 = vst [vmem:[#allocation17_spill] sm:$0xff] %v7609_v51  ;;  %v7612_v60 = vadd.f32 %v5883_v52, %v2458_v4  ;;  %v2457_v2 = vadd.f32 %v2386_v19, %v7515_v58  ;;  %v5886_v49 = vpop.f32.mrf.mxu0  ;;  %v2436_v52 = vadd.f32 %v7539_v48, %v7446_v32  ;;  %v2438_v32 = vadd.f32 %v7549_v53, %v7452_v23 }
 0x1ae   : > { %v5836_v43 = vpop.f32.mrf.mxu1 }
 0x1af   : > { %8756 = vst [vmem:[#allocation18_spill] sm:$0xff] %v7612_v60  ;;  %v7615_v42 = vadd.f32 %v2779_v47, %v2457_v2  ;;  %v2460_v20 = vadd.f32 %v5836_v43, %v7518_v56  ;;  %v2789_v62 = vpop.f32.mrf.mxu0 }
 0x1b0   : > { %v2396_v26 = vpop.f32.mrf.mxu1 }
 0x1b1   : > { %8757 = vst [vmem:[#allocation19_spill] sm:$0xff] %v7615_v42  ;;  %v7618_v1 = vadd.f32 %v5886_v49, %v2460_v20  ;;  %v2459_v15 = vadd.f32 %v2396_v26, %v7521_v37  ;;  %v5889_v34 = vpop.f32.mrf.mxu0  ;;  %v2829_v20 = vadd.f32 %v7541_v35, %v2436_v52  ;;  %v7654_v35 = vld [vmem:[%s8602_s2] ss:$0 sm:$0xff] }
 0x1b2   : > { %v5839_v7 = vpop.f32.mrf.mxu1 }
 0x1b3   : > { %8758 = vst [vmem:[#allocation20_spill] sm:$0xff] %v7618_v1  ;;  %v7621_v38 = vadd.f32 %v2789_v62, %v2459_v15  ;;  %v2462_v61 = vadd.f32 %v5839_v7, %v7524_v29  ;;  %v2799_v58 = vpop.f32.mrf.mxu0  ;;  %v2831_v7 = vadd.f32 %v7551_v39, %v2438_v32 }
 0x1b4   : > { %v2406_v36 = vpop.f32.mrf.mxu1 }
 0x1b5   : > { %8759 = vst [vmem:[#allocation21_spill] sm:$0xff] %v7621_v38  ;;  %v7624_v54 = vadd.f32 %v5889_v34, %v2462_v61  ;;  %v2461_v50 = vadd.f32 %v2406_v36, %v7527_v16  ;;  %v5892_v56 = vpop.f32.mrf.mxu0  ;;  %v2435_v16 = vadd.f32 %v7545_v10, %v7449_v11 }
 0x1b6   : > { %v5842_v59 = vpop.f32.mrf.mxu1 }
 0x1b7   : > { %8760 = vst [vmem:[#allocation22_spill] sm:$0xff] %v7624_v54  ;;  %v7627_v44 = vadd.f32 %v2799_v58, %v2461_v50  ;;  %v2464_v25 = vadd.f32 %v5842_v59, %v7530_v6  ;;  %v2809_v37 = vpop.f32.mrf.mxu0  ;;  %v2828_v15 = vadd.f32 %v7547_v3, %v2435_v16 }
 0x1b8   : > { %v2416_v40 = vpop.f32.mrf.mxu1 }
 0x1b9   : > { %8761 = vst [vmem:[#allocation23_spill] sm:$0xff] %v7627_v44  ;;  %v7632_v4 = vadd.f32 %v5892_v56, %v2464_v25  ;;  %v2463_v29 = vadd.f32 %v2416_v40, %v7533_v57  ;;  %v5895_v47 = vpop.f32.mrf.mxu0 }
 0x1ba   : > { %v5845_v19 = vpop.f32.mrf.mxu1 }
 0x1bb   : > { %8762 = vst [vmem:[#allocation24_spill] sm:$0xff] %v7632_v4  ;;  %v7637_v2 = vadd.f32 %v2809_v37, %v2463_v29  ;;  %v2466_v43 = vadd.f32 %v5845_v19, %v7536_v21  ;;  %v2819_v6 = vpop.f32.mrf.mxu0  ;;  %v2437_v21 = vadd.f32 %v7553_v9, %v7455_v46 }
 0x1bc   : > { %v2426_v49 = vpop.f32.mrf.mxu1 }
 0x1bd   : > { %8763 = vst [vmem:[#allocation25_spill] sm:$0xff] %v7637_v2  ;;  %v7643_v48 = vadd.f32 %v5895_v47, %v2466_v43  ;;  %v2465_v57 = vadd.f32 %v2426_v49, %v7543_v33  ;;  %v5950_v62 = vpop.f32.mrf.mxu0  ;;  %v2830_v59 = vadd.f32 %v7555_v24, %v2437_v21 }
 0x1be   : > { %v5900_v26 = vpop.f32.mrf.mxu1 }
 0x1bf   : > { %8764 = vst [vmem:[#allocation26_spill] sm:$0xff] %v7643_v48  ;;  %v7647_v11 = vadd.f32 %v2819_v6, %v2465_v57  ;;  %v3219_v10 = vadd.f32 %v5900_v26, %v2829_v20  ;;  %v3449_v53 = vpop.f32.mrf.mxu0  ;;  %v8766_v48 = vmov -1.0  }
 0x1c0   : > { %v3059_v23 = vpop.f32.mrf.mxu1 }
 0x1c1   : > { %8765 = vst [vmem:[#allocation27_spill] sm:$0xff] %v7647_v11  ;;  %v3609_v33 = vadd.f32 %v5950_v62, %v3219_v10  ;;  %v3218_v34 = vadd.f32 %v3059_v23, %v2828_v15  ;;  %v5953_v36 = vpop.f32.mrf.mxu0 }
 0x1c2   : > { %v5903_v61 = vpop.f32.mrf.mxu1 }
 0x1c3   : > { %v3648_v3 = vadd.f32 %v7654_v35, %v3609_v33  ;;  %v3608_v58 = vadd.f32 %v3449_v53, %v3218_v34  ;;  %v3221_v50 = vadd.f32 %v5903_v61, %v2831_v7  ;;  %v3459_v9 = vpop.f32.mrf.mxu0 }
 0x1c4   : > { %v3069_v46 = vpop.f32.mrf.mxu1 }
 0x1c5   : > { %v3712_v56 = vmul.f32 0.70710677, %v3648_v3  ;;  %v3647_v25 = vadd.f32 %v7654_v35, %v3608_v58  ;;  %v3611_v40 = vadd.f32 %v5953_v36, %v3221_v50  ;;  %v3220_v37 = vadd.f32 %v3069_v46, %v2830_v59  ;;  %v5956_v16 = vpop.f32.mrf.mxu0 }
 0x1c6   : > { %v5906_v52 = vpop.f32.mrf.mxu1  ;;  %v7671_v61 = vmul.f32 0.5, %v3648_v3  ;;  %v8664_v36 = vmov -1.0  }
 0x1c7   : > { %v3808_v29 = vand.u32 2147483647, %v3712_v56  ;;  %v3711_v39 = vmul.f32 0.70710677, %v3647_v25  ;;  %v3650_v19 = vadd.f32 %v7654_v35, %v3611_v40  ;;  %v3610_v47 = vadd.f32 %v3459_v9, %v3220_v37  ;;  %v3469_v21 = vpop.f32.mrf.mxu0 }
 0x1c8   : > { %v3079_v43 = vpop.f32.mrf.mxu1  ;;  %vm3744_vm2 = vcmp.ge.f32.partialorder %v3712_v56, 0.0  ;;  %v3223_v10 = vadd.f32 %v5906_v52, %v7558_v41  ;;  %v7677_v50 = vmul.f32 0.5, %v3647_v25 }
 0x1c9   : > { %v3840_v49 = vmul.f32 0.3275911, %v3808_v29  ;;  %v3807_v6 = vand.u32 2147483647, %v3711_v39  ;;  %v7661_v20 = vmul.f32 0.70710677, %v3650_v19  ;;  %v3649_v24 = vadd.f32 %v7654_v35, %v3610_v47  ;;  %v5959_v40 = vpop.f32.mrf.mxu0 }
 0x1ca   : > { %v4320_v26 = vsub.f32 0.0, %v3808_v29  ;;  %v5909_v23 = vpop.f32.mrf.mxu1  ;;  %v7675_v58 = vsel %vm3744_vm2, 1.0, %v8664_v36  ;;  %v3613_v9 = vadd.f32 %v5956_v16, %v3223_v10  ;;  %vm3743_vm3 = vcmp.ge.f32.partialorder %v3711_v39, 0.0 }
 0x1cb   : > { %v7664_v32 = vadd.f32 1.0, %v3840_v49  ;;  %v3839_v57 = vmul.f32 0.3275911, %v3807_v6  ;;  %v3810_v62 = vand.u32 2147483647, %v7661_v20  ;;  %v4319_v7 = vsub.f32 0.0, %v3807_v6 }
 0x1cc   : > { %v3713_v15 = vmul.f32 0.70710677, %v3649_v24  ;;  %v4352_v41 = vmul.f32 %v4320_v26, %v3808_v29  ;;  %v3089_v37 = vpop.f32.mrf.mxu1  ;;  %v3222_v47 = vadd.f32 %v3079_v43, %v7561_v12  ;;  %v3652_v25 = vadd.f32 %v7654_v35, %v3613_v9  ;;  %v3479_v12 = vpop.f32.mrf.mxu0 }
 0x1cd   : > { %6057 = vrcp.f32 %v7664_v32  ;;  %v7669_v53 = vadd.f32 1.0, %v3839_v57  ;;  %v3842_v33 = vmul.f32 0.3275911, %v3810_v62  ;;  %v4322_v34 = vsub.f32 0.0, %v3810_v62 }
 0x1ce   : > { %v3809_v59 = vand.u32 2147483647, %v3713_v15  ;;  %v4351_v52 = vmul.f32 %v4319_v7, %v3807_v6  ;;  %v3225_v49 = vadd.f32 %v5909_v23, %v7564_v45  ;;  %v3612_v26 = vadd.f32 %v3469_v21, %v3222_v47 }
 0x1cf   : > { %6059 = vrcp.f32 %v7669_v53  ;;  %v7680_v46 = vadd.f32 1.0, %v3842_v33  ;;  %v4354_v56 = vmul.f32 %v4322_v34, %v3810_v62  ;;  %v3224_v16 = vadd.f32 %v3089_v37, %v7567_v31 }
 0x1d0   : > { %v3841_v3 = vmul.f32 0.3275911, %v3809_v59  ;;  %v4321_v57 = vsub.f32 0.0, %v3809_v59  ;;  %v4385_v10 = vmul.f32 1.442695, %v4352_v41  ;;  %v7690_v39 = vsel %vm3743_vm3, 1.0, %v8664_v36 }
 0x1d1   : > { %6061 = vrcp.f32 %v7680_v46  ;;  %v3716_v6 = vmul.f32 0.70710677, %v3652_v25  ;;  %v3615_v7 = vadd.f32 %v5959_v40, %v3225_v49  ;;  %v4383_v43 = vmul.f32 1.442695, %v4351_v52 }
 0x1d2   : > { %v7686_v29 = vadd.f32 1.0, %v3841_v3  ;;  %v7694_v62 = vadd.f32 %v7654_v35, %v3612_v26  ;;  %v3614_v45 = vadd.f32 %v3479_v12, %v3224_v16  ;;  %v7696_v23 = vmul.f32 0.5, %v3650_v19  ;;  %v5912_v19 = vpop.f32.mrf.mxu1 }
 0x1d3   : > { %v4389_v33 = vmul.f32 1.442695, %v4354_v56  ;;  %v3812_v21 = vand.u32 2147483647, %v3716_v6  ;;  %v7699_v31 = vadd.f32 %v7654_v35, %v3615_v7  ;;  %vm3746_vm4 = vcmp.ge.f32.partialorder %v7661_v20, 0.0 }
 0x1d4   : > { %6063 = vrcp.f32 %v7686_v29  ;;  %vm3745_vm5 = vcmp.ge.f32.partialorder %v3713_v15, 0.0  ;;  %v4353_v34 = vmul.f32 %v4321_v57, %v3809_v59  ;;  %v7703_v41 = vmul.f32 0.70710677, %v7694_v62 }
 0x1d5   : > { %6065 = vpow2.f32 %v4385_v10  ;;  %v7705_v9 = vmul.f32 0.5, %v3649_v24  ;;  %v3844_v40 = vmul.f32 0.3275911, %v3812_v21  ;;  %v7708_v37 = vmul.f32 0.70710677, %v7699_v31 }
 0x1d6   : > { %6067 = vpow2.f32 %v4383_v43  ;;  %v4324_v52 = vsub.f32 0.0, %v3812_v21  ;;  %v3811_v3 = vand.u32 2147483647, %v7703_v41  ;;  %v7712_v47 = vadd.f32 %v7654_v35, %v3614_v45 }
 0x1d7   : > { %v7715_v15 = vsel %vm3746_vm4, 1.0, %v8664_v36  ;;  %6069 = vpow2.f32 %v4389_v33  ;;  %v7718_v24 = vsel %vm3745_vm5, 1.0, %v8664_v36  ;;  %v7720_v59 = vadd.f32 1.0, %v3844_v40 }
 0x1d8   : > { %v4387_v49 = vmul.f32 1.442695, %v4353_v34  ;;  %v3843_v57 = vmul.f32 0.3275911, %v3811_v3  ;;  %v3227_v26 = vadd.f32 %v5912_v19, %v7570_v0  ;;  %vm3748_vm6 = vcmp.ge.f32.partialorder %v3716_v6, 0.0  ;;  %v5962_v19 = vpop.f32.mrf.mxu0 }
 0x1d9   : > { %6071 = vrcp.f32 %v7720_v59  ;;  %v4323_v16 = vsub.f32 0.0, %v3811_v3  ;;  %v3814_v10 = vand.u32 2147483647, %v7708_v37  ;;  %v4356_v43 = vmul.f32 %v4324_v52, %v3812_v21 }
 0x1da   : > { %v6058_v20 = vpop.eup %6057  ;;  %v7726_v45 = vadd.f32 1.0, %v3843_v57  ;;  %v7729_v33 = vmul.f32 0.70710677, %v7712_v47  ;;  %v7732_v34 = vmul.f32 0.5, %v3652_v25  ;;  %v7738_v2 = vsel %vm3748_vm6, 1.0, %v8766_v48 }
 0x1db   : > { %v3936_v56 = vmul.f32 %v6058_v20, %v7664_v32  ;;  %v3846_v40 = vmul.f32 0.3275911, %v3814_v10  ;;  %v4326_v0 = vsub.f32 0.0, %v3814_v10  ;;  %v3617_v21 = vadd.f32 %v5962_v19, %v3227_v26 }
 0x1dc   : > { %v6060_v7 = vpop.eup %6059  ;;  %6073 = vrcp.f32 %v7726_v45  ;;  %v4355_v57 = vmul.f32 %v4323_v16, %v3811_v3  ;;  %v4393_v4 = vmul.f32 1.442695, %v4356_v43  ;;  %v3099_v16 = vpop.f32.mrf.mxu1  ;;  %vm3747_vm7 = vcmp.ge.f32.partialorder %v7703_v41, 0.0 }
 0x1dd   : > { %v3968_v12 = vsub.f32 2.0, %v3936_v56  ;;  %v3935_v32 = vmul.f32 %v6060_v7, %v7669_v53  ;;  %v7742_v53 = vadd.f32 1.0, %v3846_v40  ;;  %6075 = vpow2.f32 %v4387_v49 }
 0x1de   : > { %v6062_v36 = vpop.eup %6061  ;;  %v4358_v54 = vmul.f32 %v4326_v0, %v3814_v10  ;;  %v4391_v49 = vmul.f32 1.442695, %v4355_v57  ;;  %v7754_v43 = vadd.f32 %v7654_v35, %v3617_v21  ;;  %vm3750_vm8 = vcmp.ge.f32.partialorder %v7708_v37, 0.0 }
 0x1df   : > { %v7734_v11 = vmul.f32 %v6058_v20, %v3968_v12  ;;  %v3967_v52 = vsub.f32 2.0, %v3935_v32  ;;  %v3938_v56 = vmul.f32 %v6062_v36, %v7680_v46  ;;  %v3813_v20 = vand.u32 2147483647, %v7729_v33 }
 0x1e0   : > { %6077 = vrcp.f32 %v7742_v53  ;;  %v4397_v1 = vmul.f32 1.442695, %v4358_v54  ;;  %vm3749_vm9 = vcmp.ge.f32.partialorder %v7729_v33, 0.0 }
 0x1e1   : > { %v4032_v25 = vmul.f32 1.0614054, %v7734_v11  ;;  %v6064_v12 = vpop.eup %6063  ;;  %v7746_v44 = vmul.f32 %v6060_v7, %v3967_v52  ;;  %v3970_v6 = vsub.f32 2.0, %v3938_v56  ;;  %v3845_v46 = vmul.f32 0.3275911, %v3813_v20 }
 0x1e2   : > { %v3937_v32 = vmul.f32 %v6064_v12, %v7686_v29  ;;  %v4325_v3 = vsub.f32 0.0, %v3813_v20  ;;  %v7756_v7 = vpop.eup %6065 }
 0x1e3   : > { %v4064_v26 = vadd.f32 -1.4531521, %v4032_v25  ;;  %v4031_v40 = vmul.f32 1.0614054, %v7746_v44  ;;  %v7751_v19 = vmul.f32 %v6062_v36, %v3970_v6  ;;  %v7759_v10 = vadd.f32 1.0, %v3845_v46  ;;  %v7761_v29 = vpop.eup %6067 }
 0x1e4   : > { %v3969_v56 = vsub.f32 2.0, %v3937_v32  ;;  %v4357_v0 = vmul.f32 %v4325_v3, %v3813_v20  ;;  %v3226_v36 = vadd.f32 %v3099_v16, %v7573_v5  ;;  %v7765_v57 = vpop.eup %6069  ;;  %v7772_v20 = vmul.f32 0.70710677, %v7754_v43  ;;  %v3489_v3 = vpop.f32.mrf.mxu0 }
 0x1e5   : > { %v4096_v52 = vmul.f32 %v4064_v26, %v7734_v11  ;;  %v4063_v25 = vadd.f32 -1.4531521, %v4031_v40  ;;  %v4034_v38 = vmul.f32 1.0614054, %v7751_v19  ;;  %6079 = vrcp.f32 %v7759_v10 }
 0x1e6   : > { %v7767_v6 = vmul.f32 %v6064_v12, %v3969_v56  ;;  %v4395_v26 = vmul.f32 1.442695, %v4357_v0  ;;  %6081 = vpow2.f32 %v4393_v4  ;;  %v6072_v40 = vpop.eup %6071  ;;  %v3616_v16 = vadd.f32 %v3489_v3, %v3226_v36 }
 0x1e7   : > { %v4128_v21 = vadd.f32 1.4214138, %v4096_v52  ;;  %v4095_v32 = vmul.f32 %v4063_v25, %v7746_v44  ;;  %v4066_v46 = vadd.f32 -1.4531521, %v4034_v38  ;;  %6083 = vpow2.f32 %v4391_v49 }
 0x1e8   : > { %v4033_v5 = vmul.f32 1.0614054, %v7767_v6  ;;  %v3940_v56 = vmul.f32 %v6072_v40, %v7720_v59  ;;  %6085 = vpow2.f32 %v4397_v1  ;;  %v7779_v4 = vmul.f32 0.5, %v7694_v62 }
 0x1e9   : > { %v4160_v54 = vmul.f32 %v4128_v21, %v7734_v11  ;;  %v4127_v12 = vadd.f32 1.4214138, %v4095_v32  ;;  %v4098_v52 = vmul.f32 %v4066_v46, %v7751_v19  ;;  %6087 = vpow2.f32 %v4395_v26  ;;  %v6074_v25 = vpop.eup %6073 }
 0x1ea   : > { %v4065_v38 = vadd.f32 -1.4531521, %v4033_v5  ;;  %v3972_v60 = vsub.f32 2.0, %v3940_v56  ;;  %v7783_v49 = vand.u32 2147483647, %v7772_v20  ;;  %v3939_v1 = vmul.f32 %v6074_v25, %v7726_v45  ;;  %v6076_v62 = vpop.eup %6075 }
 0x1eb   : > { %v4192_v0 = vadd.f32 -0.28449672, %v4160_v54  ;;  %v4159_v42 = vmul.f32 %v4127_v12, %v7746_v44  ;;  %v4130_v21 = vadd.f32 1.4214138, %v4098_v52  ;;  %v7789_v59 = vadd.f32 %v7654_v35, %v3616_v16 }
 0x1ec   : > { %v4097_v32 = vmul.f32 %v4065_v38, %v7767_v6  ;;  %v7792_v3 = vmul.f32 %v6072_v40, %v3972_v60  ;;  %v3848_v54 = vmul.f32 0.3275911, %v7783_v49  ;;  %v3971_v56 = vsub.f32 2.0, %v3939_v1 }
 0x1ed   : > { %v4224_v36 = vmul.f32 %v4192_v0, %v7734_v11  ;;  %v4191_v46 = vadd.f32 -0.28449672, %v4159_v42  ;;  %v4162_v26 = vmul.f32 %v4130_v21, %v7751_v19  ;;  %v6078_v5 = vpop.eup %6077  ;;  %vm3752_vm10 = vcmp.ge.f32.partialorder %v7772_v20, 0.0 }
 0x1ee   : > { %v4129_v52 = vadd.f32 1.4214138, %v4097_v32  ;;  %v4036_v16 = vmul.f32 1.0614054, %v7792_v3  ;;  %v3942_v42 = vmul.f32 %v6078_v5, %v7742_v53  ;;  %v7801_v40 = vmul.f32 %v6074_v25, %v3971_v56 }
 0x1ef   : > { %v4256_v12 = vadd.f32 0.2548296, %v4224_v36  ;;  %v4223_v38 = vmul.f32 %v4191_v46, %v7746_v44  ;;  %v4194_v45 = vadd.f32 -0.28449672, %v4162_v26  ;;  %v7803_v51 = vadd.f32 1.0, %v3848_v54 }
 0x1f0   : > { %v4161_v60 = vmul.f32 %v4129_v52, %v7767_v6  ;;  %v4068_v1 = vadd.f32 -1.4531521, %v4036_v16  ;;  %v3974_v0 = vsub.f32 2.0, %v3942_v42  ;;  %v4035_v14 = vmul.f32 1.0614054, %v7801_v40 }
 0x1f1   : > { %v4288_v21 = vmul.f32 %v4256_v12, %v7734_v11  ;;  %v4255_v36 = vadd.f32 0.2548296, %v4223_v38  ;;  %v4226_v32 = vmul.f32 %v4194_v45, %v7751_v19  ;;  %6089 = vrcp.f32 %v7803_v51 }
 0x1f2   : > { %v4193_v26 = vadd.f32 -0.28449672, %v4161_v60  ;;  %v6080_v53 = vpop.eup %6079  ;;  %v4100_v54 = vmul.f32 %v4068_v1, %v7792_v3  ;;  %v7812_v12 = vmul.f32 %v6078_v5, %v3974_v0  ;;  %v4067_v38 = vadd.f32 -1.4531521, %v4035_v14 }
 0x1f3   : > { %v4448_v46 = vmul.f32 %v7756_v7, %v4288_v21  ;;  %v4287_v11 = vmul.f32 %v4255_v36, %v7746_v44  ;;  %v4258_v25 = vadd.f32 0.2548296, %v4226_v32  ;;  %v7814_v52 = vpop.eup %6081  ;;  %v3941_v45 = vmul.f32 %v6080_v53, %v7759_v10 }
 0x1f4   : > { %v4225_v7 = vmul.f32 %v4193_v26, %v7767_v6  ;;  %v7818_v16 = vpop.eup %6083  ;;  %v4132_v44 = vadd.f32 1.4214138, %v4100_v54  ;;  %v4038_v60 = vmul.f32 1.0614054, %v7812_v12  ;;  %v4099_v14 = vmul.f32 %v4067_v38, %v7801_v40 }
 0x1f5   : > { %v4480_v56 = vsub.f32 1.0, %v4448_v46  ;;  %v4447_v42 = vmul.f32 %v7761_v29, %v4287_v11  ;;  %v4290_v21 = vmul.f32 %v4258_v25, %v7751_v19  ;;  %v7823_v36 = vpop.eup %6085  ;;  %v3973_v32 = vsub.f32 2.0, %v3941_v45 }
 0x1f6   : > { %v4257_v0 = vadd.f32 0.2548296, %v4225_v7  ;;  %v7829_v10 = vpop.eup %6087  ;;  %v4164_v19 = vmul.f32 %v4132_v44, %v7792_v3  ;;  %v4070_v46 = vadd.f32 -1.4531521, %v4038_v60  ;;  %v4131_v25 = vadd.f32 1.4214138, %v4099_v14 }
 0x1f7   : > { %v4512_v5 = vmul.f32 %v4480_v56, %v7675_v58  ;;  %v4479_v1 = vsub.f32 1.0, %v4447_v42  ;;  %v4450_v29 = vmul.f32 %v7765_v57, %v4290_v21  ;;  %v7834_v54 = vmul.f32 %v6080_v53, %v3973_v32 }
 0x1f8   : > { %v4289_v11 = vmul.f32 %v4257_v0, %v7767_v6  ;;  %v4196_v7 = vadd.f32 -0.28449672, %v4164_v19  ;;  %v4102_v38 = vmul.f32 %v4070_v46, %v7812_v12  ;;  %v4163_v57 = vmul.f32 %v4131_v25, %v7801_v40 }
 0x1f9   : > { %v4544_v26 = vadd.f32 1.0, %v4512_v5  ;;  %v4511_v58 = vmul.f32 %v4479_v1, %v7690_v39  ;;  %v4482_v56 = vsub.f32 1.0, %v4450_v29  ;;  %v4037_v21 = vmul.f32 1.0614054, %v7834_v54  ;;  %v5915_v5 = vpop.f32.mrf.mxu1 }
 0x1fa   : > { %v4449_v42 = vmul.f32 %v6076_v62, %v4289_v11  ;;  %v4228_v6 = vmul.f32 %v4196_v7, %v7792_v3  ;;  %v4134_v53 = vadd.f32 1.4214138, %v4102_v38  ;;  %v4195_v0 = vadd.f32 -0.28449672, %v4163_v57 }
 0x1fb   : > { %v4576_v45 = vmul.f32 %v4544_v26, %v7671_v61  ;;  %v4543_v44 = vadd.f32 1.0, %v4511_v58  ;;  %v4514_v60 = vmul.f32 %v4482_v56, %v7715_v15  ;;  %v4069_v61 = vadd.f32 -1.4531521, %v4037_v21 }
 0x1fc   : > { %v4481_v39 = vsub.f32 1.0, %v4449_v42  ;;  %v8767_v62 = vsub.f32 0.0, %v7783_v49  ;;  %v4260_v15 = vadd.f32 0.2548296, %v4228_v6  ;;  %v4166_v29 = vmul.f32 %v4134_v53, %v7812_v12  ;;  %v3109_v53 = vpop.f32.mrf.mxu1 }
 0x1fd   : > { %4608 = vst [vmem:[%s7843_s9 + $0x8] sm:$0xff] %v4576_v45  ;;  %v4575_v32 = vmul.f32 %v4543_v44, %v7677_v50  ;;  %v4546_v1 = vadd.f32 1.0, %v4514_v60  ;;  %v4227_v46 = vmul.f32 %v4195_v0, %v7801_v40  ;;  %v4101_v26 = vmul.f32 %v4069_v61, %v7834_v54 }
 0x1fe   : > { %v4360_v14 = vmul.f32 %v8767_v62, %v7783_v49  ;;  %v4513_v19 = vmul.f32 %v4481_v39, %v7718_v24  ;;  %v3229_v11 = vadd.f32 %v5915_v5, %v7576_v18  ;;  %v6090_v25 = vpop.eup %6089  ;;  %v4292_v49 = vmul.f32 %v4260_v15, %v7792_v3 }
 0x1ff   : > { %4607 = vst [vmem:[%s7843_s9] sm:$0xff] %v4575_v32  ;;  %v4578_v58 = vmul.f32 %v4546_v1, %v7696_v23  ;;  %v4198_v50 = vadd.f32 -0.28449672, %v4166_v29  ;;  %v7859_v56 = vmul.f32 0.70710677, %v7789_v59  ;;  %v4259_v38 = vadd.f32 0.2548296, %v4227_v46 }
 0x200   : > { %v4545_v7 = vadd.f32 1.0, %v4513_v19  ;;  %v4133_v45 = vadd.f32 1.4214138, %v4101_v26  ;;  %v3944_v24 = vmul.f32 %v6090_v25, %v7803_v51  ;;  %v4452_v42 = vmul.f32 %v7814_v52, %v4292_v49  ;;  %v5965_v52 = vpop.f32.mrf.mxu0 }
 0x201   : > { %4610 = vst [vmem:[%s7843_s9 + $0x18] sm:$0xff] %v4578_v58  ;;  %v4230_v18 = vmul.f32 %v4198_v50, %v7812_v12  ;;  %v4401_v23 = vmul.f32 1.442695, %v4360_v14  ;;  %v4291_v57 = vmul.f32 %v4259_v38, %v7801_v40  ;;  %v7871_v6 = vand.u32 2147483647, %v7859_v56 }
 0x202   : > { %v4577_v3 = vmul.f32 %v4545_v7, %v7705_v9  ;;  %v4165_v21 = vmul.f32 %v4133_v45, %v7834_v54  ;;  %v3976_v44 = vsub.f32 2.0, %v3944_v24  ;;  %v4484_v60 = vsub.f32 1.0, %v4452_v42  ;;  %v3499_v49 = vpop.f32.mrf.mxu0 }
 0x203   : > { %v4262_v51 = vadd.f32 0.2548296, %v4230_v18  ;;  %v4451_v5 = vmul.f32 %v7818_v16, %v4291_v57  ;;  %v3619_v9 = vadd.f32 %v5965_v52, %v3229_v11  ;;  %v3779_v61 = vsel %vm3747_vm7, 1.0, %v8766_v48 }
 0x204   : > { %4609 = vst [vmem:[%s7843_s9 + $0x10] sm:$0xff] %v4577_v3  ;;  %v4197_v39 = vadd.f32 -0.28449672, %v4165_v21  ;;  %v7875_v0 = vmul.f32 %v6090_v25, %v3976_v44  ;;  %v4516_v40 = vmul.f32 %v4484_v60, %v7738_v2  ;;  %v3847_v14 = vmul.f32 0.3275911, %v7871_v6 }
 0x205   : > { %v4294_v62 = vmul.f32 %v4262_v51, %v7812_v12  ;;  %v4483_v32 = vsub.f32 1.0, %v4451_v5  ;;  %v7886_v16 = vadd.f32 %v7654_v35, %v3619_v9  ;;  %v3782_v2 = vsel %vm3750_vm8, 1.0, %v8766_v48  ;;  %v5918_v12 = vpop.f32.mrf.mxu1 }
 0x206   : > { %v4229_v1 = vmul.f32 %v4197_v39, %v7834_v54  ;;  %v4040_v15 = vmul.f32 1.0614054, %v7875_v0  ;;  %v4548_v29 = vadd.f32 1.0, %v4516_v40  ;;  %v7892_v19 = vadd.f32 1.0, %v3847_v14 }
 0x207   : > { %v4454_v41 = vmul.f32 %v7823_v36, %v4294_v62  ;;  %v4515_v46 = vmul.f32 %v4483_v32, %v3779_v61  ;;  %6091 = vpow2.f32 %v4401_v23  ;;  %v7900_v7 = vmul.f32 0.70710677, %v7886_v16  ;;  %v3119_v24 = vpop.f32.mrf.mxu1 }
 0x208   : > { %v4261_v26 = vadd.f32 0.2548296, %v4229_v1  ;;  %v4072_v11 = vadd.f32 -1.4531521, %v4040_v15  ;;  %v4580_v25 = vmul.f32 %v4548_v29, %v7732_v34  ;;  %6093 = vrcp.f32 %v7892_v19 }
 0x209   : > { %v4486_v58 = vsub.f32 1.0, %v4454_v41  ;;  %v4547_v37 = vadd.f32 1.0, %v4515_v46  ;;  %v3228_v45 = vadd.f32 %v3109_v53, %v7579_v63  ;;  %v3231_v34 = vadd.f32 %v5918_v12, %v7582_v22  ;;  %v5968_v63 = vpop.f32.mrf.mxu0  ;;  %v5921_v29 = vpop.f32.mrf.mxu1 }
 0x20a   : > { %v4293_v50 = vmul.f32 %v4261_v26, %v7834_v54  ;;  %v4104_v36 = vmul.f32 %v4072_v11, %v7875_v0  ;;  %4612 = vst [vmem:[%s7843_s9 + $0x28] sm:$0xff] %v4580_v25  ;;  %v3686_v18 = vmul.f32 0.5, %v7699_v31  ;;  %v3781_v57 = vsel %vm3749_vm9, 1.0, %v8766_v48 }
 0x20b   : > { %v4518_v38 = vmul.f32 %v4486_v58, %v3782_v2  ;;  %v4579_v42 = vmul.f32 %v4547_v37, %v7779_v4  ;;  %v3818_v21 = vand.u32 2147483647, %v7900_v7  ;;  %v3618_v44 = vadd.f32 %v3499_v49, %v3228_v45 }
 0x20c   : > { %v4453_v23 = vmul.f32 %v7829_v10, %v4293_v50  ;;  %v4136_v54 = vadd.f32 1.4214138, %v4104_v36  ;;  %v3621_v4 = vadd.f32 %v5968_v63, %v3231_v34  ;;  %v3230_v31 = vadd.f32 %v3119_v24, %v7585_v13  ;;  %v3509_v13 = vpop.f32.mrf.mxu0 }
 0x20d   : > { %v4550_v3 = vadd.f32 1.0, %v4518_v38  ;;  %4611 = vst [vmem:[%s7843_s9 + $0x20] sm:$0xff] %v4579_v42  ;;  %v4327_v10 = vsub.f32 0.0, %v7871_v6  ;;  %v3850_v52 = vmul.f32 0.3275911, %v3818_v21  ;;  %v3657_v53 = vadd.f32 %v7654_v35, %v3618_v44 }
 0x20e   : > { %v4485_v22 = vsub.f32 1.0, %v4453_v23  ;;  %v4168_v60 = vmul.f32 %v4136_v54, %v7875_v0  ;;  %v7918_v39 = vadd.f32 %v7654_v35, %v3621_v4  ;;  %v3685_v9 = vmul.f32 0.5, %v7712_v47  ;;  %v5971_v24 = vpop.f32.mrf.mxu0 }
 0x20f   : > { %v4582_v51 = vmul.f32 %v4550_v3, %v3686_v18  ;;  %v7923_v40 = vadd.f32 1.0, %v3850_v52  ;;  %v7925_v61 = vmul.f32 0.70710677, %v3657_v53  ;;  %v3620_v1 = vadd.f32 %v3509_v13, %v3230_v31 }
 0x210   : > { %v4517_v33 = vmul.f32 %v4485_v22, %v3781_v57  ;;  %v4200_v5 = vadd.f32 -0.28449672, %v4168_v60  ;;  %v7929_v32 = vmul.f32 0.70710677, %v7918_v39  ;;  %v4359_v15 = vmul.f32 %v4327_v10, %v7871_v6  ;;  %v3519_v60 = vpop.f32.mrf.mxu0 }
 0x211   : > { %4614 = vst [vmem:[%s7843_s9 + $0x38] sm:$0xff] %v4582_v51  ;;  %6095 = vrcp.f32 %v7923_v40  ;;  %v7934_v47 = vand.u32 2147483647, %v7925_v61  ;;  %v3688_v46 = vmul.f32 0.5, %v7754_v43  ;;  %v3784_v26 = vsel %vm3752_vm10, 1.0, %v8766_v48 }
 0x212   : > { %v4549_v62 = vadd.f32 1.0, %v4517_v33  ;;  %v4232_v14 = vmul.f32 %v4200_v5, %v7875_v0  ;;  %vm3751_vm11 = vcmp.ge.f32.partialorder %v7859_v56, 0.0  ;;  %v3820_v58 = vand.u32 2147483647, %v7929_v32  ;;  %v3129_v56 = vpop.f32.mrf.mxu1 }
 0x213   : > { %v3849_v11 = vmul.f32 0.3275911, %v7934_v47  ;;  %v7946_v49 = vadd.f32 %v7654_v35, %v3620_v1  ;;  %v3233_v37 = vadd.f32 %v5921_v29, %v7588_v28  ;;  %v4399_v50 = vmul.f32 1.442695, %v4359_v15  ;;  %v5974_v15 = vpop.f32.mrf.mxu0 }
 0x214   : > { %v4581_v2 = vmul.f32 %v4549_v62, %v3685_v9  ;;  %v4264_v41 = vadd.f32 0.2548296, %v4232_v14  ;;  %v6092_v12 = vpop.eup %6091  ;;  %v4330_v20 = vsub.f32 0.0, %v3818_v21  ;;  %v7953_v45 = vmul.f32 0.5, %v7789_v59  ;;  %v5924_v44 = vpop.f32.mrf.mxu1 }
 0x215   : > { %v6094_v6 = vpop.eup %6093  ;;  %v7950_v36 = vadd.f32 1.0, %v3849_v11  ;;  %v3852_v34 = vmul.f32 0.3275911, %v3820_v58  ;;  %vm3754_vm12 = vcmp.ge.f32.partialorder %v7900_v7, 0.0  ;;  %v7961_v28 = vmul.f32 0.70710677, %v7946_v49 }
 0x216   : > { %4613 = vst [vmem:[%s7843_s9 + $0x30] sm:$0xff] %v4581_v2  ;;  %v4296_v25 = vmul.f32 %v4264_v41, %v7875_v0  ;;  %v3943_v43 = vmul.f32 %v6094_v6, %v7892_v19  ;;  %v7956_v0 = vsel %vm3751_vm11, 1.0, %v8766_v48  ;;  %v3623_v23 = vadd.f32 %v5971_v24, %v3233_v37 }
 0x217   : > { %6097 = vrcp.f32 %v7950_v36  ;;  %v7963_v18 = vadd.f32 1.0, %v3852_v34  ;;  %v3232_v59 = vadd.f32 %v3129_v56, %v7591_v8  ;;  %v4362_v3 = vmul.f32 %v4330_v20, %v3818_v21 }
 0x218   : > { %v4456_v38 = vmul.f32 %v6092_v12, %v4296_v25  ;;  %v3975_v42 = vsub.f32 2.0, %v3943_v43  ;;  %6099 = vpow2.f32 %v4399_v50  ;;  %v3819_v57 = vand.u32 2147483647, %v7961_v28 }
 0x219   : > { %v7970_v7 = vmul.f32 0.5, %v7886_v16  ;;  %v7973_v22 = vsel %vm3754_vm12, 1.0, %v8766_v48  ;;  %6101 = vrcp.f32 %v7963_v18  ;;  %v7977_v8 = vmul.f32 0.5, %v3657_v53 }
 0x21a   : > { %v4488_v19 = vsub.f32 1.0, %v4456_v38  ;;  %v7966_v54 = vmul.f32 %v6094_v6, %v3975_v42  ;;  %v3851_v31 = vmul.f32 0.3275911, %v3819_v57  ;;  %v7980_v21 = vadd.f32 %v7654_v35, %v3623_v23  ;;  %v3139_v23 = vpop.f32.mrf.mxu1 }
 0x21b   : > { %v4329_v10 = vsub.f32 0.0, %v7934_v47  ;;  %v3622_v52 = vadd.f32 %v3519_v60, %v3232_v59  ;;  %v3235_v16 = vadd.f32 %v5924_v44, %v7594_v27  ;;  %v4405_v5 = vmul.f32 1.442695, %v4362_v3 }
 0x21c   : > { %v4520_v63 = vmul.f32 %v4488_v19, %v3784_v26  ;;  %v4039_v4 = vmul.f32 1.0614054, %v7966_v54  ;;  %vm3753_vm13 = vcmp.ge.f32.partialorder %v7925_v61, 0.0  ;;  %v7985_v9 = vadd.f32 1.0, %v3851_v31 }
 0x21d   : > { %v4332_v62 = vsub.f32 0.0, %v3820_v58  ;;  %v7988_v14 = vmul.f32 0.70710677, %v7980_v21  ;;  %v7991_v1 = vadd.f32 %v7654_v35, %v3622_v52  ;;  %v3625_v2 = vadd.f32 %v5974_v15, %v3235_v16  ;;  %v3529_v15 = vpop.f32.mrf.mxu0 }
 0x21e   : > { %v4552_v51 = vadd.f32 1.0, %v4520_v63  ;;  %v4071_v33 = vadd.f32 -1.4531521, %v4039_v4  ;;  %v6096_v13 = vpop.eup %6095  ;;  %6103 = vrcp.f32 %v7985_v9  ;;  %v4361_v41 = vmul.f32 %v4329_v10, %v7934_v47 }
 0x21f   : > { %v3946_v27 = vmul.f32 %v6096_v13, %v7923_v40  ;;  %v7999_v12 = vmul.f32 0.5, %v7918_v39  ;;  %v8003_v26 = vmul.f32 0.70710677, %v7991_v1  ;;  %v8008_v40 = vsel %vm3753_vm13, 1.0, %v8766_v48 }
 0x220   : > { %v4584_v53 = vmul.f32 %v4552_v51, %v3688_v46  ;;  %v4103_v29 = vmul.f32 %v4071_v33, %v7966_v54  ;;  %v3822_v46 = vand.u32 2147483647, %v7988_v14  ;;  %vm3756_vm14 = vcmp.ge.f32.partialorder %v7929_v32, 0.0 }
 0x221   : > { %v3978_v6 = vsub.f32 2.0, %v3946_v27  ;;  %v4364_v25 = vmul.f32 %v4332_v62, %v3820_v58  ;;  %v4331_v37 = vsub.f32 0.0, %v3819_v57  ;;  %v8012_v39 = vand.u32 2147483647, %v8003_v26 }
 0x222   : > { %4616 = vst [vmem:[%s7843_s9 + $0x48] sm:$0xff] %v4584_v53  ;;  %v4135_v11 = vadd.f32 1.4214138, %v4103_v29  ;;  %v3854_v47 = vmul.f32 0.3275911, %v3822_v46  ;;  %6105 = vpow2.f32 %v4405_v5  ;;  %v8018_v20 = vadd.f32 %v7654_v35, %v3625_v2 }
 0x223   : > { %v8015_v50 = vmul.f32 %v6096_v13, %v3978_v6  ;;  %v4403_v61 = vmul.f32 1.442695, %v4361_v41  ;;  %v8021_v38 = vsel %vm3756_vm14, 1.0, %v8766_v48  ;;  %v3853_v58 = vmul.f32 0.3275911, %v8012_v39 }
 0x224   : > { %v4167_v43 = vmul.f32 %v4135_v11, %v7966_v54  ;;  %v6098_v56 = vpop.eup %6097  ;;  %v8023_v32 = vadd.f32 1.0, %v3854_v47  ;;  %v8029_v19 = vmul.f32 0.5, %v7946_v49  ;;  %v4409_v3 = vmul.f32 1.442695, %v4364_v25 }
 0x225   : > { %v4042_v24 = vmul.f32 1.0614054, %v8015_v50  ;;  %v3945_v42 = vmul.f32 %v6098_v56, %v7950_v36  ;;  %v6100_v59 = vpop.eup %6099  ;;  %v4363_v44 = vmul.f32 %v4331_v37, %v3819_v57  ;;  %v8032_v63 = vadd.f32 1.0, %v3853_v58 }
 0x226   : > { %v4199_v34 = vadd.f32 -0.28449672, %v4167_v43  ;;  %6107 = vrcp.f32 %v8023_v32  ;;  %v6102_v60 = vpop.eup %6101  ;;  %v8036_v10 = vmul.f32 0.70710677, %v8018_v20  ;;  %v4334_v36 = vsub.f32 0.0, %v3822_v46 }
 0x227   : > { %v4074_v31 = vadd.f32 -1.4531521, %v4042_v24  ;;  %v3977_v51 = vsub.f32 2.0, %v3945_v42  ;;  %6109 = vpow2.f32 %v4403_v61  ;;  %v3948_v49 = vmul.f32 %v6102_v60, %v7963_v18 }
 0x228   : > { %v4231_v4 = vmul.f32 %v4199_v34, %v7966_v54  ;;  %v3234_v52 = vadd.f32 %v3139_v23, %v7597_v30  ;;  %6111 = vrcp.f32 %v8032_v63  ;;  %vm3755_vm15 = vcmp.ge.f32.partialorder %v7961_v28, 0.0 }
 0x229   : > { %v4106_v57 = vmul.f32 %v4074_v31, %v8015_v50  ;;  %v8041_v33 = vmul.f32 %v6098_v56, %v3977_v51  ;;  %v3980_v5 = vsub.f32 2.0, %v3948_v49  ;;  %6113 = vpow2.f32 %v4409_v3 }
 0x22a   : > { %v4263_v16 = vadd.f32 0.2548296, %v4231_v4  ;;  %v8046_v13 = vand.u32 2147483647, %v8036_v10  ;;  %v4407_v30 = vmul.f32 1.442695, %v4363_v44  ;;  %v4366_v2 = vmul.f32 %v4334_v36, %v3822_v46 }
 0x22b   : > { %v4138_v18 = vadd.f32 1.4214138, %v4106_v57  ;;  %v4041_v62 = vmul.f32 1.0614054, %v8041_v33  ;;  %v6104_v29 = vpop.eup %6103  ;;  %v8050_v27 = vmul.f32 %v6102_v60, %v3980_v5  ;;  %v3624_v11 = vadd.f32 %v3529_v15, %v3234_v52  ;;  %v5927_v15 = vpop.f32.mrf.mxu1 }
 0x22c   : > { %v4295_v53 = vmul.f32 %v4263_v16, %v7966_v54  ;;  %v3856_v41 = vmul.f32 0.3275911, %v8046_v13  ;;  %v3947_v47 = vmul.f32 %v6104_v29, %v7985_v9  ;;  %v4333_v43 = vsub.f32 0.0, %v8012_v39 }
 0x22d   : > { %v4170_v25 = vmul.f32 %v4138_v18, %v8015_v50  ;;  %v4073_v37 = vadd.f32 -1.4531521, %v4041_v62  ;;  %v4044_v54 = vmul.f32 1.0614054, %v8050_v27  ;;  %v8060_v61 = vadd.f32 %v7654_v35, %v3624_v11 }
 0x22e   : > { %v4455_v6 = vmul.f32 %v6100_v59, %v4295_v53  ;;  %v8057_v56 = vadd.f32 1.0, %v3856_v41  ;;  %v3979_v24 = vsub.f32 2.0, %v3947_v47  ;;  %v8066_v9 = vsel %vm3755_vm15, 1.0, %v8766_v48 }
 0x22f   : > { %v4202_v46 = vadd.f32 -0.28449672, %v4170_v25  ;;  %v4105_v34 = vmul.f32 %v4073_v37, %v8041_v33  ;;  %v6106_v42 = vpop.eup %6105  ;;  %v4076_v23 = vadd.f32 -1.4531521, %v4044_v54  ;;  %v4413_v59 = vmul.f32 1.442695, %v4366_v2 }
 0x230   : > { %v4487_v58 = vsub.f32 1.0, %v4455_v6  ;;  %6115 = vrcp.f32 %v8057_v56  ;;  %v8071_v60 = vmul.f32 %v6104_v29, %v3979_v24  ;;  %v4365_v31 = vmul.f32 %v4333_v43, %v8012_v39 }
 0x231   : > { %v4234_v35 = vmul.f32 %v4202_v46, %v8015_v50  ;;  %v4137_v44 = vadd.f32 1.4214138, %v4105_v34  ;;  %v4108_v4 = vmul.f32 %v4076_v23, %v8050_v27  ;;  %6117 = vpow2.f32 %v4407_v30 }
 0x232   : > { %v4519_v3 = vmul.f32 %v4487_v58, %v7956_v0  ;;  %v8076_v51 = vmul.f32 0.70710677, %v8060_v61  ;;  %v4043_v0 = vmul.f32 1.0614054, %v8071_v60  ;;  %6119 = vpow2.f32 %v4413_v59 }
 0x233   : > { %v6108_v28 = vpop.eup %6107  ;;  %v4266_v36 = vadd.f32 0.2548296, %v4234_v35  ;;  %v4169_v52 = vmul.f32 %v4137_v44, %v8041_v33  ;;  %v4140_v16 = vadd.f32 1.4214138, %v4108_v4  ;;  %v4411_v11 = vmul.f32 1.442695, %v4365_v31 }
 0x234   : > { %v4551_v49 = vadd.f32 1.0, %v4519_v3  ;;  %v3950_v57 = vmul.f32 %v6108_v28, %v8023_v32  ;;  %v8082_v5 = vand.u32 2147483647, %v8076_v51  ;;  %v6110_v53 = vpop.eup %6109  ;;  %v4075_v30 = vadd.f32 -1.4531521, %v4043_v0 }
 0x235   : > { %v4298_v18 = vmul.f32 %v4266_v36, %v8015_v50  ;;  %v4201_v62 = vadd.f32 -0.28449672, %v4169_v52  ;;  %v6112_v29 = vpop.eup %6111  ;;  %v4172_v2 = vmul.f32 %v4140_v16, %v8050_v27  ;;  %v3237_v58 = vadd.f32 %v5927_v15, %v7600_v17  ;;  %v5977_v17 = vpop.f32.mrf.mxu0 }
 0x236   : > { %v4583_v39 = vmul.f32 %v4551_v49, %v7953_v45  ;;  %v3982_v41 = vsub.f32 2.0, %v3950_v57  ;;  %v3855_v6 = vmul.f32 0.3275911, %v8082_v5  ;;  %v6114_v32 = vpop.eup %6113  ;;  %v4107_v47 = vmul.f32 %v4075_v30, %v8071_v60 }
 0x237   : > { %v4458_v25 = vmul.f32 %v6106_v42, %v4298_v18  ;;  %v4233_v37 = vmul.f32 %v4201_v62, %v8041_v33  ;;  %v3949_v45 = vmul.f32 %v6112_v29, %v8032_v63  ;;  %v4204_v50 = vadd.f32 -0.28449672, %v4172_v2  ;;  %v3149_v62 = vpop.f32.mrf.mxu1 }
 0x238   : > { %4615 = vst [vmem:[%s7843_s9 + $0x40] sm:$0xff] %v4583_v39  ;;  %v8092_v54 = vmul.f32 %v6108_v28, %v3982_v41  ;;  %v8094_v43 = vadd.f32 1.0, %v3855_v6  ;;  %v4139_v24 = vadd.f32 1.4214138, %v4107_v47  ;;  %v4336_v3 = vsub.f32 0.0, %v8046_v13 }
 0x239   : > { %v4490_v46 = vsub.f32 1.0, %v4458_v25  ;;  %v4265_v34 = vadd.f32 0.2548296, %v4233_v37  ;;  %v3981_v23 = vsub.f32 2.0, %v3949_v45  ;;  %v4236_v59 = vmul.f32 %v4204_v50, %v8050_v27 }
 0x23a   : > { %v4046_v42 = vmul.f32 1.0614054, %v8092_v54  ;;  %6121 = vrcp.f32 %v8094_v43  ;;  %v4171_v44 = vmul.f32 %v4139_v24, %v8071_v60  ;;  %v3627_v49 = vadd.f32 %v5977_v17, %v3237_v58 }
 0x23b   : > { %v4522_v63 = vmul.f32 %v4490_v46, %v7973_v22  ;;  %v4297_v35 = vmul.f32 %v4265_v34, %v8041_v33  ;;  %v8104_v4 = vmul.f32 %v6112_v29, %v3981_v23  ;;  %v4268_v31 = vadd.f32 0.2548296, %v4236_v59 }
 0x23c   : > { %v4078_v28 = vadd.f32 -1.4531521, %v4046_v42  ;;  %6123 = vpow2.f32 %v4411_v11  ;;  %v4203_v16 = vadd.f32 -0.28449672, %v4171_v44  ;;  %v4368_v18 = vmul.f32 %v4336_v3, %v8046_v13 }
 0x23d   : > { %v6116_v36 = vpop.eup %6115  ;;  %v4554_v52 = vadd.f32 1.0, %v4522_v63  ;;  %v4457_v0 = vmul.f32 %v6110_v53, %v4297_v35  ;;  %v4045_v57 = vmul.f32 1.0614054, %v8104_v4  ;;  %v4300_v39 = vmul.f32 %v4268_v31, %v8050_v27  ;;  %v8116_v27 = vld [vmem:[%s8602_s2] ss:$0 sm:$0xff] }
 0x23e   : > { %v4110_v22 = vmul.f32 %v4078_v28, %v8092_v54  ;;  %v3952_v33 = vmul.f32 %v6116_v36, %v8057_v56  ;;  %v6118_v30 = vpop.eup %6117  ;;  %v4235_v2 = vmul.f32 %v4203_v16, %v8071_v60  ;;  %v8119_v56 = vadd.f32 %v8116_v27, %v3627_v49 }
 0x23f   : > { %v4586_v15 = vmul.f32 %v4554_v52, %v7970_v7  ;;  %v4489_v29 = vsub.f32 1.0, %v4457_v0  ;;  %v4077_v53 = vadd.f32 -1.4531521, %v4045_v57  ;;  %v4460_v41 = vmul.f32 %v6114_v32, %v4300_v39  ;;  %v6120_v13 = vpop.eup %6119 }
 0x240   : > { %v4142_v11 = vadd.f32 1.4214138, %v4110_v22  ;;  %v3984_v6 = vsub.f32 2.0, %v3952_v33  ;;  %v4267_v7 = vadd.f32 0.2548296, %v4235_v2  ;;  %v3236_v47 = vadd.f32 %v3149_v62, %v7603_v55  ;;  %v5930_v2 = vpop.f32.mrf.mxu1 }
 0x241   : > { %4618 = vst [vmem:[%s7843_s9 + $0x58] sm:$0xff] %v4586_v15  ;;  %v4521_v25 = vmul.f32 %v4489_v29, %v8008_v40  ;;  %v4109_v37 = vmul.f32 %v4077_v53, %v8104_v4  ;;  %v4492_v32 = vsub.f32 1.0, %v4460_v41  ;;  %v4417_v58 = vmul.f32 1.442695, %v4368_v18  ;;  %v3539_v40 = vpop.f32.mrf.mxu0 }
 0x242   : > { %v4174_v45 = vmul.f32 %v4142_v11, %v8092_v54  ;;  %v8126_v50 = vmul.f32 %v6116_v36, %v3984_v6  ;;  %v4299_v34 = vmul.f32 %v4267_v7, %v8071_v60  ;;  %v8130_v23 = vmul.f32 0.70710677, %v8119_v56 }
 0x243   : > { %v4553_v46 = vadd.f32 1.0, %v4521_v25  ;;  %v4141_v24 = vadd.f32 1.4214138, %v4109_v37  ;;  %v4524_v59 = vmul.f32 %v4492_v32, %v8021_v38  ;;  %v3626_v3 = vadd.f32 %v3539_v40, %v3236_v47 }
 0x244   : > { %v4206_v42 = vadd.f32 -0.28449672, %v4174_v45  ;;  %v4048_v55 = vmul.f32 1.0614054, %v8126_v50  ;;  %v4459_v35 = vmul.f32 %v6118_v30, %v4299_v34  ;;  %v4335_v17 = vsub.f32 0.0, %v8082_v5  ;;  %v5980_v45 = vpop.f32.mrf.mxu0 }
 0x245   : > { %v4585_v63 = vmul.f32 %v4553_v46, %v7977_v8  ;;  %v4173_v44 = vmul.f32 %v4141_v24, %v8104_v4  ;;  %v4556_v60 = vadd.f32 1.0, %v4524_v59  ;;  %6125 = vpow2.f32 %v4417_v58  ;;  %v3159_v58 = vpop.f32.mrf.mxu1  ;;  %v8768_v59 = vld [vmem:[#allocation16_spill] sm:$0xff] }
 0x246   : > { %v4238_v31 = vmul.f32 %v4206_v42, %v8092_v54  ;;  %v4080_v28 = vadd.f32 -1.4531521, %v4048_v55  ;;  %v4491_v38 = vsub.f32 1.0, %v4459_v35  ;;  %v8140_v52 = vand.u32 2147483647, %v8130_v23 }
 0x247   : > { %v6122_v49 = vpop.eup %6121  ;;  %4617 = vst [vmem:[%s7843_s9 + $0x50] sm:$0xff] %v4585_v63  ;;  %v4205_v36 = vadd.f32 -0.28449672, %v4173_v44  ;;  %v8143_v8 = vadd.f32 %v8116_v27, %v3626_v3  ;;  %v4588_v0 = vmul.f32 %v4556_v60, %v7999_v12  ;;  %v4367_v62 = vmul.f32 %v4335_v17, %v8082_v5  ;;  %v3549_v60 = vpop.f32.mrf.mxu0 }
 0x248   : > { %v4270_v16 = vadd.f32 0.2548296, %v4238_v31  ;;  %v4112_v57 = vmul.f32 %v4080_v28, %v8126_v50  ;;  %v3951_v39 = vmul.f32 %v6122_v49, %v8094_v43  ;;  %v4523_v33 = vmul.f32 %v4491_v38, %v8066_v9 }
 0x249   : > { %v6124_v22 = vpop.eup %6123  ;;  %v4237_v18 = vmul.f32 %v4205_v36, %v8104_v4  ;;  %v3858_v30 = vmul.f32 0.3275911, %v8140_v52  ;;  %4620 = vst [vmem:[%s7843_s9 + $0x68] sm:$0xff] %v4588_v0  ;;  %vm3758_vm0 = vcmp.ge.f32.partialorder %v7988_v14, 0.0  ;;  %vm3757_vm1 = vcmp.ge.f32.partialorder %v8003_v26, 0.0  ;;  %v8769_v14 = vld [vmem:[#allocation17_spill] sm:$0xff] }
 0x24a   : > { %v4302_v15 = vmul.f32 %v4270_v16, %v8092_v54  ;;  %v4144_v12 = vadd.f32 1.4214138, %v4112_v57  ;;  %v3983_v29 = vsub.f32 2.0, %v3951_v39  ;;  %v4555_v53 = vadd.f32 1.0, %v4523_v33 }
 0x24b   : > { %v4269_v43 = vadd.f32 0.2548296, %v4237_v18  ;;  %v8156_v9 = vadd.f32 1.0, %v3858_v30  ;;  %v8162_v6 = vmul.f32 0.70710677, %v8143_v8  ;;  %v3694_v37 = vmul.f32 0.5, %v7980_v21  ;;  %v5933_v18 = vpop.f32.mrf.mxu1 }
 0x24c   : > { %v4462_v41 = vmul.f32 %v6120_v13, %v4302_v15  ;;  %v4176_v5 = vmul.f32 %v4144_v12, %v8126_v50  ;;  %v8159_v11 = vmul.f32 %v6122_v49, %v3983_v29  ;;  %v4587_v54 = vmul.f32 %v4555_v53, %v8029_v19 }
 0x24d   : > { %v4301_v25 = vmul.f32 %v4269_v43, %v8104_v4  ;;  %v4415_v7 = vmul.f32 1.442695, %v4367_v62  ;;  %6127 = vrcp.f32 %v8156_v9  ;;  %v3790_v46 = vsel %vm3758_vm0, 1.0, %v8766_v48 }
 0x24e   : > { %v4494_v47 = vsub.f32 1.0, %v4462_v41  ;;  %v4208_v32 = vadd.f32 -0.28449672, %v4176_v5  ;;  %v4047_v13 = vmul.f32 1.0614054, %v8159_v11  ;;  %4619 = vst [vmem:[%s7843_s9 + $0x60] sm:$0xff] %v4587_v54  ;;  %v3239_v42 = vadd.f32 %v5930_v2, %v8768_v59  ;;  %v5983_v54 = vpop.f32.mrf.mxu0 }
 0x24f   : > { %v3789_v19 = vsel %vm3757_vm1, 1.0, %v8766_v48  ;;  %v4461_v4 = vmul.f32 %v6124_v22, %v4301_v25  ;;  %v8177_v34 = vand.u32 2147483647, %v8162_v6  ;;  %6129 = vpow2.f32 %v4415_v7  ;;  %v8770_v41 = vld [vmem:[#allocation18_spill] sm:$0xff]  ;;  %v3169_v25 = vpop.f32.mrf.mxu1 }
 0x250   : > { %v4526_v21 = vmul.f32 %v4494_v47, %v3790_v46  ;;  %v4240_v24 = vmul.f32 %v4208_v32, %v8126_v50  ;;  %v4079_v40 = vadd.f32 -1.4531521, %v4047_v13  ;;  %v3238_v63 = vadd.f32 %v3159_v58, %v8769_v14 }
 0x251   : > { %v4493_v55 = vsub.f32 1.0, %v4461_v4  ;;  %v3857_v3 = vmul.f32 0.3275911, %v8177_v34  ;;  %v3629_v17 = vadd.f32 %v5980_v45, %v3239_v42  ;;  %v3693_v39 = vmul.f32 0.5, %v7991_v1  ;;  %v3559_v42 = vpop.f32.mrf.mxu0 }
 0x252   : > { %v4558_v35 = vadd.f32 1.0, %v4526_v21  ;;  %v4272_v44 = vadd.f32 0.2548296, %v4240_v24  ;;  %v4111_v26 = vmul.f32 %v4079_v40, %v8159_v11  ;;  %v6126_v31 = vpop.eup %6125  ;;  %v3628_v38 = vadd.f32 %v3549_v60, %v3238_v63  ;;  %v8772_v60 = vld [vmem:[#allocation20_spill] sm:$0xff] }
 0x253   : > { %v4525_v28 = vmul.f32 %v4493_v55, %v3789_v19  ;;  %v8184_v49 = vadd.f32 1.0, %v3857_v3  ;;  %v8188_v57 = vadd.f32 %v8116_v27, %v3629_v17  ;;  %vm3760_vm2 = vcmp.ge.f32.partialorder %v8036_v10, 0.0 }
 0x254   : > { %v4590_v36 = vmul.f32 %v4558_v35, %v3694_v37  ;;  %v4304_v0 = vmul.f32 %v4272_v44, %v8126_v50  ;;  %v4143_v16 = vadd.f32 1.4214138, %v4111_v26  ;;  %v8193_v33 = vadd.f32 %v8116_v27, %v3628_v38  ;;  %v8771_v26 = vld [vmem:[#allocation19_spill] sm:$0xff] }
 0x255   : > { %v4557_v22 = vadd.f32 1.0, %v4525_v28  ;;  %6131 = vrcp.f32 %v8184_v49  ;;  %v8199_v30 = vmul.f32 0.70710677, %v8188_v57  ;;  %vm3759_vm3 = vcmp.ge.f32.partialorder %v8076_v51, 0.0  ;;  %v5936_v51 = vpop.f32.mrf.mxu1 }
 0x256   : > { %4622 = vst [vmem:[%s7843_s9 + $0x78] sm:$0xff] %v4590_v36  ;;  %v4464_v62 = vmul.f32 %v6126_v31, %v4304_v0  ;;  %v4175_v50 = vmul.f32 %v4143_v16, %v8159_v11  ;;  %v8202_v1 = vmul.f32 0.70710677, %v8193_v33  ;;  %v3792_v10 = vsel %vm3760_vm2, 1.0, %v8766_v48  ;;  %v5986_v36 = vpop.f32.mrf.mxu0 }
 0x257   : > { %v4589_v15 = vmul.f32 %v4557_v22, %v3693_v39  ;;  %v8206_v2 = vand.u32 2147483647, %v8199_v30  ;;  %v4338_v53 = vsub.f32 0.0, %v8140_v52  ;;  %v3241_v5 = vadd.f32 %v5933_v18, %v8770_v41 }
 0x258   : > { %v4496_v12 = vsub.f32 1.0, %v4464_v62  ;;  %v4207_v29 = vadd.f32 -0.28449672, %v4175_v50  ;;  %v8212_v43 = vand.u32 2147483647, %v8202_v1  ;;  %v3696_v37 = vmul.f32 0.5, %v8018_v20 }
 0x259   : > { %4621 = vst [vmem:[%s7843_s9 + $0x70] sm:$0xff] %v4589_v15  ;;  %v3860_v13 = vmul.f32 0.3275911, %v8206_v2  ;;  %v3695_v45 = vmul.f32 0.5, %v8060_v61  ;;  %v3791_v58 = vsel %vm3759_vm3, 1.0, %v8766_v48  ;;  %vm3762_vm4 = vcmp.ge.f32.partialorder %v8130_v23, 0.0 }
 0x25a   : > { %v6128_v7 = vpop.eup %6127  ;;  %v4528_v47 = vmul.f32 %v4496_v12, %v3792_v10  ;;  %v4239_v32 = vmul.f32 %v4207_v29, %v8159_v11  ;;  %v3859_v19 = vmul.f32 0.3275911, %v8212_v43  ;;  %v4370_v40 = vmul.f32 %v4338_v53, %v8140_v52 }
 0x25b   : > { %v3954_v46 = vmul.f32 %v6128_v7, %v8156_v9  ;;  %v8225_v20 = vadd.f32 1.0, %v3860_v13  ;;  %v3631_v61 = vadd.f32 %v5983_v54, %v3241_v5  ;;  %v4337_v14 = vsub.f32 0.0, %v8177_v34 }
 0x25c   : > { %v4560_v4 = vadd.f32 1.0, %v4528_v47  ;;  %v4271_v21 = vadd.f32 0.2548296, %v4239_v32  ;;  %v8228_v59 = vadd.f32 1.0, %v3859_v19  ;;  %v6130_v55 = vpop.eup %6129  ;;  %v8234_v63 = vmul.f32 0.5, %v8119_v56 }
 0x25d   : > { %v3986_v24 = vsub.f32 2.0, %v3954_v46  ;;  %6133 = vrcp.f32 %v8225_v20  ;;  %v8240_v52 = vadd.f32 %v8116_v27, %v3631_v61  ;;  %v3240_v17 = vadd.f32 %v3169_v25, %v8771_v26  ;;  %v3179_v25 = vpop.f32.mrf.mxu1 }
 0x25e   : > { %v4592_v3 = vmul.f32 %v4560_v4, %v3696_v37  ;;  %v4303_v9 = vmul.f32 %v4271_v21, %v8159_v11  ;;  %6135 = vrcp.f32 %v8228_v59  ;;  %v8246_v11 = vsel %vm3762_vm4, 1.0, %v8766_v48 }
 0x25f   : > { %v8236_v35 = vmul.f32 %v6128_v7, %v3986_v24  ;;  %v3243_v31 = vadd.f32 %v5936_v51, %v8772_v60  ;;  %v4421_v28 = vmul.f32 1.442695, %v4370_v40  ;;  %v8252_v38 = vmul.f32 0.70710677, %v8240_v52  ;;  %v8773_v24 = vld [vmem:[#allocation21_spill] sm:$0xff] }
 0x260   : > { %4624 = vst [vmem:[%s7843_s9 + $0x88] sm:$0xff] %v4592_v3  ;;  %v4463_v44 = vmul.f32 %v6130_v55, %v4303_v9  ;;  %v4369_v39 = vmul.f32 %v4337_v14, %v8177_v34  ;;  %v3630_v22 = vadd.f32 %v3559_v42, %v3240_v17  ;;  %v8256_v62 = vmul.f32 0.5, %v8143_v8  ;;  %v3569_v17 = vpop.f32.mrf.mxu0 }
 0x261   : > { %v4050_v56 = vmul.f32 1.0614054, %v8236_v35  ;;  %v3633_v18 = vadd.f32 %v5986_v36, %v3243_v31  ;;  %v3830_v15 = vand.u32 2147483647, %v8252_v38  ;;  %vm3761_vm5 = vcmp.ge.f32.partialorder %v8162_v6, 0.0 }
 0x262   : > { %v6132_v0 = vpop.eup %6131  ;;  %v4495_v16 = vsub.f32 1.0, %v4463_v44  ;;  %v8262_v29 = vadd.f32 %v8116_v27, %v3630_v22  ;;  %6137 = vpow2.f32 %v4421_v28  ;;  %v4419_v5 = vmul.f32 1.442695, %v4369_v39 }
 0x263   : > { %v4082_v23 = vadd.f32 -1.4531521, %v4050_v56  ;;  %v3953_v50 = vmul.f32 %v6132_v0, %v8184_v49  ;;  %v8265_v10 = vadd.f32 %v8116_v27, %v3633_v18  ;;  %v3862_v41 = vmul.f32 0.3275911, %v3830_v15 }
 0x264   : > { %v4527_v12 = vmul.f32 %v4495_v16, %v3791_v58  ;;  %v4340_v49 = vsub.f32 0.0, %v8206_v2  ;;  %v8270_v54 = vmul.f32 0.70710677, %v8262_v29  ;;  %v4339_v47 = vsub.f32 0.0, %v8212_v43 }
 0x265   : > { %v4114_v34 = vmul.f32 %v4082_v23, %v8236_v35  ;;  %v3985_v53 = vsub.f32 2.0, %v3953_v50  ;;  %v8275_v32 = vadd.f32 1.0, %v3862_v41  ;;  %v8280_v58 = vsel %vm3761_vm5, 1.0, %v8766_v48  ;;  %v5939_v41 = vpop.f32.mrf.mxu1 }
 0x266   : > { %v4559_v8 = vadd.f32 1.0, %v4527_v12  ;;  %v8283_v46 = vand.u32 2147483647, %v8270_v54  ;;  %v8286_v19 = vmul.f32 0.70710677, %v8265_v10  ;;  %v3242_v40 = vadd.f32 %v3179_v25, %v8773_v24 }
 0x267   : > { %v4146_v7 = vadd.f32 1.4214138, %v4114_v34  ;;  %v8272_v37 = vmul.f32 %v6132_v0, %v3985_v53  ;;  %6139 = vrcp.f32 %v8275_v32  ;;  %v8294_v6 = vmul.f32 0.5, %v8188_v57 }
 0x268   : > { %v4591_v13 = vmul.f32 %v4559_v8, %v3695_v45  ;;  %6141 = vpow2.f32 %v4419_v5  ;;  %v4372_v45 = vmul.f32 %v4340_v49, %v8206_v2  ;;  %v3861_v61 = vmul.f32 0.3275911, %v8283_v46 }
 0x269   : > { %v4178_v4 = vmul.f32 %v4146_v7, %v8236_v35  ;;  %v4049_v21 = vmul.f32 1.0614054, %v8272_v37  ;;  %vm3764_vm6 = vcmp.ge.f32.partialorder %v8199_v30, 0.0  ;;  %v4371_v3 = vmul.f32 %v4339_v47, %v8212_v43 }
 0x26a   : > { %4623 = vst [vmem:[%s7843_s9 + $0x80] sm:$0xff] %v4591_v13  ;;  %v6134_v42 = vpop.eup %6133  ;;  %v4342_v44 = vsub.f32 0.0, %v3830_v15  ;;  %v8301_v26 = vadd.f32 1.0, %v3861_v61  ;;  %v8304_v57 = vand.u32 2147483647, %v8286_v19  ;;  %v3632_v56 = vadd.f32 %v3569_v17, %v3242_v40  ;;  %v8774_v13 = vld [vmem:[#allocation22_spill] sm:$0xff] }
 0x26b   : > { %v4210_v51 = vadd.f32 -0.28449672, %v4178_v4  ;;  %v4081_v55 = vadd.f32 -1.4531521, %v4049_v21  ;;  %v6136_v9 = vpop.eup %6135  ;;  %v3956_v14 = vmul.f32 %v6134_v42, %v8225_v20  ;;  %v4425_v36 = vmul.f32 1.442695, %v4372_v45 }
 0x26c   : > { %v3955_v31 = vmul.f32 %v6136_v9, %v8228_v59  ;;  %6143 = vrcp.f32 %v8301_v26  ;;  %v3864_v43 = vmul.f32 0.3275911, %v8304_v57  ;;  %v8314_v16 = vsel %vm3764_vm6, 1.0, %v8766_v48 }
 0x26d   : > { %v4242_v2 = vmul.f32 %v4210_v51, %v8236_v35  ;;  %v4113_v60 = vmul.f32 %v4081_v55, %v8272_v37  ;;  %v3988_v28 = vsub.f32 2.0, %v3956_v14  ;;  %v4423_v18 = vmul.f32 1.442695, %v4371_v3 }
 0x26e   : > { %v3987_v39 = vsub.f32 2.0, %v3955_v31  ;;  %v8318_v23 = vadd.f32 1.0, %v3864_v43  ;;  %v8321_v59 = vadd.f32 %v8116_v27, %v3632_v56  ;;  %v4374_v53 = vmul.f32 %v4342_v44, %v3830_v15 }
 0x26f   : > { %v4274_v20 = vadd.f32 0.2548296, %v4242_v2  ;;  %v4145_v0 = vadd.f32 1.4214138, %v4113_v60  ;;  %v8316_v22 = vmul.f32 %v6134_v42, %v3988_v28  ;;  %v6138_v30 = vpop.eup %6137  ;;  %v4341_v5 = vsub.f32 0.0, %v8283_v46  ;;  %v5989_v2 = vpop.f32.mrf.mxu0 }
 0x270   : > { %v8325_v34 = vmul.f32 %v6136_v9, %v3987_v39  ;;  %6145 = vrcp.f32 %v8318_v23  ;;  %v8331_v49 = vmul.f32 0.70710677, %v8321_v59  ;;  %vm3763_vm7 = vcmp.ge.f32.partialorder %v8202_v1, 0.0  ;;  %v3189_v39 = vpop.f32.mrf.mxu1 }
 0x271   : > { %v4306_v50 = vmul.f32 %v4274_v20, %v8236_v35  ;;  %v4177_v12 = vmul.f32 %v4145_v0, %v8272_v37  ;;  %v4052_v8 = vmul.f32 1.0614054, %v8316_v22  ;;  %6147 = vpow2.f32 %v4425_v36 }
 0x272   : > { %v4051_v35 = vmul.f32 1.0614054, %v8325_v34  ;;  %v8336_v15 = vand.u32 2147483647, %v8331_v49  ;;  %v3245_v4 = vadd.f32 %v5939_v41, %v8774_v13  ;;  %6149 = vpow2.f32 %v4423_v18 }
 0x273   : > { %v4466_v25 = vmul.f32 %v6138_v30, %v4306_v50  ;;  %v4209_v7 = vadd.f32 -0.28449672, %v4177_v12  ;;  %v4084_v47 = vadd.f32 -1.4531521, %v4052_v8  ;;  %v4429_v42 = vmul.f32 1.442695, %v4374_v53 }
 0x274   : > { %v4083_v40 = vadd.f32 -1.4531521, %v4051_v35  ;;  %v6140_v45 = vpop.eup %6139  ;;  %v4373_v51 = vmul.f32 %v4341_v5, %v8283_v46  ;;  %v3863_v55 = vmul.f32 0.3275911, %v8336_v15  ;;  %v4344_v31 = vsub.f32 0.0, %v8304_v57 }
 0x275   : > { %v4498_v21 = vsub.f32 1.0, %v4466_v25  ;;  %v4241_v24 = vmul.f32 %v4209_v7, %v8272_v37  ;;  %v4116_v61 = vmul.f32 %v4084_v47, %v8316_v22  ;;  %v6142_v3 = vpop.eup %6141  ;;  %v3958_v17 = vmul.f32 %v6140_v45, %v8275_v32 }
 0x276   : > { %v4115_v44 = vmul.f32 %v4083_v40, %v8325_v34  ;;  %v8347_v56 = vadd.f32 1.0, %v3863_v55  ;;  %v3635_v28 = vadd.f32 %v5989_v2, %v3245_v4  ;;  %v4427_v0 = vmul.f32 1.442695, %v4373_v51  ;;  %v3579_v55 = vpop.f32.mrf.mxu0 }
 0x277   : > { %v4530_v9 = vmul.f32 %v4498_v21, %v8246_v11  ;;  %v4273_v14 = vadd.f32 0.2548296, %v4241_v24  ;;  %v4148_v60 = vadd.f32 1.4214138, %v4116_v61  ;;  %v3990_v20 = vsub.f32 2.0, %v3958_v17 }
 0x278   : > { %v4147_v43 = vadd.f32 1.4214138, %v4115_v44  ;;  %6151 = vrcp.f32 %v8347_v56  ;;  %v8353_v32 = vadd.f32 %v8116_v27, %v3635_v28  ;;  %v3795_v30 = vsel %vm3763_vm7, 1.0, %v8766_v48 }
 0x279   : > { %v4562_v36 = vadd.f32 1.0, %v4530_v9  ;;  %v4305_v46 = vmul.f32 %v4273_v14, %v8272_v37  ;;  %v4180_v11 = vmul.f32 %v4148_v60, %v8316_v22  ;;  %v6144_v18 = vpop.eup %6143  ;;  %v8357_v41 = vmul.f32 %v6140_v45, %v3990_v20 }
 0x27a   : > { %v4179_v53 = vmul.f32 %v4147_v43, %v8325_v34  ;;  %v3957_v8 = vmul.f32 %v6144_v18, %v8301_v26  ;;  %v4376_v5 = vmul.f32 %v4344_v31, %v8304_v57  ;;  %6153 = vpow2.f32 %v4429_v42 }
 0x27b   : > { %v4594_v50 = vmul.f32 %v4562_v36, %v8234_v63  ;;  %v4465_v12 = vmul.f32 %v6142_v3, %v4305_v46  ;;  %v4212_v37 = vadd.f32 -0.28449672, %v4180_v11  ;;  %v4054_v35 = vmul.f32 1.0614054, %v8357_v41  ;;  %v8775_v63 = vld [vmem:[#allocation23_spill] sm:$0xff] }
 0x27c   : > { %v4211_v7 = vadd.f32 -0.28449672, %v4179_v53  ;;  %v3244_v47 = vadd.f32 %v3189_v39, %v8775_v63  ;;  %v3989_v4 = vsub.f32 2.0, %v3957_v8  ;;  %v8369_v21 = vmul.f32 0.70710677, %v8353_v32 }
 0x27d   : > { %4626 = vst [vmem:[%s7843_s9 + $0x98] sm:$0xff] %v4594_v50  ;;  %v4497_v25 = vsub.f32 1.0, %v4465_v12  ;;  %v4244_v13 = vmul.f32 %v4212_v37, %v8316_v22  ;;  %v6146_v1 = vpop.eup %6145  ;;  %v4086_v57 = vadd.f32 -1.4531521, %v4054_v35  ;;  %6155 = vpow2.f32 %v4427_v0 }
 0x27e   : > { %v4243_v26 = vmul.f32 %v4211_v7, %v8325_v34  ;;  %v8373_v45 = vmul.f32 %v6144_v18, %v3989_v4  ;;  %v3960_v61 = vmul.f32 %v6146_v1, %v8318_v23  ;;  %v4433_v51 = vmul.f32 1.442695, %v4376_v5  ;;  %v6148_v3 = vpop.eup %6147  ;;  %v8776_v7 = vld [vmem:[#allocation24_spill] sm:$0xff] }
 0x27f   : > { %v4529_v24 = vmul.f32 %v4497_v25, %v8280_v58  ;;  %v4276_v40 = vadd.f32 0.2548296, %v4244_v13  ;;  %v4118_v14 = vmul.f32 %v4086_v57, %v8357_v41  ;;  %v3634_v44 = vadd.f32 %v3579_v55, %v3244_v47  ;;  %v6150_v17 = vpop.eup %6149 }
 0x280   : > { %v4275_v9 = vadd.f32 0.2548296, %v4243_v26  ;;  %v4053_v2 = vmul.f32 1.0614054, %v8373_v45  ;;  %v3992_v60 = vsub.f32 2.0, %v3960_v61  ;;  %v4343_v46 = vsub.f32 0.0, %v8336_v15 }
 0x281   : > { %v4561_v42 = vadd.f32 1.0, %v4529_v24  ;;  %v4308_v58 = vmul.f32 %v4276_v40, %v8316_v22  ;;  %v8380_v31 = vand.u32 2147483647, %v8369_v21  ;;  %v4150_v36 = vadd.f32 1.4214138, %v4118_v14  ;;  %v5942_v22 = vpop.f32.mrf.mxu1 }
 0x282   : > { %v4307_v28 = vmul.f32 %v4275_v9, %v8325_v34  ;;  %v4085_v20 = vadd.f32 -1.4531521, %v4053_v2  ;;  %v8385_v11 = vmul.f32 %v6146_v1, %v3992_v60  ;;  %6157 = vpow2.f32 %v4433_v51 }
 0x283   : > { %v4593_v23 = vmul.f32 %v4561_v42, %v8256_v62  ;;  %v4468_v43 = vmul.f32 %v6148_v3, %v4308_v58  ;;  %v3866_v0 = vmul.f32 0.3275911, %v8380_v31  ;;  %v4182_v18 = vmul.f32 %v4150_v36, %v8357_v41 }
 0x284   : > { %v4467_v39 = vmul.f32 %v6150_v17, %v4307_v28  ;;  %v8391_v50 = vadd.f32 %v8116_v27, %v3634_v44  ;;  %v4117_v34 = vmul.f32 %v4085_v20, %v8373_v45  ;;  %v4056_v12 = vmul.f32 1.0614054, %v8385_v11  ;;  %v5992_v44 = vpop.f32.mrf.mxu0  ;;  %v3199_v17 = vpop.f32.mrf.mxu1  ;;  %v8777_v20 = vld [vmem:[#allocation25_spill] sm:$0xff] }
 0x285   : > { %4625 = vst [vmem:[%s7843_s9 + $0x90] sm:$0xff] %v4593_v23  ;;  %v4500_v62 = vsub.f32 1.0, %v4468_v43  ;;  %v8395_v53 = vadd.f32 1.0, %v3866_v0  ;;  %v6152_v37 = vpop.eup %6151  ;;  %v4214_v5 = vadd.f32 -0.28449672, %v4182_v18  ;;  %v4375_v25 = vmul.f32 %v4343_v46, %v8336_v15 }
 0x286   : > { %v4499_v8 = vsub.f32 1.0, %v4467_v39  ;;  %v3247_v35 = vadd.f32 %v5942_v22, %v8776_v7  ;;  %v4149_v47 = vadd.f32 1.4214138, %v4117_v34  ;;  %v4088_v13 = vadd.f32 -1.4531521, %v4056_v12 }
 0x287   : > { %v4532_v63 = vmul.f32 %v4500_v62, %v8314_v16  ;;  %v3959_v4 = vmul.f32 %v6152_v37, %v8347_v56  ;;  %v4246_v24 = vmul.f32 %v4214_v5, %v8357_v41  ;;  %6159 = vrcp.f32 %v8395_v53  ;;  %v6154_v51 = vpop.eup %6153  ;;  %v3589_v62 = vpop.f32.mrf.mxu0 }
 0x288   : > { %v4531_v1 = vmul.f32 %v4499_v8, %v3795_v30  ;;  %v8404_v26 = vmul.f32 0.70710677, %v8391_v50  ;;  %v4181_v40 = vmul.f32 %v4149_v47, %v8373_v45  ;;  %v4120_v15 = vmul.f32 %v4088_v13, %v8385_v11 }
 0x289   : > { %v4564_v57 = vadd.f32 1.0, %v4532_v63  ;;  %v3991_v61 = vsub.f32 2.0, %v3959_v4  ;;  %v3699_v16 = vmul.f32 0.5, %v8193_v33  ;;  %vm3766_vm8 = vcmp.ge.f32.partialorder %v8252_v38, 0.0 }
 0x28a   : > { %v4563_v55 = vadd.f32 1.0, %v4531_v1  ;;  %v4278_v56 = vadd.f32 0.2548296, %v4246_v24  ;;  %v6156_v30 = vpop.eup %6155  ;;  %v4213_v42 = vadd.f32 -0.28449672, %v4181_v40  ;;  %v3637_v36 = vadd.f32 %v5992_v44, %v3247_v35 }
 0x28b   : > { %v4596_v3 = vmul.f32 %v4564_v57, %v8294_v6  ;;  %v4152_v9 = vadd.f32 1.4214138, %v4120_v15  ;;  %v8411_v14 = vmul.f32 %v6152_v37, %v3991_v61  ;;  %v4431_v60 = vmul.f32 1.442695, %v4375_v25 }
 0x28c   : > { %v4595_v58 = vmul.f32 %v4563_v55, %v3699_v16  ;;  %v4310_v2 = vmul.f32 %v4278_v56, %v8357_v41  ;;  %v8415_v33 = vand.u32 2147483647, %v8404_v26  ;;  %v4245_v23 = vmul.f32 %v4213_v42, %v8373_v45 }
 0x28d   : > { %4628 = vst [vmem:[%s7843_s9 + $0xa8] sm:$0xff] %v4596_v3  ;;  %v4184_v28 = vmul.f32 %v4152_v9, %v8385_v11  ;;  %v4055_v6 = vmul.f32 1.0614054, %v8411_v14  ;;  %v3246_v0 = vadd.f32 %v3199_v17, %v8777_v20  ;;  %v8425_v18 = vadd.f32 %v8116_v27, %v3637_v36  ;;  %v5945_v3 = vpop.f32.mrf.mxu1  ;;  %v5995_v36 = vpop.f32.mrf.mxu0 }
 0x28e   : > { %4627 = vst [vmem:[%s7843_s9 + $0xa0] sm:$0xff] %v4595_v58  ;;  %v4470_v46 = vmul.f32 %v6154_v51, %v4310_v2  ;;  %v3865_v43 = vmul.f32 0.3275911, %v8415_v33  ;;  %v4277_v22 = vadd.f32 0.2548296, %v4245_v23  ;;  %v3798_v34 = vsel %vm3766_vm8, 1.0, %v8766_v48 }
 0x28f   : > { %v4216_v41 = vadd.f32 -0.28449672, %v4184_v28  ;;  %v4087_v39 = vadd.f32 -1.4531521, %v4055_v6  ;;  %v3636_v8 = vadd.f32 %v3589_v62, %v3246_v0  ;;  %v6158_v5 = vpop.eup %6157  ;;  %6161 = vpow2.f32 %v4431_v60  ;;  %v8778_v23 = vld [vmem:[#allocation26_spill] sm:$0xff] }
 0x290   : > { %v4502_v12 = vsub.f32 1.0, %v4470_v46  ;;  %v8430_v37 = vadd.f32 1.0, %v3865_v43  ;;  %v4309_v25 = vmul.f32 %v4277_v22, %v8373_v45  ;;  %v3702_v63 = vmul.f32 0.5, %v8240_v52 }
 0x291   : > { %v4248_v7 = vmul.f32 %v4216_v41, %v8385_v11  ;;  %v4119_v35 = vmul.f32 %v4087_v39, %v8411_v14  ;;  %v8438_v38 = vmul.f32 0.70710677, %v8425_v18  ;;  %vm3765_vm9 = vcmp.ge.f32.partialorder %v8270_v54, 0.0 }
 0x292   : > { %v4534_v47 = vmul.f32 %v4502_v12, %v3798_v34  ;;  %6163 = vrcp.f32 %v8430_v37  ;;  %v4469_v13 = vmul.f32 %v6156_v30, %v4309_v25  ;;  %v4346_v45 = vsub.f32 0.0, %v8380_v31 }
 0x293   : > { %v4280_v4 = vadd.f32 0.2548296, %v4248_v7  ;;  %v4151_v1 = vadd.f32 1.4214138, %v4119_v35  ;;  %v8443_v57 = vand.u32 2147483647, %v8438_v38  ;;  %v8446_v52 = vadd.f32 %v8116_v27, %v3636_v8 }
 0x294   : > { %v4566_v24 = vadd.f32 1.0, %v4534_v47  ;;  %v6160_v40 = vpop.eup %6159  ;;  %v3701_v15 = vmul.f32 0.5, %v8262_v29  ;;  %v4501_v61 = vsub.f32 1.0, %v4469_v13  ;;  %v3797_v55 = vsel %vm3765_vm9, 1.0, %v8766_v48  ;;  %v8779_v8 = vld [vmem:[#allocation27_spill] sm:$0xff]  ;;  %v3599_v47 = vpop.f32.mrf.mxu0 }
 0x295   : > { %v4312_v51 = vmul.f32 %v4280_v4, %v8385_v11  ;;  %v4183_v54 = vmul.f32 %v4151_v1, %v8411_v14  ;;  %v3962_v56 = vmul.f32 %v6160_v40, %v8395_v53  ;;  %v3868_v30 = vmul.f32 0.3275911, %v8443_v57 }
 0x296   : > { %v4598_v16 = vmul.f32 %v4566_v24, %v3702_v63  ;;  %v4533_v42 = vmul.f32 %v4501_v61, %v3797_v55  ;;  %vm3768_vm10 = vcmp.ge.f32.partialorder %v8286_v19, 0.0  ;;  %v4378_v17 = vmul.f32 %v4346_v45, %v8380_v31  ;;  %v3209_v31 = vpop.f32.mrf.mxu1 }
 0x297   : > { %v4472_v9 = vmul.f32 %v6158_v5, %v4312_v51  ;;  %v4215_v44 = vadd.f32 -0.28449672, %v4183_v54  ;;  %v3994_v29 = vsub.f32 2.0, %v3962_v56  ;;  %v8457_v11 = vadd.f32 1.0, %v3868_v30 }
 0x298   : > { %4630 = vst [vmem:[%s7843_s9 + $0xb8] sm:$0xff] %v4598_v16  ;;  %v8460_v58 = vmul.f32 0.70710677, %v8446_v52  ;;  %v4565_v2 = vadd.f32 1.0, %v4533_v42  ;;  %v3249_v28 = vadd.f32 %v5945_v3, %v8778_v23  ;;  %v3800_v19 = vsel %vm3768_vm10, 1.0, %v8766_v48 }
 0x299   : > { %v4504_v60 = vsub.f32 1.0, %v4472_v9  ;;  %v4247_v53 = vmul.f32 %v4215_v44, %v8411_v14  ;;  %v8465_v6 = vmul.f32 %v6160_v40, %v3994_v29  ;;  %6165 = vrcp.f32 %v8457_v11 }
 0x29a   : > { %v4597_v46 = vmul.f32 %v4565_v2, %v3701_v15  ;;  %v3704_v43 = vmul.f32 0.5, %v8265_v10  ;;  %v4437_v41 = vmul.f32 1.442695, %v4378_v17  ;;  %v8471_v39 = vand.u32 2147483647, %v8460_v58 }
 0x29b   : > { %v4536_v20 = vmul.f32 %v4504_v60, %v3800_v19  ;;  %v4279_v0 = vadd.f32 0.2548296, %v4247_v53  ;;  %v4058_v22 = vmul.f32 1.0614054, %v8465_v6  ;;  %v3639_v62 = vadd.f32 %v5995_v36, %v3249_v28 }
 0x29c   : > { %4629 = vst [vmem:[%s7843_s9 + $0xb0] sm:$0xff] %v4597_v46  ;;  %vm3767_vm11 = vcmp.ge.f32.partialorder %v8331_v49, 0.0  ;;  %v3248_v5 = vadd.f32 %v3209_v31, %v8779_v8  ;;  %v6162_v25 = vpop.eup %6161  ;;  %v4345_v7 = vsub.f32 0.0, %v8415_v33  ;;  %v3867_v35 = vmul.f32 0.3275911, %v8471_v39 }
 0x29d   : > { %v4568_v34 = vadd.f32 1.0, %v4536_v20  ;;  %v4311_v12 = vmul.f32 %v4279_v0, %v8411_v14  ;;  %v4090_v10 = vadd.f32 -1.4531521, %v4058_v22  ;;  %v8480_v63 = vadd.f32 %v8116_v27, %v3639_v62 }
 0x29e   : > { %v3638_v24 = vadd.f32 %v3599_v47, %v3248_v5  ;;  %6167 = vpow2.f32 %v4437_v41  ;;  %v3899_v40 = vadd.f32 1.0, %v3867_v35  ;;  %v3799_v15 = vsel %vm3767_vm11, 1.0, %v8766_v48 }
 0x29f   : > { %v6164_v13 = vpop.eup %6163  ;;  %v4600_v4 = vmul.f32 %v4568_v34, %v3704_v43  ;;  %v4471_v1 = vmul.f32 %v6162_v25, %v4311_v12  ;;  %v4122_v45 = vmul.f32 %v4090_v10, %v8465_v6  ;;  %v8489_v51 = vmul.f32 0.70710677, %v8480_v63 }
 0x2a0   : > { %v3961_v14 = vmul.f32 %v6164_v13, %v8430_v37  ;;  %v8492_v54 = vadd.f32 %v8116_v27, %v3638_v24  ;;  %v4377_v56 = vmul.f32 %v4345_v7, %v8415_v33  ;;  %6169 = vrcp.f32 %v3899_v40 }
 0x2a1   : > { %4632 = vst [vmem:[%s7843_s9 + $0xc8] sm:$0xff] %v4600_v4  ;;  %v4503_v61 = vsub.f32 1.0, %v4471_v1  ;;  %v4154_v16 = vadd.f32 1.4214138, %v4122_v45  ;;  %v8496_v37 = vand.u32 2147483647, %v8489_v51 }
 0x2a2   : > { %v3993_v55 = vsub.f32 2.0, %v3961_v14  ;;  %v3703_v3 = vmul.f32 0.5, %v8321_v59  ;;  %v4348_v44 = vsub.f32 0.0, %v8443_v57  ;;  %v8503_v29 = vmul.f32 0.70710677, %v8492_v54 }
 0x2a3   : > { %v4535_v30 = vmul.f32 %v4503_v61, %v3799_v15  ;;  %v4186_v49 = vmul.f32 %v4154_v16, %v8465_v6  ;;  %v3870_v27 = vmul.f32 0.3275911, %v8496_v37  ;;  %v4435_v2 = vmul.f32 1.442695, %v4377_v56 }
 0x2a4   : > { %v4025_v42 = vmul.f32 %v6164_v13, %v3993_v55  ;;  %v4380_v36 = vmul.f32 %v4348_v44, %v8443_v57  ;;  %v8510_v31 = vand.u32 2147483647, %v8503_v29  ;;  %vm3770_vm12 = vcmp.ge.f32.partialorder %v8369_v21, 0.0 }
 0x2a5   : > { %v4567_v9 = vadd.f32 1.0, %v4535_v30  ;;  %v4218_v33 = vadd.f32 -0.28449672, %v4186_v49  ;;  %v3902_v23 = vadd.f32 1.0, %v3870_v27  ;;  %v3706_v21 = vmul.f32 0.5, %v8353_v32 }
 0x2a6   : > { %v4057_v17 = vmul.f32 1.0614054, %v4025_v42  ;;  %v6166_v60 = vpop.eup %6165  ;;  %v3869_v0 = vmul.f32 0.3275911, %v8510_v31  ;;  %v4441_v12 = vmul.f32 1.442695, %v4380_v36 }
 0x2a7   : > { %v4599_v53 = vmul.f32 %v4567_v9, %v3703_v3  ;;  %v4250_v59 = vmul.f32 %v4218_v33, %v8465_v6  ;;  %v3964_v19 = vmul.f32 %v6166_v60, %v8457_v11  ;;  %6171 = vrcp.f32 %v3902_v23 }
 0x2a8   : > { %v4089_v28 = vadd.f32 -1.4531521, %v4057_v17  ;;  %6173 = vpow2.f32 %v4435_v2  ;;  %v4347_v11 = vsub.f32 0.0, %v8471_v39  ;;  %v3901_v8 = vadd.f32 1.0, %v3869_v0 }
 0x2a9   : > { %4631 = vst [vmem:[%s7843_s9 + $0xc0] sm:$0xff] %v4599_v53  ;;  %v4282_v46 = vadd.f32 0.2548296, %v4250_v59  ;;  %v3996_v20 = vsub.f32 2.0, %v3964_v19  ;;  %v4350_v30 = vsub.f32 0.0, %v8496_v37  ;;  %vm3769_vm13 = vcmp.ge.f32.partialorder %v8404_v26, 0.0 }
 0x2aa   : > { %v4121_v43 = vmul.f32 %v4089_v28, %v4025_v42  ;;  %6175 = vrcp.f32 %v3901_v8  ;;  %v4379_v4 = vmul.f32 %v4347_v11, %v8471_v39  ;;  %v3801_v19 = vsel %vm3769_vm13, 1.0, %v8766_v48 }
 0x2ab   : > { %v4314_v22 = vmul.f32 %v4282_v46, %v8465_v6  ;;  %v4028_v62 = vmul.f32 %v6166_v60, %v3996_v20  ;;  %v6168_v34 = vpop.eup %6167  ;;  %v3802_v6 = vsel %vm3770_vm12, 1.0, %v8766_v48  ;;  %6177 = vpow2.f32 %v4441_v12 }
 0x2ac   : > { %v4153_v41 = vadd.f32 1.4214138, %v4121_v43  ;;  %v4439_v56 = vmul.f32 1.442695, %v4379_v4  ;;  %v4382_v60 = vmul.f32 %v4350_v30, %v8496_v37  ;;  %v4349_v36 = vsub.f32 0.0, %v8510_v31 }
 0x2ad   : > { %v4474_v57 = vmul.f32 %v6168_v34, %v4314_v22  ;;  %v4060_v25 = vmul.f32 1.0614054, %v4028_v62  ;;  %v6170_v10 = vpop.eup %6169  ;;  %v3705_v37 = vmul.f32 0.5, %v8391_v50  ;;  %vm3772_vm14 = vcmp.ge.f32.partialorder %v8438_v38, 0.0 }
 0x2ae   : > { %v4185_v5 = vmul.f32 %v4153_v41, %v4025_v42  ;;  %v3963_v13 = vmul.f32 %v6170_v10, %v3899_v40  ;;  %6179 = vpow2.f32 %v4439_v56  ;;  %v4445_v0 = vmul.f32 1.442695, %v4382_v60 }
 0x2af   : > { %v4506_v7 = vsub.f32 1.0, %v4474_v57  ;;  %v4092_v47 = vadd.f32 -1.4531521, %v4060_v25  ;;  %v4381_v25 = vmul.f32 %v4349_v36, %v8510_v31  ;;  %v3708_v31 = vmul.f32 0.5, %v8425_v18 }
 0x2b0   : > { %v4217_v35 = vadd.f32 -0.28449672, %v4185_v5  ;;  %v3995_v14 = vsub.f32 2.0, %v3963_v13  ;;  %6181 = vpow2.f32 %v4445_v0  ;;  %vm3771_vm15 = vcmp.ge.f32.partialorder %v8460_v58, 0.0 }
 0x2b1   : > { %v4538_v1 = vmul.f32 %v4506_v7, %v3802_v6  ;;  %v4124_v45 = vmul.f32 %v4092_v47, %v4028_v62  ;;  %vm3774_vm0 = vcmp.ge.f32.partialorder %v8489_v51, 0.0  ;;  %vm3773_vm1 = vcmp.ge.f32.partialorder %v8503_v29, 0.0 }
 0x2b2   : > { %v4249_v24 = vmul.f32 %v4217_v35, %v4025_v42  ;;  %v4027_v55 = vmul.f32 %v6170_v10, %v3995_v14 }
 0x2b3   : > { %v4570_v15 = vadd.f32 1.0, %v4538_v1  ;;  %v4156_v16 = vadd.f32 1.4214138, %v4124_v45  ;;  %v4443_v1 = vmul.f32 1.442695, %v4381_v25 }
 0x2b4   : > { %v4281_v61 = vadd.f32 0.2548296, %v4249_v24  ;;  %v6172_v40 = vpop.eup %6171  ;;  %v4059_v44 = vmul.f32 1.0614054, %v4027_v55 }
 0x2b5   : > { %v4602_v3 = vmul.f32 %v4570_v15, %v3706_v21  ;;  %v4188_v9 = vmul.f32 %v4156_v16, %v4028_v62  ;;  %v6174_v39 = vpop.eup %6173  ;;  %v3966_v27 = vmul.f32 %v6172_v40, %v3902_v23  ;;  %6183 = vpow2.f32 %v4443_v1 }
 0x2b6   : > { %v4313_v49 = vmul.f32 %v4281_v61, %v4025_v42  ;;  %v4091_v32 = vadd.f32 -1.4531521, %v4059_v44  ;;  %v3803_v44 = vsel %vm3771_vm15, 1.0, %v8766_v48 }
 0x2b7   : > { %4634 = vst [vmem:[%s7843_s9 + $0xd8] sm:$0xff] %v4602_v3  ;;  %v4220_v17 = vadd.f32 -0.28449672, %v4188_v9  ;;  %v3998_v2 = vsub.f32 2.0, %v3966_v27  ;;  %v6176_v46 = vpop.eup %6175 }
 0x2b8   : > { %v4473_v33 = vmul.f32 %v6174_v39, %v4313_v49  ;;  %v4123_v28 = vmul.f32 %v4091_v32, %v4027_v55  ;;  %v3965_v22 = vmul.f32 %v6176_v46, %v3901_v8  ;;  %v6178_v41 = vpop.eup %6177  ;;  %v3804_v8 = vsel %vm3772_vm14, 1.0, %v8766_v48 }
 0x2b9   : > { %v4252_v59 = vmul.f32 %v4220_v17, %v4028_v62  ;;  %v4030_v42 = vmul.f32 %v6172_v40, %v3998_v2  ;;  %v3707_v32 = vmul.f32 0.5, %v8446_v52 }
 0x2ba   : > { %v4505_v53 = vsub.f32 1.0, %v4473_v33  ;;  %v4155_v20 = vadd.f32 1.4214138, %v4123_v28  ;;  %v3997_v5 = vsub.f32 2.0, %v3965_v22  ;;  %v3709_v22 = vmul.f32 0.5, %v8492_v54 }
 0x2bb   : > { %v4284_v43 = vadd.f32 0.2548296, %v4252_v59  ;;  %v4062_v26 = vmul.f32 1.0614054, %v4030_v42  ;;  %v6180_v61 = vpop.eup %6179 }
 0x2bc   : > { %v4537_v23 = vmul.f32 %v4505_v53, %v3801_v19  ;;  %v4187_v11 = vmul.f32 %v4155_v20, %v4027_v55  ;;  %v4029_v13 = vmul.f32 %v6176_v46, %v3997_v5  ;;  %v3806_v19 = vsel %vm3774_vm0, 1.0, %v8766_v48 }
 0x2bd   : > { %v4316_v12 = vmul.f32 %v4284_v43, %v4028_v62  ;;  %v4094_v57 = vadd.f32 -1.4531521, %v4062_v26  ;;  %v6182_v17 = vpop.eup %6181  ;;  %v3805_v26 = vsel %vm3773_vm1, 1.0, %v8766_v48 }
 0x2be   : > { %v4569_v34 = vadd.f32 1.0, %v4537_v23  ;;  %v4219_v35 = vadd.f32 -0.28449672, %v4187_v11  ;;  %v4061_v62 = vmul.f32 1.0614054, %v4029_v13  ;;  %v3710_v23 = vmul.f32 0.5, %v8480_v63 }
 0x2bf   : > { %v4476_v7 = vmul.f32 %v6178_v41, %v4316_v12  ;;  %v4126_v47 = vmul.f32 %v4094_v57, %v4030_v42 }
 0x2c0   : > { %v4601_v10 = vmul.f32 %v4569_v34, %v3705_v37  ;;  %v4251_v50 = vmul.f32 %v4219_v35, %v4027_v55  ;;  %v4093_v14 = vadd.f32 -1.4531521, %v4061_v62 }
 0x2c1   : > { %v4508_v6 = vsub.f32 1.0, %v4476_v7  ;;  %v4158_v4 = vadd.f32 1.4214138, %v4126_v47 }
 0x2c2   : > { %4633 = vst [vmem:[%s7843_s9 + $0xd0] sm:$0xff] %v4601_v10  ;;  %v4283_v38 = vadd.f32 0.2548296, %v4251_v50  ;;  %v4125_v56 = vmul.f32 %v4093_v14, %v4029_v13  ;;  %v6184_v46 = vpop.eup %6183 }
 0x2c3   : > { %v4540_v24 = vmul.f32 %v4508_v6, %v3804_v8  ;;  %v4190_v45 = vmul.f32 %v4158_v4, %v4030_v42 }
 0x2c4   : > { %v4315_v15 = vmul.f32 %v4283_v38, %v4027_v55  ;;  %v4157_v49 = vadd.f32 1.4214138, %v4125_v56 }
 0x2c5   : > { %v4572_v21 = vadd.f32 1.0, %v4540_v24  ;;  %v4222_v16 = vadd.f32 -0.28449672, %v4190_v45 }
 0x2c6   : > { %v4475_v40 = vmul.f32 %v6180_v61, %v4315_v15  ;;  %v4189_v27 = vmul.f32 %v4157_v49, %v4029_v13 }
 0x2c7   : > { %v4604_v30 = vmul.f32 %v4572_v21, %v3708_v31  ;;  %v4254_v3 = vmul.f32 %v4222_v16, %v4030_v42 }
 0x2c8   : > { %v4507_v9 = vsub.f32 1.0, %v4475_v40  ;;  %v4221_v55 = vadd.f32 -0.28449672, %v4189_v27 }
 0x2c9   : > { %4636 = vst [vmem:[%s7843_s9 + $0xe8] sm:$0xff] %v4604_v30  ;;  %v4286_v39 = vadd.f32 0.2548296, %v4254_v3 }
 0x2ca   : > { %v4539_v18 = vmul.f32 %v4507_v9, %v3803_v44  ;;  %v4253_v60 = vmul.f32 %v4221_v55, %v4029_v13 }
 0x2cb   : > { %v4318_v33 = vmul.f32 %v4286_v39, %v4030_v42 }
 0x2cc   : > { %v4571_v2 = vadd.f32 1.0, %v4539_v18  ;;  %v4285_v28 = vadd.f32 0.2548296, %v4253_v60 }
 0x2cd   : > { %v4478_v58 = vmul.f32 %v6182_v17, %v4318_v33 }
 0x2ce   : > { %v4603_v53 = vmul.f32 %v4571_v2, %v3707_v32  ;;  %v4317_v42 = vmul.f32 %v4285_v28, %v4029_v13 }
 0x2cf   : > { %v4510_v59 = vsub.f32 1.0, %v4478_v58 }
 0x2d0   : > { %4635 = vst [vmem:[%s7843_s9 + $0xe0] sm:$0xff] %v4603_v53  ;;  %v4477_v51 = vmul.f32 %v6184_v46, %v4317_v42 }
 0x2d1   : > { %v4542_v36 = vmul.f32 %v4510_v59, %v3806_v19 }
 0x2d2   : > { %v4509_v20 = vsub.f32 1.0, %v4477_v51 }
 0x2d3   : > { %v4574_v52 = vadd.f32 1.0, %v4542_v36 }
 0x2d4   : > { %v4541_v0 = vmul.f32 %v4509_v20, %v3805_v26 }
 0x2d5   : > { %v4606_v43 = vmul.f32 %v4574_v52, %v3710_v23 }
 0x2d6   : > { %v4573_v41 = vadd.f32 1.0, %v4541_v0 }
 0x2d7   : > { %4638 = vst [vmem:[%s7843_s9 + $0xf8] sm:$0xff] %v4606_v43 }
 0x2d8   : > { %v4605_v63 = vmul.f32 %v4573_v41, %v3709_v22 }
 0x2da   : > { %4637 = vst [vmem:[%s7843_s9 + $0xf0] sm:$0xff] %v4605_v63 }
 0x2db   : > { %6199 = shalt.err (!%p6196_p5)
}
 0x2dc   : > { %s6200_s4 = scalar_lea.hbm %s8548_s26, 4096  ;;  %s6204_s7 = scalar_lea.hbm %s8603_s3, 8192 }
 0x2dd   : > { %p6201_p6 = scmp.ne.s32.totalorder %s8548_s26, %s6200_s4  ;;  %p6205_p10 = scmp.lt.s32.totalorder %s8548_s26, %s8603_s3 }
 0x2de   : > { %p6206_p11 = scmp.lt.s32.totalorder %s6204_s7, %s6200_s4 }
 0x2df   : > { %p6202_p7 = pnand %p6201_p6, %p6328_p4 }
 0x2e0   : > { %p6207_p12 = por %p6206_p11, %p6205_p10 }
 0x2e1   : > { %p6203_p9 = pneg %p6202_p7 }
 0x2e3   : > { %p6208_p13 = pnand %p6207_p12, %p6203_p9 }
 0x2e5   : > { %6211 = shalt.err (!%p6208_p13)
}
 0x2e6   : > { %s6266_s10 = smov 128   ;;  %s6267_s11 = smov 8  }
 0x2e7   : > { %5999 = dma.vmem_to_hbm [thread:$0]  (%p6328_p4), %s8550_s19, 4096, %s8548_s26, %s8555_s27, %s6266_s10, %s6266_s10, %s6267_s11  }
 0x2e8 PF: > { %p6005_p0 = scmp.ge.s32.totalorder %s6262_s17, 2  ;;  %s4670_s18 = sand.u32 1, %s6242_s12  }
 0x2e9   : > { %s4671_s21 = scalar_lea.sflag [#allocation3], %s4670_s18 }
 0x2ea   : > { %p6002_p1 = pnand %p6005_p0, %p6335_p8 }
 0x2ec   : > { %p6003_p2 = pneg %p6002_p1 }
 0x2ee   : > { %6237 = dma.done.wait (%p6003_p2), %s4671_s21, 4096  }
 0x2ef   : > { %6239 = vsyncadd (%p6003_p2), %s4671_s21, 4294963200  ;;  %s16_s17 = sadd.s32 1, %s6262_s17   ;;  %s8780_s12 = smov %s6246_s13 }
 0x2f0   : > { %p13_p3 = scmp.ge.s32.totalorder %s16_s17, 4   ;;  %s8781_s13 = smov %s6250_s14 }
 0x2f1   : > { %s8782_s14 = smov %s6341_s25  ;;  %s8783_s15 = smov %s6258_s16 }
 0x2f2   : > { %s8784_s16 = smov %s8786_s20  ;;  %15 = sbr.rel (!%p13_p3) target bundleno = 4 (0x4), region = 78 }
 0x2f7   :  { %4676 = vsyncpa [#allocation3], 1 }
 0x2f8   :  { %4678 = vsyncpa [#allocation3 + $0x1], 1 }

</bundles_post_ra>
